<compile_context>
chip_gen: v7x
topology: tpu7x:2x2x1
jax: 0.10.0
libtpu: 0.0.40
codegen_flags: <defaults>
</compile_context>

<pallas_src>
import functools

import jax
import jax.numpy as jnp
from jax.experimental import pallas as pl
from jax.experimental.pallas import tpu as pltpu


def _convlstm_kernel(xpad_ref, cprev_ref, w_ref, wpack_ref, b_ref,
                     h_ref, c_ref, acc_ref, *,
                     K, Hs, Ws, Cout, strip, activation):
    """One batch element per grid step.

    xpad_ref : (Hp, Wp, Cin_tot)       bf16  zero-padded [X ; H_prev], NHWC
    cprev_ref: (1, M, Cout)            f32   previous cell state
    w_ref    : (K*K, Cin_tot, 4*Cout)  bf16  per-tap conv weights
    wpack_ref: (M, 3*Cout)             f32   packed peepholes [W_ci|W_cf|W_co]
    b_ref    : (1, 4*Cout)             f32   conv bias (exact, incl. +1 forget)
    h_ref    : (1, M, Cout)            bf16  new hidden state  (output)
    c_ref    : (1, M, Cout)            f32   new cell state    (output)
    acc_ref  : (M, 4*Cout)             f32   VMEM scratch (conv + bias)
    """
    Cin_tot = xpad_ref.shape[-1]
    M = Hs * Ws

    # ---- convolution: K*K shifted sub-matmuls, f32 MXU accumulation --------
    # Each tap is a statically-shifted window of the padded input; the gather
    # happens in VMEM (no HBM im2col).  Accumulate in registers, store once.
    acc = None
    for t in range(K * K):
        dy, dx = t // K, t % K
        tap = xpad_ref[dy:dy + Hs, dx:dx + Ws, :]            # (Hs, Ws, Cin_tot)
        tap2 = tap.reshape(M, Cin_tot)                       # (M, Cin_tot) bf16
        part = jnp.dot(tap2, w_ref[t],
                       preferred_element_type=jnp.float32)   # (M, 4*Cout) f32
        acc = part if acc is None else acc + part
    acc_ref[...] = acc + b_ref[...]                          # f32 bias add

    if activation == "tanh":
        act = jnp.tanh
    else:  # 'relu'
        act = lambda v: jnp.maximum(v, 0.0)

    # ---- gate math, streamed over sublane-aligned strips (fully unrolled) --
    for s in range(M // strip):
        rows = pl.ds(s * strip, strip)

        a = acc_ref[rows, :]                                 # (strip, 4*Cout)
        cprev = cprev_ref[0, rows, :]                        # (strip, Cout)
        wpk = wpack_ref[rows, :]                             # (strip, 3*Cout)

        i_g = jax.nn.sigmoid(a[:, 0 * Cout:1 * Cout] +
                             wpk[:, 0 * Cout:1 * Cout] * cprev)
        f_g = jax.nn.sigmoid(a[:, 1 * Cout:2 * Cout] +
                             wpk[:, 1 * Cout:2 * Cout] * cprev)
        c_new = f_g * cprev + i_g * act(a[:, 2 * Cout:3 * Cout])
        o_g = jax.nn.sigmoid(a[:, 3 * Cout:4 * Cout] +
                             wpk[:, 2 * Cout:3 * Cout] * c_new)
        h_new = o_g * act(c_new)

        h_ref[0, rows, :] = h_new.astype(h_ref.dtype)
        c_ref[0, rows, :] = c_new.astype(c_ref.dtype)


def conv_lstm_cell_pallas(X, H_prev, C_prev, conv_w, conv_b, W_ci, W_cf, W_co,
                          *, kernel_size, padding, activation="tanh",
                          h_dtype=jnp.bfloat16):
    """X, H_prev, C_prev in NCHW (PyTorch convention); returns (H, C) in NCHW.

    H is returned in `h_dtype` (bf16 by default: it is consumed in bf16 by the
    next step's conv anyway); C is returned in f32.
    """
    B, Cin, Hs, Ws = X.shape
    Cout = H_prev.shape[1]
    K, p = kernel_size, padding
    if 2 * p != K - 1:
        raise ValueError(
            "kernel implements a 'same' convolution: need 2*padding == kernel_size - 1")
    Cin_tot = Cin + Cout
    M = Hs * Ws
    Hp, Wp = Hs + 2 * p, Ws + 2 * p

    # ---- layout plumbing (zero FLOPs, fused by XLA) -------------------------
    # [X ; H_prev] -> NHWC -> bf16 -> spatial zero-pad.  Only ~Hp*Wp*Cin_tot
    # bf16 per batch element; the K*K tap expansion happens inside the kernel.
    inp = jnp.concatenate([X, H_prev], axis=1)                    # (B, Cin_tot, Hs, Ws)
    inp = jnp.transpose(inp, (0, 2, 3, 1)).astype(jnp.bfloat16)   # (B, Hs, Ws, Cin_tot)
    xpad = jnp.pad(inp, ((0, 0), (p, p), (p, p), (0, 0)))         # (B, Hp, Wp, Cin_tot)

    cprev2 = jnp.transpose(C_prev, (0, 2, 3, 1)).reshape(B, M, Cout)
    cprev2 = cprev2.astype(jnp.float32)

    # conv weight OIHW -> (dy, dx, cin, o) -> (K*K, Cin_tot, 4*Cout), bf16.
    w_taps = jnp.transpose(conv_w, (2, 3, 1, 0)).reshape(K * K, Cin_tot, 4 * Cout)
    w_taps = w_taps.astype(jnp.bfloat16)
    bias = conv_b.reshape(1, 4 * Cout).astype(jnp.float32)        # bias stays f32

    # packed peepholes [W_ci | W_cf | W_co] in (M, 3*Cout), f32.
    wpack = jnp.concatenate(
        [jnp.transpose(W_ci, (1, 2, 0)),
         jnp.transpose(W_cf, (1, 2, 0)),
         jnp.transpose(W_co, (1, 2, 0))], axis=-1).reshape(M, 3 * Cout)
    wpack = wpack.astype(jnp.float32)

    # gate-math strip size (sublane aligned)
    strip = next((s for s in (64, 32, 16, 8) if M % s == 0), M)

    kernel = functools.partial(_convlstm_kernel, K=K, Hs=Hs, Ws=Ws, Cout=Cout,
                               strip=strip, activation=activation)

    out_shape = (jax.ShapeDtypeStruct((B, M, Cout), h_dtype),
                 jax.ShapeDtypeStruct((B, M, Cout), jnp.float32))

    h2, c2 = pl.pallas_call(
        kernel,
        out_shape=out_shape,
        grid_spec=pltpu.PrefetchScalarGridSpec(
            num_scalar_prefetch=0,
            grid=(B,),
            in_specs=[
                # padded input: per-batch block, leading dim squeezed
                pl.BlockSpec((None, Hp, Wp, Cin_tot), lambda b: (b, 0, 0, 0)),
                pl.BlockSpec((1, M, Cout), lambda b: (b, 0, 0)),
                # weights / peepholes / bias: constant block index -> fetched once
                pl.BlockSpec((K * K, Cin_tot, 4 * Cout), lambda b: (0, 0, 0)),
                pl.BlockSpec((M, 3 * Cout), lambda b: (0, 0)),
                pl.BlockSpec((1, 4 * Cout), lambda b: (0, 0)),
            ],
            out_specs=[
                pl.BlockSpec((1, M, Cout), lambda b: (b, 0, 0)),
                pl.BlockSpec((1, M, Cout), lambda b: (b, 0, 0)),
            ],
            scratch_shapes=[pltpu.VMEM((M, 4 * Cout), jnp.float32)],
        ),
        compiler_params=pltpu.CompilerParams(
            dimension_semantics=("parallel",)),
    )(xpad, cprev2, w_taps, wpack, bias)

    # back to NCHW
    H_new = jnp.transpose(h2.reshape(B, Hs, Ws, Cout), (0, 3, 1, 2))
    C_new = jnp.transpose(c2.reshape(B, Hs, Ws, Cout), (0, 3, 1, 2))
    return H_new, C_new


def conv_lstm_cell_ref(X, H_prev, C_prev, conv_w, conv_b, W_ci, W_cf, W_co,
                       *, padding, activation="tanh"):
    """Pure-JAX f32 reference matching the PyTorch forward exactly (NCHW)."""
    act = jnp.tanh if activation == "tanh" else (lambda v: jnp.maximum(v, 0.0))
    inp = jnp.concatenate([X, H_prev], axis=1)
    conv = jax.lax.conv_general_dilated(
        inp, conv_w, window_strides=(1, 1),
        padding=[(padding, padding), (padding, padding)],
        dimension_numbers=("NCHW", "OIHW", "NCHW"))
    conv = conv + conv_b[None, :, None, None]
    i_conv, f_conv, g_conv, o_conv = jnp.split(conv, 4, axis=1)
    input_gate = jax.nn.sigmoid(i_conv + W_ci[None] * C_prev)
    forget_gate = jax.nn.sigmoid(f_conv + W_cf[None] * C_prev)
    C = forget_gate * C_prev + input_gate * act(g_conv)
    output_gate = jax.nn.sigmoid(o_conv + W_co[None] * C)
    H = output_gate * act(C)
    return H, C


if __name__ == "__main__":
    # Shapes consistent with the module: activation='tanh', kernel_size=3,
    # padding=1, frame_size=(16, 16).
    B, Cin, Cout, Hs, Ws = 2, 4, 32, 16, 16
    K, pad = 3, 1
    Cin_tot = Cin + Cout

    key = jax.random.PRNGKey(0)
    kx, kh, kc, kw, kb, k1, k2, k3 = jax.random.split(key, 8)

    X = jax.random.normal(kx, (B, Cin, Hs, Ws), jnp.float32)
    H_prev = jax.random.normal(kh, (B, Cout, Hs, Ws), jnp.float32)
    C_prev = jax.random.normal(kc, (B, Cout, Hs, Ws), jnp.float32)

    # Deterministic parameter init (kaiming-normal-like scaling).
    fan_in = Cin_tot * K * K
    conv_w = jax.random.normal(kw, (4 * Cout, Cin_tot, K, K), jnp.float32) * (
        (2.0 / fan_in) ** 0.5)
    bound = 1.0 / (fan_in ** 0.5)
    conv_b = jax.random.uniform(kb, (4 * Cout,), jnp.float32, -bound, bound)
    # nn.init.constant_(bias[out_channels:2*out_channels], 1.0) (forget-gate bias)
    conv_b = conv_b.at[Cout:2 * Cout].set(1.0)

    fan_in_w = Hs * Ws
    W_ci = jax.random.normal(k1, (Cout, Hs, Ws), jnp.float32) * ((2.0 / fan_in_w) ** 0.5)
    W_cf = jax.random.normal(k2, (Cout, Hs, Ws), jnp.float32) * ((2.0 / fan_in_w) ** 0.5)
    W_co = jax.random.normal(k3, (Cout, Hs, Ws), jnp.float32) * ((2.0 / fan_in_w) ** 0.5)

    fwd = jax.jit(functools.partial(conv_lstm_cell_pallas,
                                    kernel_size=K, padding=pad,
                                    activation="tanh"))
    H_k, C_k = fwd(X, H_prev, C_prev, conv_w, conv_b, W_ci, W_cf, W_co)
    jax.block_until_ready((H_k, C_k))

    H_r, C_r = conv_lstm_cell_ref(X, H_prev, C_prev, conv_w, conv_b,
                                  W_ci, W_cf, W_co, padding=pad,
                                  activation="tanh")

    # bf16 MXU inputs / bf16 H output (f32 accumulate, f32 bias & state) ->
    # relaxed tolerance vs. the f32 reference.
    assert jnp.allclose(H_k.astype(jnp.float32), H_r, atol=4e-2, rtol=4e-2), "H mismatch"
    assert jnp.allclose(C_k, C_r, atol=4e-2, rtol=4e-2), "C mismatch"

    print("KERNEL_OK")
</pallas_src>

<mosaic_0001>
module attributes {stable_mosaic.version = 11 : i64} {
  func.func @_convlstm_kernel(%arg0: i32, %arg1: memref<1x18x18x36xbf16, #tpu.memory_space<vmem>>, %arg2: memref<1x256x32xf32, #tpu.memory_space<vmem>>, %arg3: memref<9x36x128xbf16, #tpu.memory_space<vmem>>, %arg4: memref<256x96xf32, #tpu.memory_space<vmem>>, %arg5: memref<1x128xf32, #tpu.memory_space<vmem>>, %arg6: memref<1x256x32xbf16, #tpu.memory_space<vmem>>, %arg7: memref<1x256x32xf32, #tpu.memory_space<vmem>>, %arg8: memref<256x128xf32, #tpu.memory_space<vmem>>) attributes {dimension_semantics = [#tpu.dimension_semantics<parallel>], iteration_bounds = array<i64: 2>, scalar_prefetch = 0 : i64, scratch_operands = 1 : i64, tpu.core_type = #tpu.core_type<tc>, window_params = [{transform_indices = @transform_0, window_bounds = array<i64: 1, 18, 18, 36>}, {transform_indices = @transform_1, window_bounds = array<i64: 1, 256, 32>}, {pipeline_mode = #tpu.pipeline_mode<synchronous>, transform_indices = @transform_2, window_bounds = array<i64: 9, 36, 128>}, {pipeline_mode = #tpu.pipeline_mode<synchronous>, transform_indices = @transform_3, window_bounds = array<i64: 256, 96>}, {pipeline_mode = #tpu.pipeline_mode<synchronous>, transform_indices = @transform_4, window_bounds = array<i64: 1, 128>}, {transform_indices = @transform_5, window_bounds = array<i64: 1, 256, 32>}, {transform_indices = @transform_6, window_bounds = array<i64: 1, 256, 32>}]} {
    %c0 = arith.constant 0 : index
    %c0_0 = arith.constant 0 : index
    %c0_1 = arith.constant 0 : index
    %c0_2 = arith.constant 0 : index
    %0 = vector.load %arg1[%c0, %c0_0, %c0_1, %c0_2] : memref<1x18x18x36xbf16, #tpu.memory_space<vmem>>, vector<1x16x16x36xbf16>
    %1 = vector.shape_cast %0 : vector<1x16x16x36xbf16> to vector<16x16x36xbf16>
    %2 = vector.shape_cast %1 : vector<16x16x36xbf16> to vector<256x36xbf16>
    %c0_3 = arith.constant 0 : index
    %c0_4 = arith.constant 0 : index
    %c0_5 = arith.constant 0 : index
    %3 = vector.load %arg3[%c0_3, %c0_4, %c0_5] : memref<9x36x128xbf16, #tpu.memory_space<vmem>>, vector<1x36x128xbf16>
    %4 = vector.shape_cast %3 : vector<1x36x128xbf16> to vector<36x128xbf16>
    %cst = arith.constant dense<0.000000e+00> : vector<256x128xf32>
    %5 = tpu.matmul %2, %4, %cst {dimension_numbers = #tpu.dot_dimension_numbers<[1], [0], [0], [1], [0, 0, 1, 1], [], []>} : vector<256x36xbf16>, vector<36x128xbf16>, vector<256x128xf32> -> vector<256x128xf32>
    %c0_6 = arith.constant 0 : index
    %c0_7 = arith.constant 0 : index
    %c1 = arith.constant 1 : index
    %c0_8 = arith.constant 0 : index
    %6 = vector.load %arg1[%c0_6, %c0_7, %c1, %c0_8] : memref<1x18x18x36xbf16, #tpu.memory_space<vmem>>, vector<1x16x16x36xbf16>
    %7 = vector.shape_cast %6 : vector<1x16x16x36xbf16> to vector<16x16x36xbf16>
    %8 = vector.shape_cast %7 : vector<16x16x36xbf16> to vector<256x36xbf16>
    %c1_9 = arith.constant 1 : index
    %c0_10 = arith.constant 0 : index
    %c0_11 = arith.constant 0 : index
    %9 = vector.load %arg3[%c1_9, %c0_10, %c0_11] : memref<9x36x128xbf16, #tpu.memory_space<vmem>>, vector<1x36x128xbf16>
    %10 = vector.shape_cast %9 : vector<1x36x128xbf16> to vector<36x128xbf16>
    %cst_12 = arith.constant dense<0.000000e+00> : vector<256x128xf32>
    %11 = tpu.matmul %8, %10, %cst_12 {dimension_numbers = #tpu.dot_dimension_numbers<[1], [0], [0], [1], [0, 0, 1, 1], [], []>} : vector<256x36xbf16>, vector<36x128xbf16>, vector<256x128xf32> -> vector<256x128xf32>
    %12 = arith.addf %5, %11 : vector<256x128xf32>
    %c0_13 = arith.constant 0 : index
    %c0_14 = arith.constant 0 : index
    %c2 = arith.constant 2 : index
    %c0_15 = arith.constant 0 : index
    %13 = vector.load %arg1[%c0_13, %c0_14, %c2, %c0_15] : memref<1x18x18x36xbf16, #tpu.memory_space<vmem>>, vector<1x16x16x36xbf16>
    %14 = vector.shape_cast %13 : vector<1x16x16x36xbf16> to vector<16x16x36xbf16>
    %15 = vector.shape_cast %14 : vector<16x16x36xbf16> to vector<256x36xbf16>
    %c2_16 = arith.constant 2 : index
    %c0_17 = arith.constant 0 : index
    %c0_18 = arith.constant 0 : index
    %16 = vector.load %arg3[%c2_16, %c0_17, %c0_18] : memref<9x36x128xbf16, #tpu.memory_space<vmem>>, vector<1x36x128xbf16>
    %17 = vector.shape_cast %16 : vector<1x36x128xbf16> to vector<36x128xbf16>
    %cst_19 = arith.constant dense<0.000000e+00> : vector<256x128xf32>
    %18 = tpu.matmul %15, %17, %cst_19 {dimension_numbers = #tpu.dot_dimension_numbers<[1], [0], [0], [1], [0, 0, 1, 1], [], []>} : vector<256x36xbf16>, vector<36x128xbf16>, vector<256x128xf32> -> vector<256x128xf32>
    %19 = arith.addf %12, %18 : vector<256x128xf32>
    %c0_20 = arith.constant 0 : index
    %c1_21 = arith.constant 1 : index
    %c0_22 = arith.constant 0 : index
    %c0_23 = arith.constant 0 : index
    %20 = vector.load %arg1[%c0_20, %c1_21, %c0_22, %c0_23] : memref<1x18x18x36xbf16, #tpu.memory_space<vmem>>, vector<1x16x16x36xbf16>
    %21 = vector.shape_cast %20 : vector<1x16x16x36xbf16> to vector<16x16x36xbf16>
    %22 = vector.shape_cast %21 : vector<16x16x36xbf16> to vector<256x36xbf16>
    %c3 = arith.constant 3 : index
    %c0_24 = arith.constant 0 : index
    %c0_25 = arith.constant 0 : index
    %23 = vector.load %arg3[%c3, %c0_24, %c0_25] : memref<9x36x128xbf16, #tpu.memory_space<vmem>>, vector<1x36x128xbf16>
    %24 = vector.shape_cast %23 : vector<1x36x128xbf16> to vector<36x128xbf16>
    %cst_26 = arith.constant dense<0.000000e+00> : vector<256x128xf32>
    %25 = tpu.matmul %22, %24, %cst_26 {dimension_numbers = #tpu.dot_dimension_numbers<[1], [0], [0], [1], [0, 0, 1, 1], [], []>} : vector<256x36xbf16>, vector<36x128xbf16>, vector<256x128xf32> -> vector<256x128xf32>
    %26 = arith.addf %19, %25 : vector<256x128xf32>
    %c0_27 = arith.constant 0 : index
    %c1_28 = arith.constant 1 : index
    %c1_29 = arith.constant 1 : index
    %c0_30 = arith.constant 0 : index
    %27 = vector.load %arg1[%c0_27, %c1_28, %c1_29, %c0_30] : memref<1x18x18x36xbf16, #tpu.memory_space<vmem>>, vector<1x16x16x36xbf16>
    %28 = vector.shape_cast %27 : vector<1x16x16x36xbf16> to vector<16x16x36xbf16>
    %29 = vector.shape_cast %28 : vector<16x16x36xbf16> to vector<256x36xbf16>
    %c4 = arith.constant 4 : index
    %c0_31 = arith.constant 0 : index
    %c0_32 = arith.constant 0 : index
    %30 = vector.load %arg3[%c4, %c0_31, %c0_32] : memref<9x36x128xbf16, #tpu.memory_space<vmem>>, vector<1x36x128xbf16>
    %31 = vector.shape_cast %30 : vector<1x36x128xbf16> to vector<36x128xbf16>
    %cst_33 = arith.constant dense<0.000000e+00> : vector<256x128xf32>
    %32 = tpu.matmul %29, %31, %cst_33 {dimension_numbers = #tpu.dot_dimension_numbers<[1], [0], [0], [1], [0, 0, 1, 1], [], []>} : vector<256x36xbf16>, vector<36x128xbf16>, vector<256x128xf32> -> vector<256x128xf32>
    %33 = arith.addf %26, %32 : vector<256x128xf32>
    %c0_34 = arith.constant 0 : index
    %c1_35 = arith.constant 1 : index
    %c2_36 = arith.constant 2 : index
    %c0_37 = arith.constant 0 : index
    %34 = vector.load %arg1[%c0_34, %c1_35, %c2_36, %c0_37] : memref<1x18x18x36xbf16, #tpu.memory_space<vmem>>, vector<1x16x16x36xbf16>
    %35 = vector.shape_cast %34 : vector<1x16x16x36xbf16> to vector<16x16x36xbf16>
    %36 = vector.shape_cast %35 : vector<16x16x36xbf16> to vector<256x36xbf16>
    %c5 = arith.constant 5 : index
    %c0_38 = arith.constant 0 : index
    %c0_39 = arith.constant 0 : index
    %37 = vector.load %arg3[%c5, %c0_38, %c0_39] : memref<9x36x128xbf16, #tpu.memory_space<vmem>>, vector<1x36x128xbf16>
    %38 = vector.shape_cast %37 : vector<1x36x128xbf16> to vector<36x128xbf16>
    %cst_40 = arith.constant dense<0.000000e+00> : vector<256x128xf32>
    %39 = tpu.matmul %36, %38, %cst_40 {dimension_numbers = #tpu.dot_dimension_numbers<[1], [0], [0], [1], [0, 0, 1, 1], [], []>} : vector<256x36xbf16>, vector<36x128xbf16>, vector<256x128xf32> -> vector<256x128xf32>
    %40 = arith.addf %33, %39 : vector<256x128xf32>
    %c0_41 = arith.constant 0 : index
    %c2_42 = arith.constant 2 : index
    %c0_43 = arith.constant 0 : index
    %c0_44 = arith.constant 0 : index
    %41 = vector.load %arg1[%c0_41, %c2_42, %c0_43, %c0_44] : memref<1x18x18x36xbf16, #tpu.memory_space<vmem>>, vector<1x16x16x36xbf16>
    %42 = vector.shape_cast %41 : vector<1x16x16x36xbf16> to vector<16x16x36xbf16>
    %43 = vector.shape_cast %42 : vector<16x16x36xbf16> to vector<256x36xbf16>
    %c6 = arith.constant 6 : index
    %c0_45 = arith.constant 0 : index
    %c0_46 = arith.constant 0 : index
    %44 = vector.load %arg3[%c6, %c0_45, %c0_46] : memref<9x36x128xbf16, #tpu.memory_space<vmem>>, vector<1x36x128xbf16>
    %45 = vector.shape_cast %44 : vector<1x36x128xbf16> to vector<36x128xbf16>
    %cst_47 = arith.constant dense<0.000000e+00> : vector<256x128xf32>
    %46 = tpu.matmul %43, %45, %cst_47 {dimension_numbers = #tpu.dot_dimension_numbers<[1], [0], [0], [1], [0, 0, 1, 1], [], []>} : vector<256x36xbf16>, vector<36x128xbf16>, vector<256x128xf32> -> vector<256x128xf32>
    %47 = arith.addf %40, %46 : vector<256x128xf32>
    %c0_48 = arith.constant 0 : index
    %c2_49 = arith.constant 2 : index
    %c1_50 = arith.constant 1 : index
    %c0_51 = arith.constant 0 : index
    %48 = vector.load %arg1[%c0_48, %c2_49, %c1_50, %c0_51] : memref<1x18x18x36xbf16, #tpu.memory_space<vmem>>, vector<1x16x16x36xbf16>
    %49 = vector.shape_cast %48 : vector<1x16x16x36xbf16> to vector<16x16x36xbf16>
    %50 = vector.shape_cast %49 : vector<16x16x36xbf16> to vector<256x36xbf16>
    %c7 = arith.constant 7 : index
    %c0_52 = arith.constant 0 : index
    %c0_53 = arith.constant 0 : index
    %51 = vector.load %arg3[%c7, %c0_52, %c0_53] : memref<9x36x128xbf16, #tpu.memory_space<vmem>>, vector<1x36x128xbf16>
    %52 = vector.shape_cast %51 : vector<1x36x128xbf16> to vector<36x128xbf16>
    %cst_54 = arith.constant dense<0.000000e+00> : vector<256x128xf32>
    %53 = tpu.matmul %50, %52, %cst_54 {dimension_numbers = #tpu.dot_dimension_numbers<[1], [0], [0], [1], [0, 0, 1, 1], [], []>} : vector<256x36xbf16>, vector<36x128xbf16>, vector<256x128xf32> -> vector<256x128xf32>
    %54 = arith.addf %47, %53 : vector<256x128xf32>
    %c0_55 = arith.constant 0 : index
    %c2_56 = arith.constant 2 : index
    %c2_57 = arith.constant 2 : index
    %c0_58 = arith.constant 0 : index
    %55 = vector.load %arg1[%c0_55, %c2_56, %c2_57, %c0_58] : memref<1x18x18x36xbf16, #tpu.memory_space<vmem>>, vector<1x16x16x36xbf16>
    %56 = vector.shape_cast %55 : vector<1x16x16x36xbf16> to vector<16x16x36xbf16>
    %57 = vector.shape_cast %56 : vector<16x16x36xbf16> to vector<256x36xbf16>
    %c8 = arith.constant 8 : index
    %c0_59 = arith.constant 0 : index
    %c0_60 = arith.constant 0 : index
    %58 = vector.load %arg3[%c8, %c0_59, %c0_60] : memref<9x36x128xbf16, #tpu.memory_space<vmem>>, vector<1x36x128xbf16>
    %59 = vector.shape_cast %58 : vector<1x36x128xbf16> to vector<36x128xbf16>
    %cst_61 = arith.constant dense<0.000000e+00> : vector<256x128xf32>
    %60 = tpu.matmul %57, %59, %cst_61 {dimension_numbers = #tpu.dot_dimension_numbers<[1], [0], [0], [1], [0, 0, 1, 1], [], []>} : vector<256x36xbf16>, vector<36x128xbf16>, vector<256x128xf32> -> vector<256x128xf32>
    %61 = arith.addf %54, %60 : vector<256x128xf32>
    %c0_62 = arith.constant 0 : index
    %c0_63 = arith.constant 0 : index
    %62 = vector.load %arg5[%c0_62, %c0_63] : memref<1x128xf32, #tpu.memory_space<vmem>>, vector<1x128xf32>
    %63 = vector.broadcast %62 : vector<1x128xf32> to vector<256x128xf32>
    %64 = arith.addf %61, %63 : vector<256x128xf32>
    %c0_64 = arith.constant 0 : index
    %c0_65 = arith.constant 0 : index
    %65 = vector.load %arg8[%c0_64, %c0_65] : memref<256x128xf32, #tpu.memory_space<vmem>>, vector<256x128xf32>
    tpu.vector_store %arg8[%c0_64, %c0_65], %64 {strides = array<i32>} : memref<256x128xf32, #tpu.memory_space<vmem>>, vector<256x128xf32>,
    %c0_66 = arith.constant 0 : index
    %c0_67 = arith.constant 0 : index
    %66 = vector.load %arg8[%c0_66, %c0_67] : memref<256x128xf32, #tpu.memory_space<vmem>>, vector<64x128xf32>
    %c0_68 = arith.constant 0 : index
    %c0_69 = arith.constant 0 : index
    %c0_70 = arith.constant 0 : index
    %67 = vector.load %arg2[%c0_68, %c0_69, %c0_70] : memref<1x256x32xf32, #tpu.memory_space<vmem>>, vector<1x64x32xf32>
    %68 = vector.shape_cast %67 : vector<1x64x32xf32> to vector<64x32xf32>
    %c0_71 = arith.constant 0 : index
    %c0_72 = arith.constant 0 : index
    %69 = vector.load %arg4[%c0_71, %c0_72] : memref<256x96xf32, #tpu.memory_space<vmem>>, vector<64x96xf32>
    %70 = vector.extract_strided_slice %66 {offsets = [0, 0], sizes = [64, 32], strides = [1, 1]} : vector<64x128xf32> to vector<64x32xf32>
    %71 = vector.extract_strided_slice %69 {offsets = [0, 0], sizes = [64, 32], strides = [1, 1]} : vector<64x96xf32> to vector<64x32xf32>
    %72 = arith.mulf %71, %68 : vector<64x32xf32>
    %73 = arith.addf %70, %72 : vector<64x32xf32>
    %74 = arith.negf %73 : vector<64x32xf32>
    %75 = math.exp %74 : vector<64x32xf32>
    %cst_73 = arith.constant 1.000000e+00 : f32
    %76 = vector.broadcast %cst_73 : f32 to vector<64x32xf32>
    %77 = arith.addf %76, %75 : vector<64x32xf32>
    %78 = arith.divf %76, %77 : vector<64x32xf32>
    %79 = vector.extract_strided_slice %66 {offsets = [0, 32], sizes = [64, 32], strides = [1, 1]} : vector<64x128xf32> to vector<64x32xf32>
    %80 = vector.extract_strided_slice %69 {offsets = [0, 32], sizes = [64, 32], strides = [1, 1]} : vector<64x96xf32> to vector<64x32xf32>
    %81 = arith.mulf %80, %68 : vector<64x32xf32>
    %82 = arith.addf %79, %81 : vector<64x32xf32>
    %83 = arith.negf %82 : vector<64x32xf32>
    %84 = math.exp %83 : vector<64x32xf32>
    %cst_74 = arith.constant 1.000000e+00 : f32
    %85 = vector.broadcast %cst_74 : f32 to vector<64x32xf32>
    %86 = arith.addf %85, %84 : vector<64x32xf32>
    %87 = arith.divf %85, %86 : vector<64x32xf32>
    %88 = arith.mulf %87, %68 : vector<64x32xf32>
    %89 = vector.extract_strided_slice %66 {offsets = [0, 64], sizes = [64, 32], strides = [1, 1]} : vector<64x128xf32> to vector<64x32xf32>
    %90 = math.tanh %89 : vector<64x32xf32>
    %91 = arith.mulf %78, %90 : vector<64x32xf32>
    %92 = arith.addf %88, %91 : vector<64x32xf32>
    %93 = vector.extract_strided_slice %66 {offsets = [0, 96], sizes = [64, 32], strides = [1, 1]} : vector<64x128xf32> to vector<64x32xf32>
    %94 = vector.extract_strided_slice %69 {offsets = [0, 64], sizes = [64, 32], strides = [1, 1]} : vector<64x96xf32> to vector<64x32xf32>
    %95 = arith.mulf %94, %92 : vector<64x32xf32>
    %96 = arith.addf %93, %95 : vector<64x32xf32>
    %97 = arith.negf %96 : vector<64x32xf32>
    %98 = math.exp %97 : vector<64x32xf32>
    %cst_75 = arith.constant 1.000000e+00 : f32
    %99 = vector.broadcast %cst_75 : f32 to vector<64x32xf32>
    %100 = arith.addf %99, %98 : vector<64x32xf32>
    %101 = arith.divf %99, %100 : vector<64x32xf32>
    %102 = math.tanh %92 : vector<64x32xf32>
    %103 = arith.mulf %101, %102 : vector<64x32xf32>
    %104 = arith.truncf %103 : vector<64x32xf32> to vector<64x32xbf16>
    %c0_76 = arith.constant 0 : index
    %c0_77 = arith.constant 0 : index
    %c0_78 = arith.constant 0 : index
    %105 = vector.load %arg6[%c0_76, %c0_77, %c0_78] : memref<1x256x32xbf16, #tpu.memory_space<vmem>>, vector<1x64x32xbf16>
    %106 = vector.shape_cast %105 : vector<1x64x32xbf16> to vector<64x32xbf16>
    %107 = vector.shape_cast %104 : vector<64x32xbf16> to vector<1x64x32xbf16>
    tpu.vector_store %arg6[%c0_76, %c0_77, %c0_78], %107 {strides = array<i32>} : memref<1x256x32xbf16, #tpu.memory_space<vmem>>, vector<1x64x32xbf16>,
    %c0_79 = arith.constant 0 : index
    %c0_80 = arith.constant 0 : index
    %c0_81 = arith.constant 0 : index
    %108 = vector.load %arg7[%c0_79, %c0_80, %c0_81] : memref<1x256x32xf32, #tpu.memory_space<vmem>>, vector<1x64x32xf32>
    %109 = vector.shape_cast %108 : vector<1x64x32xf32> to vector<64x32xf32>
    %110 = vector.shape_cast %92 : vector<64x32xf32> to vector<1x64x32xf32>
    tpu.vector_store %arg7[%c0_79, %c0_80, %c0_81], %110 {strides = array<i32>} : memref<1x256x32xf32, #tpu.memory_space<vmem>>, vector<1x64x32xf32>,
    %c64 = arith.constant 64 : index
    %c0_82 = arith.constant 0 : index
    %111 = vector.load %arg8[%c64, %c0_82] : memref<256x128xf32, #tpu.memory_space<vmem>>, vector<64x128xf32>
    %c0_83 = arith.constant 0 : index
    %c64_84 = arith.constant 64 : index
    %c0_85 = arith.constant 0 : index
    %112 = vector.load %arg2[%c0_83, %c64_84, %c0_85] : memref<1x256x32xf32, #tpu.memory_space<vmem>>, vector<1x64x32xf32>
    %113 = vector.shape_cast %112 : vector<1x64x32xf32> to vector<64x32xf32>
    %c64_86 = arith.constant 64 : index
    %c0_87 = arith.constant 0 : index
    %114 = vector.load %arg4[%c64_86, %c0_87] : memref<256x96xf32, #tpu.memory_space<vmem>>, vector<64x96xf32>
    %115 = vector.extract_strided_slice %111 {offsets = [0, 0], sizes = [64, 32], strides = [1, 1]} : vector<64x128xf32> to vector<64x32xf32>
    %116 = vector.extract_strided_slice %114 {offsets = [0, 0], sizes = [64, 32], strides = [1, 1]} : vector<64x96xf32> to vector<64x32xf32>
    %117 = arith.mulf %116, %113 : vector<64x32xf32>
    %118 = arith.addf %115, %117 : vector<64x32xf32>
    %119 = arith.negf %118 : vector<64x32xf32>
    %120 = math.exp %119 : vector<64x32xf32>
    %cst_88 = arith.constant 1.000000e+00 : f32
    %121 = vector.broadcast %cst_88 : f32 to vector<64x32xf32>
    %122 = arith.addf %121, %120 : vector<64x32xf32>
    %123 = arith.divf %121, %122 : vector<64x32xf32>
    %124 = vector.extract_strided_slice %111 {offsets = [0, 32], sizes = [64, 32], strides = [1, 1]} : vector<64x128xf32> to vector<64x32xf32>
    %125 = vector.extract_strided_slice %114 {offsets = [0, 32], sizes = [64, 32], strides = [1, 1]} : vector<64x96xf32> to vector<64x32xf32>
    %126 = arith.mulf %125, %113 : vector<64x32xf32>
    %127 = arith.addf %124, %126 : vector<64x32xf32>
    %128 = arith.negf %127 : vector<64x32xf32>
    %129 = math.exp %128 : vector<64x32xf32>
    %cst_89 = arith.constant 1.000000e+00 : f32
    %130 = vector.broadcast %cst_89 : f32 to vector<64x32xf32>
    %131 = arith.addf %130, %129 : vector<64x32xf32>
    %132 = arith.divf %130, %131 : vector<64x32xf32>
    %133 = arith.mulf %132, %113 : vector<64x32xf32>
    %134 = vector.extract_strided_slice %111 {offsets = [0, 64], sizes = [64, 32], strides = [1, 1]} : vector<64x128xf32> to vector<64x32xf32>
    %135 = math.tanh %134 : vector<64x32xf32>
    %136 = arith.mulf %123, %135 : vector<64x32xf32>
    %137 = arith.addf %133, %136 : vector<64x32xf32>
    %138 = vector.extract_strided_slice %111 {offsets = [0, 96], sizes = [64, 32], strides = [1, 1]} : vector<64x128xf32> to vector<64x32xf32>
    %139 = vector.extract_strided_slice %114 {offsets = [0, 64], sizes = [64, 32], strides = [1, 1]} : vector<64x96xf32> to vector<64x32xf32>
    %140 = arith.mulf %139, %137 : vector<64x32xf32>
    %141 = arith.addf %138, %140 : vector<64x32xf32>
    %142 = arith.negf %141 : vector<64x32xf32>
    %143 = math.exp %142 : vector<64x32xf32>
    %cst_90 = arith.constant 1.000000e+00 : f32
    %144 = vector.broadcast %cst_90 : f32 to vector<64x32xf32>
    %145 = arith.addf %144, %143 : vector<64x32xf32>
    %146 = arith.divf %144, %145 : vector<64x32xf32>
    %147 = math.tanh %137 : vector<64x32xf32>
    %148 = arith.mulf %146, %147 : vector<64x32xf32>
    %149 = arith.truncf %148 : vector<64x32xf32> to vector<64x32xbf16>
    %c0_91 = arith.constant 0 : index
    %c64_92 = arith.constant 64 : index
    %c0_93 = arith.constant 0 : index
    %150 = vector.load %arg6[%c0_91, %c64_92, %c0_93] : memref<1x256x32xbf16, #tpu.memory_space<vmem>>, vector<1x64x32xbf16>
    %151 = vector.shape_cast %150 : vector<1x64x32xbf16> to vector<64x32xbf16>
    %152 = vector.shape_cast %149 : vector<64x32xbf16> to vector<1x64x32xbf16>
    tpu.vector_store %arg6[%c0_91, %c64_92, %c0_93], %152 {strides = array<i32>} : memref<1x256x32xbf16, #tpu.memory_space<vmem>>, vector<1x64x32xbf16>,
    %c0_94 = arith.constant 0 : index
    %c64_95 = arith.constant 64 : index
    %c0_96 = arith.constant 0 : index
    %153 = vector.load %arg7[%c0_94, %c64_95, %c0_96] : memref<1x256x32xf32, #tpu.memory_space<vmem>>, vector<1x64x32xf32>
    %154 = vector.shape_cast %153 : vector<1x64x32xf32> to vector<64x32xf32>
    %155 = vector.shape_cast %137 : vector<64x32xf32> to vector<1x64x32xf32>
    tpu.vector_store %arg7[%c0_94, %c64_95, %c0_96], %155 {strides = array<i32>} : memref<1x256x32xf32, #tpu.memory_space<vmem>>, vector<1x64x32xf32>,
    %c128 = arith.constant 128 : index
    %c0_97 = arith.constant 0 : index
    %156 = vector.load %arg8[%c128, %c0_97] : memref<256x128xf32, #tpu.memory_space<vmem>>, vector<64x128xf32>
    %c0_98 = arith.constant 0 : index
    %c128_99 = arith.constant 128 : index
    %c0_100 = arith.constant 0 : index
    %157 = vector.load %arg2[%c0_98, %c128_99, %c0_100] : memref<1x256x32xf32, #tpu.memory_space<vmem>>, vector<1x64x32xf32>
    %158 = vector.shape_cast %157 : vector<1x64x32xf32> to vector<64x32xf32>
    %c128_101 = arith.constant 128 : index
    %c0_102 = arith.constant 0 : index
    %159 = vector.load %arg4[%c128_101, %c0_102] : memref<256x96xf32, #tpu.memory_space<vmem>>, vector<64x96xf32>
    %160 = vector.extract_strided_slice %156 {offsets = [0, 0], sizes = [64, 32], strides = [1, 1]} : vector<64x128xf32> to vector<64x32xf32>
    %161 = vector.extract_strided_slice %159 {offsets = [0, 0], sizes = [64, 32], strides = [1, 1]} : vector<64x96xf32> to vector<64x32xf32>
    %162 = arith.mulf %161, %158 : vector<64x32xf32>
    %163 = arith.addf %160, %162 : vector<64x32xf32>
    %164 = arith.negf %163 : vector<64x32xf32>
    %165 = math.exp %164 : vector<64x32xf32>
    %cst_103 = arith.constant 1.000000e+00 : f32
    %166 = vector.broadcast %cst_103 : f32 to vector<64x32xf32>
    %167 = arith.addf %166, %165 : vector<64x32xf32>
    %168 = arith.divf %166, %167 : vector<64x32xf32>
    %169 = vector.extract_strided_slice %156 {offsets = [0, 32], sizes = [64, 32], strides = [1, 1]} : vector<64x128xf32> to vector<64x32xf32>
    %170 = vector.extract_strided_slice %159 {offsets = [0, 32], sizes = [64, 32], strides = [1, 1]} : vector<64x96xf32> to vector<64x32xf32>
    %171 = arith.mulf %170, %158 : vector<64x32xf32>
    %172 = arith.addf %169, %171 : vector<64x32xf32>
    %173 = arith.negf %172 : vector<64x32xf32>
    %174 = math.exp %173 : vector<64x32xf32>
    %cst_104 = arith.constant 1.000000e+00 : f32
    %175 = vector.broadcast %cst_104 : f32 to vector<64x32xf32>
    %176 = arith.addf %175, %174 : vector<64x32xf32>
    %177 = arith.divf %175, %176 : vector<64x32xf32>
    %178 = arith.mulf %177, %158 : vector<64x32xf32>
    %179 = vector.extract_strided_slice %156 {offsets = [0, 64], sizes = [64, 32], strides = [1, 1]} : vector<64x128xf32> to vector<64x32xf32>
    %180 = math.tanh %179 : vector<64x32xf32>
    %181 = arith.mulf %168, %180 : vector<64x32xf32>
    %182 = arith.addf %178, %181 : vector<64x32xf32>
    %183 = vector.extract_strided_slice %156 {offsets = [0, 96], sizes = [64, 32], strides = [1, 1]} : vector<64x128xf32> to vector<64x32xf32>
    %184 = vector.extract_strided_slice %159 {offsets = [0, 64], sizes = [64, 32], strides = [1, 1]} : vector<64x96xf32> to vector<64x32xf32>
    %185 = arith.mulf %184, %182 : vector<64x32xf32>
    %186 = arith.addf %183, %185 : vector<64x32xf32>
    %187 = arith.negf %186 : vector<64x32xf32>
    %188 = math.exp %187 : vector<64x32xf32>
    %cst_105 = arith.constant 1.000000e+00 : f32
    %189 = vector.broadcast %cst_105 : f32 to vector<64x32xf32>
    %190 = arith.addf %189, %188 : vector<64x32xf32>
    %191 = arith.divf %189, %190 : vector<64x32xf32>
    %192 = math.tanh %182 : vector<64x32xf32>
    %193 = arith.mulf %191, %192 : vector<64x32xf32>
    %194 = arith.truncf %193 : vector<64x32xf32> to vector<64x32xbf16>
    %c0_106 = arith.constant 0 : index
    %c128_107 = arith.constant 128 : index
    %c0_108 = arith.constant 0 : index
    %195 = vector.load %arg6[%c0_106, %c128_107, %c0_108] : memref<1x256x32xbf16, #tpu.memory_space<vmem>>, vector<1x64x32xbf16>
    %196 = vector.shape_cast %195 : vector<1x64x32xbf16> to vector<64x32xbf16>
    %197 = vector.shape_cast %194 : vector<64x32xbf16> to vector<1x64x32xbf16>
    tpu.vector_store %arg6[%c0_106, %c128_107, %c0_108], %197 {strides = array<i32>} : memref<1x256x32xbf16, #tpu.memory_space<vmem>>, vector<1x64x32xbf16>,
    %c0_109 = arith.constant 0 : index
    %c128_110 = arith.constant 128 : index
    %c0_111 = arith.constant 0 : index
    %198 = vector.load %arg7[%c0_109, %c128_110, %c0_111] : memref<1x256x32xf32, #tpu.memory_space<vmem>>, vector<1x64x32xf32>
    %199 = vector.shape_cast %198 : vector<1x64x32xf32> to vector<64x32xf32>
    %200 = vector.shape_cast %182 : vector<64x32xf32> to vector<1x64x32xf32>
    tpu.vector_store %arg7[%c0_109, %c128_110, %c0_111], %200 {strides = array<i32>} : memref<1x256x32xf32, #tpu.memory_space<vmem>>, vector<1x64x32xf32>,
    %c192 = arith.constant 192 : index
    %c0_112 = arith.constant 0 : index
    %201 = vector.load %arg8[%c192, %c0_112] : memref<256x128xf32, #tpu.memory_space<vmem>>, vector<64x128xf32>
    %c0_113 = arith.constant 0 : index
    %c192_114 = arith.constant 192 : index
    %c0_115 = arith.constant 0 : index
    %202 = vector.load %arg2[%c0_113, %c192_114, %c0_115] : memref<1x256x32xf32, #tpu.memory_space<vmem>>, vector<1x64x32xf32>
    %203 = vector.shape_cast %202 : vector<1x64x32xf32> to vector<64x32xf32>
    %c192_116 = arith.constant 192 : index
    %c0_117 = arith.constant 0 : index
    %204 = vector.load %arg4[%c192_116, %c0_117] : memref<256x96xf32, #tpu.memory_space<vmem>>, vector<64x96xf32>
    %205 = vector.extract_strided_slice %201 {offsets = [0, 0], sizes = [64, 32], strides = [1, 1]} : vector<64x128xf32> to vector<64x32xf32>
    %206 = vector.extract_strided_slice %204 {offsets = [0, 0], sizes = [64, 32], strides = [1, 1]} : vector<64x96xf32> to vector<64x32xf32>
    %207 = arith.mulf %206, %203 : vector<64x32xf32>
    %208 = arith.addf %205, %207 : vector<64x32xf32>
    %209 = arith.negf %208 : vector<64x32xf32>
    %210 = math.exp %209 : vector<64x32xf32>
    %cst_118 = arith.constant 1.000000e+00 : f32
    %211 = vector.broadcast %cst_118 : f32 to vector<64x32xf32>
    %212 = arith.addf %211, %210 : vector<64x32xf32>
    %213 = arith.divf %211, %212 : vector<64x32xf32>
    %214 = vector.extract_strided_slice %201 {offsets = [0, 32], sizes = [64, 32], strides = [1, 1]} : vector<64x128xf32> to vector<64x32xf32>
    %215 = vector.extract_strided_slice %204 {offsets = [0, 32], sizes = [64, 32], strides = [1, 1]} : vector<64x96xf32> to vector<64x32xf32>
    %216 = arith.mulf %215, %203 : vector<64x32xf32>
    %217 = arith.addf %214, %216 : vector<64x32xf32>
    %218 = arith.negf %217 : vector<64x32xf32>
    %219 = math.exp %218 : vector<64x32xf32>
    %cst_119 = arith.constant 1.000000e+00 : f32
    %220 = vector.broadcast %cst_119 : f32 to vector<64x32xf32>
    %221 = arith.addf %220, %219 : vector<64x32xf32>
    %222 = arith.divf %220, %221 : vector<64x32xf32>
    %223 = arith.mulf %222, %203 : vector<64x32xf32>
    %224 = vector.extract_strided_slice %201 {offsets = [0, 64], sizes = [64, 32], strides = [1, 1]} : vector<64x128xf32> to vector<64x32xf32>
    %225 = math.tanh %224 : vector<64x32xf32>
    %226 = arith.mulf %213, %225 : vector<64x32xf32>
    %227 = arith.addf %223, %226 : vector<64x32xf32>
    %228 = vector.extract_strided_slice %201 {offsets = [0, 96], sizes = [64, 32], strides = [1, 1]} : vector<64x128xf32> to vector<64x32xf32>
    %229 = vector.extract_strided_slice %204 {offsets = [0, 64], sizes = [64, 32], strides = [1, 1]} : vector<64x96xf32> to vector<64x32xf32>
    %230 = arith.mulf %229, %227 : vector<64x32xf32>
    %231 = arith.addf %228, %230 : vector<64x32xf32>
    %232 = arith.negf %231 : vector<64x32xf32>
    %233 = math.exp %232 : vector<64x32xf32>
    %cst_120 = arith.constant 1.000000e+00 : f32
    %234 = vector.broadcast %cst_120 : f32 to vector<64x32xf32>
    %235 = arith.addf %234, %233 : vector<64x32xf32>
    %236 = arith.divf %234, %235 : vector<64x32xf32>
    %237 = math.tanh %227 : vector<64x32xf32>
    %238 = arith.mulf %236, %237 : vector<64x32xf32>
    %239 = arith.truncf %238 : vector<64x32xf32> to vector<64x32xbf16>
    %c0_121 = arith.constant 0 : index
    %c192_122 = arith.constant 192 : index
    %c0_123 = arith.constant 0 : index
    %240 = vector.load %arg6[%c0_121, %c192_122, %c0_123] : memref<1x256x32xbf16, #tpu.memory_space<vmem>>, vector<1x64x32xbf16>
    %241 = vector.shape_cast %240 : vector<1x64x32xbf16> to vector<64x32xbf16>
    %242 = vector.shape_cast %239 : vector<64x32xbf16> to vector<1x64x32xbf16>
    tpu.vector_store %arg6[%c0_121, %c192_122, %c0_123], %242 {strides = array<i32>} : memref<1x256x32xbf16, #tpu.memory_space<vmem>>, vector<1x64x32xbf16>,
    %c0_124 = arith.constant 0 : index
    %c192_125 = arith.constant 192 : index
    %c0_126 = arith.constant 0 : index
    %243 = vector.load %arg7[%c0_124, %c192_125, %c0_126] : memref<1x256x32xf32, #tpu.memory_space<vmem>>, vector<1x64x32xf32>
    %244 = vector.shape_cast %243 : vector<1x64x32xf32> to vector<64x32xf32>
    %245 = vector.shape_cast %227 : vector<64x32xf32> to vector<1x64x32xf32>
    tpu.vector_store %arg7[%c0_124, %c192_125, %c0_126], %245 {strides = array<i32>} : memref<1x256x32xf32, #tpu.memory_space<vmem>>, vector<1x64x32xf32>,
    return
  }
  func.func @transform_0(%arg0: i32) -> (i32, i32, i32, i32) {
    %c0_i32 = arith.constant 0 : i32
    %c0_i32_0 = arith.constant 0 : i32
    %c0_i32_1 = arith.constant 0 : i32
    %c0_i32_2 = arith.constant 0 : i32
    return %arg0, %c0_i32, %c0_i32_0, %c0_i32_1 : i32, i32, i32, i32
  }
  func.func @transform_1(%arg0: i32) -> (i32, i32, i32) {
    %c0_i32 = arith.constant 0 : i32
    %c0_i32_0 = arith.constant 0 : i32
    %c0_i32_1 = arith.constant 0 : i32
    return %arg0, %c0_i32, %c0_i32_0 : i32, i32, i32
  }
  func.func @transform_2(%arg0: i32) -> (i32, i32, i32) {
    %c0_i32 = arith.constant 0 : i32
    %c0_i32_0 = arith.constant 0 : i32
    %c0_i32_1 = arith.constant 0 : i32
    %c0_i32_2 = arith.constant 0 : i32
    return %c0_i32, %c0_i32_0, %c0_i32_1 : i32, i32, i32
  }
  func.func @transform_3(%arg0: i32) -> (i32, i32) {
    %c0_i32 = arith.constant 0 : i32
    %c0_i32_0 = arith.constant 0 : i32
    %c0_i32_1 = arith.constant 0 : i32
    return %c0_i32, %c0_i32_0 : i32, i32
  }
  func.func @transform_4(%arg0: i32) -> (i32, i32) {
    %c0_i32 = arith.constant 0 : i32
    %c0_i32_0 = arith.constant 0 : i32
    %c0_i32_1 = arith.constant 0 : i32
    return %c0_i32, %c0_i32_0 : i32, i32
  }
  func.func @transform_5(%arg0: i32) -> (i32, i32, i32) {
    %c0_i32 = arith.constant 0 : i32
    %c0_i32_0 = arith.constant 0 : i32
    %c0_i32_1 = arith.constant 0 : i32
    return %arg0, %c0_i32, %c0_i32_0 : i32, i32, i32
  }
  func.func @transform_6(%arg0: i32) -> (i32, i32, i32) {
    %c0_i32 = arith.constant 0 : i32
    %c0_i32_0 = arith.constant 0 : i32
    %c0_i32_1 = arith.constant 0 : i32
    return %arg0, %c0_i32, %c0_i32_0 : i32, i32, i32
  }
}

</mosaic_0001>

<bundles_post_ra>
// kernel: conv_lstm_cell_pallas.1
= control target key start
LH: loop header
LB: loop body
LE: loop exit
PB: predicated region body
PF: predicated region fallthrough
CT: control target
= control target key end

     0   :  { %12 = vsyncpa [#allocation4], 0  ;;  %s13280_s0 = inlined_call_operand.vmem [shape: bf16[2,18,18,36], index: 0, kind: input, shape index: {}]   ;;  %s13281_s1 = inlined_call_operand.vmem [shape: f32[2,256,32], index: 1, kind: input, shape index: {}]   ;;  %s13282_s2 = inlined_call_operand.vmem [shape: bf16[9,36,128], index: 2, kind: input, shape index: {}]   ;;  %s13283_s3 = inlined_call_operand.vmem [shape: f32[256,96], index: 3, kind: input, shape index: {}]   ;;  %s13284_s4 = inlined_call_operand.vmem [shape: f32[1,128], index: 4, kind: input, shape index: {}]   ;;  %s13285_s5 = inlined_call_operand.hbm [shape: bf16[2,256,32], index: 5, kind: output, shape index: {0}]   ;;  %s13286_s6 = inlined_call_operand.hbm [shape: f32[2,256,32], index: 6, kind: output, shape index: {1}]  }
   0x1   :  { %14 = vsyncpa [#allocation4 + $0x1], 0 }
   0x2   :  { %15 = vsyncpa [#allocation6], 0 }
   0x3   :  { %17 = vsyncpa [#allocation6 + $0x1], 0  ;;  %s9868_s21 = smov 0   ;;  %s9870_s22 = smov 0  }
   0x4   :  { %s9872_s23 = smov 0   ;;  %s9874_s24 = smov 0  }
   0x5 LB: > { %s9889_s25 = sadd.s32 4294967295, %s9823_s24   ;;  %s7402_s26 = sadd.s32 4294967294, %s9823_s24   ;;  %s9823_s24 = sphi %s9874_s24, %s13561_s24   ;;  %s9819_s23 = sphi %s9872_s23, %s13560_s23   ;;  %s9815_s22 = sphi %s9870_s22, %s13559_s22   ;;  %s9811_s21 = sphi %s9868_s21, %s13558_s21  }
   0x6   : > { %s9893_s27 = sadd.s32 1, %s9823_s24   ;;  %s145_s28 = sadd.s32 1, %s9819_s23 }
   0x7   : > { %s142_s29 = ssub.s32 %s9823_s24, %s9893_s27  ;;  %p155_p0 = scmp.ne.s32.totalorder %s9819_s23, %s9815_s22 }
   0x8   : > { %p143_p1 = scmp.eq.s32.totalorder %s142_s29, 0  ;;  %p156_p2 = scmp.eq.s32.totalorder %s9889_s25, 1 }
   0x9   : > { %p161_p3 = scmp.ne.s32.totalorder %s9815_s22, %s9811_s21  ;;  %p162_p4 = scmp.eq.s32.totalorder %s7402_s26, 1 }
   0xa   : > { %s9904_s30 = scalar_select %p143_p1, %s9819_s23, %s145_s28  }
   0xb   : > { %p9906_p5 = por %p156_p2, %p155_p0  ;;  %p9910_p6 = por %p162_p4, %p161_p3 }
   0xc   : > { %p7405_p7 = scmp.ge.s32.totalorder %s9823_s24, 1  ;;  %p231_p8 = scmp.lt.s32.totalorder %s9823_s24, 3 }
   0xe   : > { %p232_p9 = pnand %p7405_p7, %p231_p8 }
  0x10   : > { %235 = sbr.rel (%p232_p9) target bundleno = 1345 (0x541), region = 40 }
  0x17   : > { %v9014_v0 = vld [vmem:[%s13282_s2 + $0x50] sm:$0xff]   ;;  %p271_p10 = scmp.lt.s32.totalorder %s9889_s25, 1  ;;  %v9016_v2 = vld [vmem:[%s13282_s2 + $0x58] sm:$0xff]   ;;  %vm840_vm0 = vcmask 1041408   ;;  %vm335_vm1 = vsmask.f32 3328 }
  0x18   : > { %v9015_v1 = vld [vmem:[%s13282_s2 + $0x14] sm:$0xff]   ;;  %8501 = vmatprep.subr.bf16.mxu0 %v9014_v0  ;;  %v9017_v3 = vld [vmem:[%s13282_s2 + $0x1c] sm:$0xff]   ;;  %v9019_v5 = vld [vmem:[%s13282_s2 + $0x24] ss:$0 sps:$4 sm:$0x33]   ;;  %vm791_vm4 = vcmask 293888  }
  0x19   : > { %8349 = vmatprep.subr.bf16.mxu1 %v9015_v1  ;;  %8502 = vmatpush3.bf16.msra.mxu0 %v9014_v0  ;;  %s9930_s17 = scalar_select %p271_p10, %s9889_s25, 1  ;;  %v9018_v4 = vld [vmem:[%s13282_s2 + $0x60] ss:$0 sps:$4 sm:$0x33]   ;;  %vm336_vm2 = vsmask.f32 7440 }
  0x1a   : > { %8350 = vmatpush3.bf16.msra.mxu1 %v9015_v1  ;;  %8503 = vmatprep.subr.bf16.mxu0 %v9016_v2  ;;  %v9942_v6 = vld [vmem:[%s13282_s2 + $0x64] sm:$0xff]   ;;  %v9945_v7 = vsel %vm840_vm0, %v9018_v4, 0  ;;  %v842_v8 = vsel %vm840_vm0, %v9019_v5, 0  ;;  %vm9973_vm3 = vmor %vm335_vm1, %vm336_vm2  ;;  %vm1360_vm5 = vcmask 1042432   ;;  %vm1361_vm6 = vcmask 1046532   ;;  %s12630_s19 = sand.u32 1, %s9815_s22  }
  0x1b   : > { %8351 = vmatprep.subr.bf16.mxu1 %v9017_v3  ;;  %s8963_s28 = smul.u32 216, %s9930_s17  ;;  %13377 = vst [vmem:[#allocation9_spill] sm:$0xff] %v9945_v7  ;;  %v9982_v46 = vld [vmem:[%s13282_s2] sm:$0xff]   ;;  %vm10217_vm7 = vmor %vm1360_vm5, %vm1361_vm6  ;;  %s8143_s11 = sshll.u32 %s9930_s17, 8  ;;  %vm5620_vm8 = vcmask 261120   ;;  %vm5587_vm9 = vcmask 257024  }
  0x1c   : > { %s11095_s15 = scalar_lea.vmem %s13281_s1, %s8143_s11  ;;  %s9825_s17 = smov 32  }
  0x1d   : > { %8504 = vmatpush3.bf16.msra.mxu0 %v9016_v2  ;;  %s9951_s12 = scalar_lea.vmem %s13280_s0, %s8963_s28  ;;  %s9826_s11 = smov 64  }
  0x1e   : > { %8352 = vmatpush3.bf16.msra.mxu1 %v9017_v3  ;;  %8957 = vmatprep.subr.msk.bf16.mxu0 %vm840_vm0, %v9018_v4  ;;  %v282_v9 = vld [vmem:[%s9951_s12] sm:$0xf]  ;;  %v283_v10 = vld [vmem:[%s9951_s12 + $0x4] sm:$0xf]  ;;  %v319_v11 = vld [vmem:[%s9951_s12 + $0x8] sm:$0x1] }
  0x1f   : > { %8953 = vmatprep.subr.msk.bf16.mxu1 %vm840_vm0, %v9019_v5  ;;  %v339_v12 = vshrl.u32 %v282_v9, 16  ;;  %v342_v13 = vshll.u32 %v282_v9, 16  ;;  %v348_v14 = vshll.u32 %v283_v10, 16  ;;  %v352_v15 = vshrl.u32 %v283_v10, 16  ;;  %v7614_v16 = vld [vmem:[%s9951_s12 + $0xc] sm:$0xf] }
  0x20   : > { %v358_v17 = vshll.u32 %v319_v11, 16  ;;  %v9960_v18 = vld [vmem:[%s9951_s12 + $0x10] sm:$0xf]  ;;  %v9963_v19 = vld [vmem:[%s9951_s12 + $0x14] sm:$0x1]  ;;  %v2215_v25 = vshrl.u32 %v7614_v16, 16 }
  0x21   : > { %8506 = vmatpush3.bf16.msra.mxu0 %v9945_v7  ;;  %v341_v20 = vrot.slane %v339_v12, 4  ;;  %v344_v21 = vrot.slane %v342_v13, 5  ;;  %v350_v22 = vrot.slane %v348_v14, 5  ;;  %v354_v23 = vrot.slane %v352_v15, 4  ;;  %v284_v32 = vld [vmem:[%s9951_s12 + $0xc] sm:$0xf] }
  0x22   : > { %8354 = vmatpush3.bf16.msra.mxu1 %v842_v8  ;;  %v360_v24 = vrot.slane %v358_v17, 5  ;;  %v2218_v26 = vshll.u32 %v7614_v16, 16  ;;  %v2224_v27 = vshll.u32 %v9960_v18, 16  ;;  %8539 = vmatprep.subr.bf16.mxu0 %v9942_v6  ;;  %v2228_v30 = vshrl.u32 %v9960_v18, 16  ;;  %v285_v37 = vld [vmem:[%s9951_s12 + $0x10] sm:$0xf] }
  0x23   : > { %v345_v28 = vor.u32 %v344_v21, %v341_v20  ;;  %v355_v29 = vor.u32 %v354_v23, %v350_v22  ;;  %v2234_v31 = vshll.u32 %v9963_v19, 16  ;;  %v2217_v34 = vrot.slane %v2215_v25, 4  ;;  %v320_v43 = vld [vmem:[%s9951_s12 + $0x14] sm:$0x1]  ;;  %v7617_v55 = vld [vmem:[%s9951_s12 + $0x18] sm:$0xf]  ;;  %8387 = vmatprep.subr.bf16.mxu1 %v9982_v46 }
  0x24   : > { %v2220_v35 = vrot.slane %v2218_v26, 5  ;;  %v2226_v36 = vrot.slane %v2224_v27, 5  ;;  %v2230_v40 = vrot.slane %v2228_v30, 4  ;;  %v363_v44 = vshrl.u32 %v284_v32, 16  ;;  %v9991_v60 = vld [vmem:[%s9951_s12 + $0x1c] sm:$0xf] }
  0x25   : > { %v346_v38 = vrot.slane %v345_v28, 4  ;;  %v356_v39 = vrot.slane %v355_v29, 4  ;;  %v2236_v42 = vrot.slane %v2234_v31, 5  ;;  %v366_v45 = vshll.u32 %v284_v32, 16  ;;  %v9999_v1 = vld [vmem:[%s9951_s12 + $0x20] sm:$0x1] }
  0x26   : > { %v2221_v41 = vor.u32 %v2220_v35, %v2217_v34  ;;  %v2231_v49 = vor.u32 %v2230_v40, %v2226_v36  ;;  %v372_v50 = vshll.u32 %v285_v37, 16  ;;  %v365_v53 = vrot.slane %v363_v44, 4  ;;  %v286_v16 = vld [vmem:[%s9951_s12 + $0x18] sm:$0xf]  ;;  %v287_v23 = vld [vmem:[%s9951_s12 + $0x1c] sm:$0xf] }
  0x27   : > { %v351_v47 = vsel %vm9973_vm3, %v346_v38, %v350_v22  ;;  %v361_v48 = vsel %vm9973_vm3, %v356_v39, %v360_v24  ;;  %v368_v54 = vrot.slane %v366_v45, 5  ;;  %v376_v58 = vshrl.u32 %v285_v37, 16  ;;  %v321_v28 = vld [vmem:[%s9951_s12 + $0x20] sm:$0x1]  ;;  %v7620_v38 = vld [vmem:[%s9951_s12 + $0x24] sm:$0xf] }
  0x28   : > { %v7416_v51 = vcombine.low %v351_v47, %v361_v48  ;;  %v2222_v52 = vrot.slane %v2221_v41, 4  ;;  %v2232_v56 = vrot.slane %v2231_v49, 4  ;;  %v374_v57 = vrot.slane %v372_v50, 5  ;;  %v9025_v44 = vld [vmem:[%s13282_s2 + $0x8] sm:$0xff]   ;;  %s7407_s20 = sshll.u32 %s12630_s19, 8  ;;  %s7406_s10 = sshll.u32 %s12630_s19, 7 }
  0x29   : > { %v382_v59 = vshll.u32 %v320_v43, 16  ;;  %v2977_v62 = vrot.slane %v9960_v18, 5  ;;  %v2980_v63 = vrot.slane %v9963_v19, 5  ;;  %v369_v0 = vor.u32 %v368_v54, %v365_v53  ;;  %v10022_v43 = vld [vmem:[%s9951_s12 + $0x28] sm:$0xf]  ;;  %s12651_s26 = scalar_lea.vmem [#allocation5], %s7407_s20 }
  0x2a   : > { %8355 = vmatprep.mubr.msk.bf16.mxu1 %vm791_vm4, %v7416_v51  ;;  %v2227_v61 = vsel %vm9973_vm3, %v2222_v52, %v2226_v36  ;;  %v2237_v2 = vsel %vm9973_vm3, %v2232_v56, %v2236_v42  ;;  %v378_v3 = vrot.slane %v376_v58, 4  ;;  %v2239_v5 = vshrl.u32 %v7617_v55, 16  ;;  %v10031_v52 = vld [vmem:[%s9951_s12 + $0x2c] sm:$0x1]  ;;  %v10243_v19 = vld [vmem:[%s9951_s12 + $0x7c] sm:$0xf] }
  0x2b   : > { %v384_v4 = vrot.slane %v382_v59, 5  ;;  %v7667_v8 = vcombine.low %v2227_v61, %v2237_v2  ;;  %v370_v9 = vrot.slane %v369_v0, 4  ;;  %v2242_v10 = vshll.u32 %v7617_v55, 16  ;;  %v288_v59 = vld [vmem:[%s9951_s12 + $0x24] sm:$0xf]  ;;  %s13125_s13 = scalar_lea.vmem [#allocation3], %s7406_s10 }
  0x2c   : > { %v2248_v11 = vshll.u32 %v9991_v60, 16  ;;  %v379_v12 = vor.u32 %v378_v3, %v374_v57  ;;  %v2241_v13 = vrot.slane %v2239_v5, 4  ;;  %v2252_v14 = vshrl.u32 %v9991_v60, 16  ;;  %v9021_v5 = vld [vmem:[%s13282_s2 + $0x6c] sm:$0xff]   ;;  %s8177_s20 = sshll.u32 %s9889_s25, 12  ;;  %s7296_s28 = sshll.u32 %s12651_s26, 4  ;;  %s13207_s28 = int_to_ptr.vmem [resolvable:$true] %s7296_s28 }
  0x2d   : > { %v2258_v15 = vshll.u32 %v9999_v1, 16  ;;  %8507 = vmatprep.mubr.msk.bf16.mxu0 %vm791_vm4, %v7667_v8  ;;  %v375_v17 = vsel %vm9973_vm3, %v370_v9, %v374_v57  ;;  %v2244_v20 = vrot.slane %v2242_v10, 5  ;;  %v2984_v22 = vrot.slane %v9991_v60, 5 }
  0x2e   : > { %v2250_v21 = vrot.slane %v2248_v11, 5  ;;  %v380_v24 = vrot.slane %v379_v12, 4  ;;  %v2254_v25 = vrot.slane %v2252_v14, 4  ;;  %v2987_v27 = vrot.slane %v9999_v1, 5 }
  0x2f   : > { %v2260_v26 = vrot.slane %v2258_v15, 5  ;;  %v2245_v29 = vor.u32 %v2244_v20, %v2241_v13  ;;  %v10016_v30 = vrot.slane %v2984_v22, 4  ;;  %v387_v31 = vshrl.u32 %v286_v16, 16  ;;  %v322_v13 = vld [vmem:[%s9951_s12 + $0x2c] sm:$0x1] }
  0x30   : > { %v390_v32 = vshll.u32 %v286_v16, 16  ;;  %v385_v34 = vsel %vm9973_vm3, %v380_v24, %v384_v4  ;;  %v2255_v35 = vor.u32 %v2254_v25, %v2250_v21  ;;  %v396_v36 = vshll.u32 %v287_v23, 16  ;;  %v289_v4 = vld [vmem:[%s9951_s12 + $0x28] sm:$0xf]  ;;  %v7623_v16 = vld [vmem:[%s9951_s12 + $0x30] sm:$0xf] }
  0x31   : > { %v400_v37 = vshrl.u32 %v287_v23, 16  ;;  %v7417_v39 = vcombine.low %v375_v17, %v385_v34  ;;  %v2246_v40 = vrot.slane %v2245_v29, 4  ;;  %v389_v41 = vrot.slane %v387_v31, 4  ;;  %v10053_v24 = vld [vmem:[%s9951_s12 + $0x34] sm:$0xf] }
  0x32   : > { %v392_v42 = vrot.slane %v390_v32, 5  ;;  %v2256_v45 = vrot.slane %v2255_v35, 4  ;;  %v398_v47 = vrot.slane %v396_v36, 5  ;;  %v406_v49 = vshll.u32 %v321_v28, 16 }
  0x33   : > { %v402_v48 = vrot.slane %v400_v37, 4  ;;  %8356 = vmatmul.mubr.msk.bf16.vlgmr.msra.gmra.mrb[0].mxu1 %vm791_vm4, %v7417_v39  ;;  %v2251_v50 = vsel %vm9973_vm3, %v2246_v40, %v2250_v21  ;;  %v2263_v53 = vshrl.u32 %v7620_v38, 16  ;;  %v2266_v54 = vshll.u32 %v7620_v38, 16  ;;  %v10064_v38 = vld [vmem:[%s9951_s12 + $0x38] sm:$0x1] }
  0x34   : > { %v393_v51 = vor.u32 %v392_v42, %v389_v41  ;;  %v2261_v55 = vsel %vm9973_vm3, %v2256_v45, %v2260_v26  ;;  %v408_v57 = vrot.slane %v406_v49, 5  ;;  %v2272_v58 = vshll.u32 %v10022_v43, 16  ;;  %8388 = vmatpush3.bf16.msra.mxu1 %v9982_v46 }
  0x35   : > { %v403_v56 = vor.u32 %v402_v48, %v398_v47  ;;  %v7668_v61 = vcombine.low %v2251_v50, %v2261_v55  ;;  %v2265_v2 = vrot.slane %v2263_v53, 4  ;;  %v2268_v3 = vrot.slane %v2266_v54, 5  ;;  %8389 = vmatprep.subr.bf16.mxu1 %v9025_v44 }
  0x36   : > { %v394_v0 = vrot.slane %v393_v51, 4  ;;  %v2274_v9 = vrot.slane %v2272_v58, 5  ;;  %v2276_v10 = vshrl.u32 %v10022_v43, 16  ;;  %v2282_v11 = vshll.u32 %v10031_v52, 16  ;;  %v290_v51 = vld [vmem:[%s9951_s12 + $0x30] sm:$0xf] }
  0x37   : > { %v404_v8 = vrot.slane %v403_v56, 4  ;;  %8508 = vmatmul.mubr.msk.bf16.vlgmr.msra.gmra.mrb[0].mxu0 %vm791_vm4, %v7668_v61  ;;  %v2269_v12 = vor.u32 %v2268_v3, %v2265_v2  ;;  %v411_v14 = vshrl.u32 %v288_v59, 16  ;;  %v414_v15 = vshll.u32 %v288_v59, 16  ;;  %v323_v2 = vld [vmem:[%s9951_s12 + $0x38] sm:$0x1] }
  0x38   : > { %v399_v46 = vsel %vm9973_vm3, %v394_v0, %v398_v47  ;;  %8540 = vmatpush3.bf16.msra.mxu0 %v9942_v6  ;;  %v2278_v20 = vrot.slane %v2276_v10, 4  ;;  %v2284_v21 = vrot.slane %v2282_v11, 5  ;;  %v420_v23 = vshll.u32 %v289_v4, 16  ;;  %8390 = vmatpush3.bf16.msra.mxu1 %v9025_v44  ;;  %v10058_v6 = vld [vmem:[%s13282_s2 + $0x74] ss:$0 sps:$4 sm:$0x33]  }
  0x39   : > { %v409_v17 = vsel %vm9973_vm3, %v404_v8, %v408_v57  ;;  %v2270_v26 = vrot.slane %v2269_v12, 4  ;;  %v413_v28 = vrot.slane %v411_v14, 4  ;;  %v416_v29 = vrot.slane %v414_v15, 5  ;;  %8541 = vmatprep.subr.bf16.mxu0 %v9021_v5  ;;  %v291_v57 = vld [vmem:[%s9951_s12 + $0x34] sm:$0xf] }
  0x3a   : > { %v7418_v25 = vcombine.low %v399_v46, %v409_v17  ;;  %v2279_v31 = vor.u32 %v2278_v20, %v2274_v9  ;;  %v422_v32 = vrot.slane %v420_v23, 5  ;;  %v424_v34 = vshrl.u32 %v289_v4, 16  ;;  %v7626_v12 = vld [vmem:[%s9951_s12 + $0x3c] sm:$0xf]  ;;  %v10083_v17 = vld [vmem:[%s9951_s12 + $0x40] sm:$0xf] }
  0x3b   : > { %v430_v35 = vshll.u32 %v322_v13, 16  ;;  %v2275_v36 = vsel %vm9973_vm3, %v2270_v26, %v2274_v9  ;;  %v417_v37 = vor.u32 %v416_v29, %v413_v28  ;;  %v2287_v39 = vshrl.u32 %v7623_v16, 16  ;;  %v10088_v26 = vld [vmem:[%s9951_s12 + $0x44] sm:$0x1] }
  0x3c   : > { %8359 = vmatprep.mubr.msk.bf16.mxu1 %vm791_vm4, %v7418_v25  ;;  %v2290_v40 = vshll.u32 %v7623_v16, 16  ;;  %v2280_v41 = vrot.slane %v2279_v31, 4  ;;  %v426_v42 = vrot.slane %v424_v34, 4  ;;  %v2296_v45 = vshll.u32 %v10053_v24, 16  ;;  %8542 = vmatpush3.bf16.msra.mxu0 %v9021_v5  ;;  %v292_v34 = vld [vmem:[%s9951_s12 + $0x3c] sm:$0xf] }
  0x3d   : > { %v432_v44 = vrot.slane %v430_v35, 5  ;;  %v418_v47 = vrot.slane %v417_v37, 4  ;;  %v2289_v48 = vrot.slane %v2287_v39, 4  ;;  %v2300_v50 = vshrl.u32 %v10053_v24, 16  ;;  %8959 = vmatprep.subr.msk.bf16.mxu0 %vm840_vm0, %v10058_v6 }
  0x3e   : > { %v2292_v49 = vrot.slane %v2290_v40, 5  ;;  %v2285_v53 = vsel %vm9973_vm3, %v2280_v41, %v2284_v21  ;;  %v427_v54 = vor.u32 %v426_v42, %v422_v32  ;;  %v2298_v55 = vrot.slane %v2296_v45, 5  ;;  %v293_v40 = vld [vmem:[%s9951_s12 + $0x40] sm:$0xf] }
  0x3f   : > { %v2306_v56 = vshll.u32 %v10064_v38, 16  ;;  %v7669_v58 = vcombine.low %v2275_v36, %v2285_v53  ;;  %v423_v59 = vsel %vm9973_vm3, %v418_v47, %v422_v32  ;;  %v2302_v0 = vrot.slane %v2300_v50, 4 }
  0x40   : > { %v2293_v61 = vor.u32 %v2292_v49, %v2289_v48  ;;  %v428_v3 = vrot.slane %v427_v54, 4  ;;  %v435_v5 = vshrl.u32 %v290_v51, 16  ;;  %v438_v8 = vshll.u32 %v290_v51, 16  ;;  %v324_v51 = vld [vmem:[%s9951_s12 + $0x44] sm:$0x1] }
  0x41   : > { %v2308_v4 = vrot.slane %v2306_v56, 5  ;;  %8511 = vmatprep.mubr.msk.bf16.mxu0 %vm791_vm4, %v7669_v58  ;;  %v2303_v10 = vor.u32 %v2302_v0, %v2298_v55  ;;  %v444_v11 = vshll.u32 %v291_v57, 16  ;;  %v448_v46 = vshrl.u32 %v291_v57, 16  ;;  %v7629_v0 = vld [vmem:[%s9951_s12 + $0x48] sm:$0xf] }
  0x42   : > { %v2294_v9 = vrot.slane %v2293_v61, 4  ;;  %v433_v13 = vsel %vm9973_vm3, %v428_v3, %v432_v44  ;;  %v437_v14 = vrot.slane %v435_v5, 4  ;;  %v440_v15 = vrot.slane %v438_v8, 5  ;;  %v10106_v8 = vld [vmem:[%s9951_s12 + $0x4c] sm:$0xf] }
  0x43   : > { %v454_v16 = vshll.u32 %v323_v2, 16  ;;  %v7419_v20 = vcombine.low %v423_v59, %v433_v13  ;;  %v2304_v23 = vrot.slane %v2303_v10, 4  ;;  %v446_v25 = vrot.slane %v444_v11, 5 }
  0x44   : > { %v2299_v21 = vsel %vm9973_vm3, %v2294_v9, %v2298_v55  ;;  %v441_v28 = vor.u32 %v440_v15, %v437_v14  ;;  %v450_v29 = vrot.slane %v448_v46, 4  ;;  %v2311_v32 = vshrl.u32 %v7626_v12, 16 }
  0x45   : > { %v456_v31 = vrot.slane %v454_v16, 5  ;;  %8360 = vmatmul.mubr.msk.bf16.gmra.mrb[4].mxu1 %vm791_vm4, %v7419_v20  ;;  %v2309_v35 = vsel %vm9973_vm3, %v2304_v23, %v2308_v4  ;;  %v2314_v36 = vshll.u32 %v7626_v12, 16  ;;  %v2320_v37 = vshll.u32 %v10083_v17, 16 }
  0x46   : > { %v2324_v39 = vshrl.u32 %v10083_v17, 16  ;;  %v7670_v41 = vcombine.low %v2299_v21, %v2309_v35  ;;  %v442_v42 = vrot.slane %v441_v28, 4  ;;  %v451_v44 = vor.u32 %v450_v29, %v446_v25  ;;  %v10114_v21 = vld [vmem:[%s9951_s12 + $0x50] sm:$0x1]  ;;  %v10121_v35 = vld [vmem:[%s13282_s2 + $0x78] sm:$0xff]  }
  0x47   : > { %v2313_v45 = vrot.slane %v2311_v32, 4  ;;  %v2316_v47 = vrot.slane %v2314_v36, 5  ;;  %v2322_v48 = vrot.slane %v2320_v37, 5  ;;  %v2330_v50 = vshll.u32 %v10088_v26, 16 }
  0x48   : > { %v2326_v49 = vrot.slane %v2324_v39, 4  ;;  %8512 = vmatmul.mubr.msk.bf16.gmra.mrb[4].mxu0 %vm791_vm4, %v7670_v41  ;;  %v447_v53 = vsel %vm9973_vm3, %v442_v42, %v446_v25  ;;  %v452_v54 = vrot.slane %v451_v44, 4  ;;  %v459_v55 = vshrl.u32 %v292_v34, 16  ;;  %v295_v41 = vld [vmem:[%s9951_s12 + $0x4c] sm:$0xf] }
  0x49   : > { %v462_v56 = vshll.u32 %v292_v34, 16  ;;  %v2317_v57 = vor.u32 %v2316_v47, %v2313_v45  ;;  %v2332_v59 = vrot.slane %v2330_v50, 5  ;;  %v468_v61 = vshll.u32 %v293_v40, 16  ;;  %v294_v34 = vld [vmem:[%s9951_s12 + $0x48] sm:$0xf] }
  0x4a   : > { %v2327_v58 = vor.u32 %v2326_v49, %v2322_v48  ;;  %v457_v2 = vsel %vm9973_vm3, %v452_v54, %v456_v31  ;;  %v461_v3 = vrot.slane %v459_v55, 4  ;;  %v472_v5 = vshrl.u32 %v293_v40, 16  ;;  %v325_v50 = vld [vmem:[%s9951_s12 + $0x50] sm:$0x1] }
  0x4b   : > { %v464_v4 = vrot.slane %v462_v56, 5  ;;  %v7420_v9 = vcombine.low %v447_v53, %v457_v2  ;;  %v2318_v10 = vrot.slane %v2317_v57, 4  ;;  %v470_v46 = vrot.slane %v468_v61, 5  ;;  %v10137_v2 = vld [vmem:[%s9951_s12 + $0x58] sm:$0xf] }
  0x4c   : > { %v2328_v11 = vrot.slane %v2327_v58, 4  ;;  %v474_v13 = vrot.slane %v472_v5, 4  ;;  %v478_v14 = vshll.u32 %v324_v51, 16  ;;  %v2335_v15 = vshrl.u32 %v7629_v0, 16  ;;  %v7632_v58 = vld [vmem:[%s9951_s12 + $0x54] sm:$0xf] }
  0x4d   : > { %v465_v12 = vor.u32 %v464_v4, %v461_v3  ;;  %8363 = vmatprep.mubr.msk.bf16.mxu1 %vm791_vm4, %v7420_v9  ;;  %v2323_v16 = vsel %vm9973_vm3, %v2318_v10, %v2322_v48  ;;  %v2338_v23 = vshll.u32 %v7629_v0, 16  ;;  %v2344_v25 = vshll.u32 %v10106_v8, 16 }
  0x4e   : > { %v2333_v20 = vsel %vm9973_vm3, %v2328_v11, %v2332_v59  ;;  %v475_v31 = vor.u32 %v474_v13, %v470_v46  ;;  %v480_v32 = vrot.slane %v478_v14, 5  ;;  %v2337_v36 = vrot.slane %v2335_v15, 4 }
  0x4f   : > { %v7671_v28 = vcombine.low %v2323_v16, %v2333_v20  ;;  %v466_v29 = vrot.slane %v465_v12, 4  ;;  %v2340_v37 = vrot.slane %v2338_v23, 5  ;;  %v2346_v39 = vrot.slane %v2344_v25, 5  ;;  %v10143_v16 = vld [vmem:[%s9951_s12 + $0x5c] sm:$0x1] }
  0x50   : > { %v2348_v40 = vshrl.u32 %v10106_v8, 16  ;;  %v476_v44 = vrot.slane %v475_v31, 4  ;;  %v2354_v45 = vshll.u32 %v10114_v21, 16  ;;  %v3205_v47 = vsel %vm840_vm0, %v10058_v6, 0  ;;  %v10147_v23 = vld [vmem:[%s9951_s12 + $0x54] sm:$0xf] }
  0x51   : > { %8515 = vmatprep.mubr.msk.bf16.mxu0 %vm791_vm4, %v7671_v28  ;;  %v471_v42 = vsel %vm9973_vm3, %v466_v29, %v470_v46  ;;  %v2341_v48 = vor.u32 %v2340_v37, %v2337_v36  ;;  %8544 = vmatpush3.bf16.msra.mxu0 %v3205_v47  ;;  %v483_v51 = vshrl.u32 %v294_v34, 16  ;;  %v486_v53 = vshll.u32 %v294_v34, 16 }
  0x52   : > { %v2350_v49 = vrot.slane %v2348_v40, 4  ;;  %v481_v54 = vsel %vm9973_vm3, %v476_v44, %v480_v32  ;;  %v2356_v55 = vrot.slane %v2354_v45, 5  ;;  %v492_v56 = vshll.u32 %v295_v41, 16  ;;  %8577 = vmatprep.subr.bf16.mxu0 %v10121_v35  ;;  %v10153_v32 = vld [vmem:[%s9951_s12 + $0x58] sm:$0xf] }
  0x53   : > { %v496_v57 = vshrl.u32 %v295_v41, 16  ;;  %v7421_v59 = vcombine.low %v471_v42, %v481_v54  ;;  %v2342_v61 = vrot.slane %v2341_v48, 4  ;;  %v485_v0 = vrot.slane %v483_v51, 4  ;;  %v326_v40 = vld [vmem:[%s9951_s12 + $0x5c] sm:$0x1] }
  0x54   : > { %v2351_v6 = vor.u32 %v2350_v49, %v2346_v39  ;;  %v488_v3 = vrot.slane %v486_v53, 5  ;;  %v494_v4 = vrot.slane %v492_v56, 5  ;;  %v502_v9 = vshll.u32 %v325_v50, 16  ;;  %v7635_v41 = vld [vmem:[%s9951_s12 + $0x60] sm:$0xf] }
  0x55   : > { %v498_v5 = vrot.slane %v496_v57, 4  ;;  %8364 = vmatmul.mubr.msk.bf16.gmra.mrb[8].mxu1 %vm791_vm4, %v7421_v59  ;;  %v2347_v10 = vsel %vm9973_vm3, %v2342_v61, %v2346_v39  ;;  %v2359_v46 = vshrl.u32 %v7632_v58, 16  ;;  %v2362_v12 = vshll.u32 %v7632_v58, 16  ;;  %v10167_v57 = vld [vmem:[%s9951_s12 + $0x64] sm:$0xf] }
  0x56   : > { %v2352_v11 = vrot.slane %v2351_v6, 4  ;;  %v489_v13 = vor.u32 %v488_v3, %v485_v0  ;;  %v504_v15 = vrot.slane %v502_v9, 5  ;;  %v2368_v20 = vshll.u32 %v10137_v2, 16 }
  0x57   : > { %v499_v14 = vor.u32 %v498_v5, %v494_v4  ;;  %v2361_v28 = vrot.slane %v2359_v46, 4  ;;  %v2364_v29 = vrot.slane %v2362_v12, 5  ;;  %v2372_v31 = vshrl.u32 %v10137_v2, 16  ;;  %v10174_v5 = vld [vmem:[%s9951_s12 + $0x68] sm:$0x1] }
  0x58   : > { %v2357_v25 = vsel %vm9973_vm3, %v2352_v11, %v2356_v55  ;;  %v490_v36 = vrot.slane %v489_v13, 4  ;;  %v2370_v39 = vrot.slane %v2368_v20, 5  ;;  %v2378_v45 = vshll.u32 %v10143_v16, 16  ;;  %v10178_v13 = vld [vmem:[%s9951_s12 + $0x60] sm:$0xf] }
  0x59   : > { %v7672_v34 = vcombine.low %v2347_v10, %v2357_v25  ;;  %v500_v37 = vrot.slane %v499_v14, 4  ;;  %v2365_v42 = vor.u32 %v2364_v29, %v2361_v28  ;;  %v2374_v44 = vrot.slane %v2372_v31, 4 }
  0x5a   : > { %v507_v47 = vshrl.u32 %v10147_v23, 16  ;;  %v495_v48 = vsel %vm9973_vm3, %v490_v36, %v494_v4  ;;  %v510_v50 = vshll.u32 %v10147_v23, 16  ;;  %v516_v51 = vshll.u32 %v10153_v32, 16  ;;  %v10184_v36 = vld [vmem:[%s9951_s12 + $0x64] sm:$0xf] }
  0x5b   : > { %8516 = vmatmul.mubr.msk.bf16.gmra.mrb[8].mxu0 %vm791_vm4, %v7672_v34  ;;  %v505_v49 = vsel %vm9973_vm3, %v500_v37, %v504_v15  ;;  %v2366_v54 = vrot.slane %v2365_v42, 4  ;;  %v2375_v55 = vor.u32 %v2374_v44, %v2370_v39  ;;  %v2380_v56 = vrot.slane %v2378_v45, 5 }
  0x5c   : > { %v7422_v53 = vcombine.low %v495_v48, %v505_v49  ;;  %v509_v58 = vrot.slane %v507_v47, 4  ;;  %v512_v59 = vrot.slane %v510_v50, 5  ;;  %v518_v61 = vrot.slane %v516_v51, 5  ;;  %v327_v47 = vld [vmem:[%s9951_s12 + $0x68] sm:$0x1] }
  0x5d   : > { %v520_v6 = vshrl.u32 %v10153_v32, 16  ;;  %v2371_v0 = vsel %vm9973_vm3, %v2366_v54, %v2370_v39  ;;  %v2376_v3 = vrot.slane %v2375_v55, 4  ;;  %v526_v4 = vshll.u32 %v326_v40, 16  ;;  %v10197_v54 = vld [vmem:[%s13282_s2 + $0x10] ss:$0 sps:$4 sm:$0x33]  }
  0x5e   : > { %8367 = vmatprep.mubr.msk.bf16.mxu1 %vm791_vm4, %v7422_v53  ;;  %v2383_v9 = vshrl.u32 %v7635_v41, 16  ;;  %v513_v10 = vor.u32 %v512_v59, %v509_v58  ;;  %v2386_v46 = vshll.u32 %v7635_v41, 16  ;;  %v2392_v12 = vshll.u32 %v10167_v57, 16  ;;  %8954 = vmatprep.subr.msk.bf16.mxu1 %vm840_vm0, %v10197_v54 }
  0x5f   : > { %v522_v11 = vrot.slane %v520_v6, 4  ;;  %v2381_v14 = vsel %vm9973_vm3, %v2376_v3, %v2380_v56  ;;  %v528_v15 = vrot.slane %v526_v4, 5  ;;  %v2396_v25 = vshrl.u32 %v10167_v57, 16 }
  0x60   : > { %v2385_v20 = vrot.slane %v2383_v9, 4  ;;  %v7673_v28 = vcombine.low %v2371_v0, %v2381_v14  ;;  %v514_v29 = vrot.slane %v513_v10, 4  ;;  %v2388_v34 = vrot.slane %v2386_v46, 5  ;;  %v10204_v9 = vld [vmem:[%s9951_s12 + $0x6c] sm:$0xf] }
  0x61   : > { %v523_v31 = vor.u32 %v522_v11, %v518_v61  ;;  %v2394_v37 = vrot.slane %v2392_v12, 5  ;;  %v2398_v39 = vrot.slane %v2396_v25, 4  ;;  %v2402_v40 = vshll.u32 %v10174_v5, 16  ;;  %v10211_v12 = vld [vmem:[%s9951_s12 + $0x70] sm:$0xf] }
  0x62   : > { %v531_v41 = vshrl.u32 %v10178_v13, 16  ;;  %8519 = vmatprep.mubr.msk.bf16.mxu0 %vm791_vm4, %v7673_v28  ;;  %v519_v42 = vsel %vm9973_vm3, %v514_v29, %v518_v61  ;;  %v2389_v45 = vor.u32 %v2388_v34, %v2385_v20  ;;  %v534_v48 = vshll.u32 %v10178_v13, 16  ;;  %v7702_v61 = vld [vmem:[%s9951_s12 + $0xc] sm:$0xe] }
  0x63   : > { %v524_v44 = vrot.slane %v523_v31, 4  ;;  %v2399_v49 = vor.u32 %v2398_v39, %v2394_v37  ;;  %v2404_v50 = vrot.slane %v2402_v40, 5  ;;  %v540_v53 = vshll.u32 %v10184_v36, 16 }
  0x64   : > { %v533_v51 = vrot.slane %v531_v41, 4  ;;  %v2390_v56 = vrot.slane %v2389_v45, 4  ;;  %v536_v58 = vrot.slane %v534_v48, 5  ;;  %v544_v59 = vshrl.u32 %v10184_v36, 16  ;;  %v7703_v45 = vld [vmem:[%s9951_s12 + $0x18] sm:$0xe] }
  0x65   : > { %v529_v55 = vsel %vm9973_vm3, %v524_v44, %v528_v15  ;;  %v2400_v0 = vrot.slane %v2399_v49, 4  ;;  %v542_v3 = vrot.slane %v540_v53, 5  ;;  %v550_v4 = vshll.u32 %v327_v47, 16  ;;  %v10237_v47 = vld [vmem:[%s9951_s12 + $0x78] sm:$0xf] }
  0x66   : > { %v7423_v6 = vcombine.low %v519_v42, %v529_v55  ;;  %v2395_v10 = vsel %vm9973_vm3, %v2390_v56, %v2394_v37  ;;  %v537_v11 = vor.u32 %v536_v58, %v533_v51  ;;  %v546_v46 = vrot.slane %v544_v59, 4  ;;  %v328_v37 = vld [vmem:[%s9951_s12 + $0x74] sm:$0x1] }
  0x67   : > { %v2405_v14 = vsel %vm9973_vm3, %v2400_v0, %v2404_v50  ;;  %v552_v15 = vrot.slane %v550_v4, 5  ;;  %v7718_v25 = vrot.slane %v7702_v61, 9  ;;  %v2979_v28 = vrot.slane %v2977_v62, 4  ;;  %v329_v4 = vld [vmem:[%s9951_s12 + $0x80] sm:$0x1] }
  0x68   : > { %8368 = vmatmul.mubr.msk.bf16.gmra.mrb[12].mxu1 %vm791_vm4, %v7423_v6  ;;  %v7674_v29 = vcombine.low %v2395_v10, %v2405_v14  ;;  %v538_v31 = vrot.slane %v537_v11, 4  ;;  %v547_v34 = vor.u32 %v546_v46, %v542_v3  ;;  %v555_v39 = vshrl.u32 %v10204_v9, 16  ;;  %v7704_v10 = vld [vmem:[%s9951_s12 + $0x24] sm:$0xe] }
  0x69   : > { %v2978_v40 = vsel %vm10217_vm7, %v7718_v25, %v2977_v62  ;;  %v2981_v41 = vsel %vm10217_vm7, %v2979_v28, %v2980_v63  ;;  %v558_v42 = vshll.u32 %v10204_v9, 16  ;;  %v564_v44 = vshll.u32 %v10211_v12, 16  ;;  %v10266_v28 = vld [vmem:[%s9951_s12 + $0x84] sm:$0xf] }
  0x6a   : > { %8520 = vmatmul.mubr.msk.bf16.gmra.mrb[12].mxu0 %vm791_vm4, %v7674_v29  ;;  %v543_v18 = vsel %vm9973_vm3, %v538_v31, %v542_v3  ;;  %v548_v48 = vrot.slane %v547_v34, 4  ;;  %v7739_v49 = vcombine.low %v2978_v40, %v2981_v41  ;;  %v557_v62 = vrot.slane %v555_v39, 4 }
  0x6b   : > { %v560_v63 = vrot.slane %v558_v42, 5  ;;  %v566_v50 = vrot.slane %v564_v44, 5  ;;  %v568_v51 = vshrl.u32 %v10211_v12, 16  ;;  %v574_v53 = vshll.u32 %v328_v37, 16 }
  0x6c   : > { %v553_v55 = vsel %vm9973_vm3, %v548_v48, %v552_v15  ;;  %8545 = vmatprep.mubr.msk.bf16.mxu0 %vm791_vm4, %v7739_v49  ;;  %v7719_v56 = vrot.slane %v7703_v45, 9  ;;  %v2988_v58 = vsel %vm10217_vm7, %v10016_v30, %v2987_v27  ;;  %v579_v59 = vshrl.u32 %v10237_v47, 16 }
  0x6d   : > { %v7424_v61 = vcombine.low %v543_v18, %v553_v55  ;;  %v561_v6 = vor.u32 %v560_v63, %v557_v62  ;;  %v570_v0 = vrot.slane %v568_v51, 4  ;;  %v576_v3 = vrot.slane %v574_v53, 5  ;;  %v10277_v18 = vld [vmem:[%s9951_s12 + $0x88] sm:$0xf]  ;;  %v7705_v51 = vld [vmem:[%s9951_s12 + $0x30] sm:$0xe] }
  0x6e   : > { %v2985_v11 = vsel %vm10217_vm7, %v7719_v56, %v2984_v22  ;;  %v581_v46 = vrot.slane %v579_v59, 4  ;;  %v582_v1 = vshll.u32 %v10237_v47, 16  ;;  %v588_v14 = vshll.u32 %v10243_v19, 16  ;;  %v9026_v22 = vld [vmem:[%s13282_s2 + $0x80] sm:$0xff]  }
  0x6f   : > { %8371 = vmatprep.mubr.msk.bf16.mxu1 %vm791_vm4, %v7424_v61  ;;  %v562_v27 = vrot.slane %v561_v6, 4  ;;  %v571_v30 = vor.u32 %v570_v0, %v566_v50  ;;  %v7740_v15 = vcombine.low %v2985_v11, %v2988_v58  ;;  %v592_v25 = vshrl.u32 %v10243_v19, 16  ;;  %v10289_v58 = vld [vmem:[%s9951_s12 + $0x90] sm:$0xf] }
  0x70   : > { %v584_v29 = vrot.slane %v582_v1, 5  ;;  %v590_v60 = vrot.slane %v588_v14, 5  ;;  %v598_v31 = vshll.u32 %v329_v4, 16  ;;  %v7720_v34 = vrot.slane %v7704_v10, 9 }
  0x71   : > { %v567_v37 = vsel %vm9973_vm3, %v562_v27, %v566_v50  ;;  %v572_v39 = vrot.slane %v571_v30, 4  ;;  %v594_v40 = vrot.slane %v592_v25, 4  ;;  %v2991_v41 = vrot.slane %v10022_v43, 5  ;;  %v330_v50 = vld [vmem:[%s9951_s12 + $0x8c] sm:$0x1] }
  0x72   : > { %8546 = vmatmul.mubr.msk.bf16.vlgmr.msra.gmra.mrb[0].mxu0 %vm791_vm4, %v7740_v15  ;;  %v585_v42 = vor.u32 %v584_v29, %v581_v46  ;;  %v600_v44 = vrot.slane %v598_v31, 5  ;;  %v2994_v45 = vrot.slane %v10031_v52, 5  ;;  %v603_v48 = vshrl.u32 %v10266_v28, 16  ;;  %v331_v15 = vld [vmem:[%s9951_s12 + $0x98] sm:$0x1] }
  0x73   : > { %v577_v49 = vsel %vm9973_vm3, %v572_v39, %v576_v3  ;;  %8578 = vmatpush3.bf16.msra.mxu0 %v10121_v35  ;;  %v595_v62 = vor.u32 %v594_v40, %v590_v60  ;;  %v2992_v43 = vsel %vm10217_vm7, %v7720_v34, %v2991_v41  ;;  %v2993_v63 = vrot.slane %v2991_v41, 4  ;;  %v10294_v35 = vld [vmem:[%s13282_s2 + $0x88] ss:$0 sps:$4 sm:$0x33]   ;;  %v10301_v3 = vld [vmem:[%s9951_s12 + $0x94] sm:$0xf] }
  0x74   : > { %v7425_v53 = vcombine.low %v567_v37, %v577_v49  ;;  %v586_v55 = vrot.slane %v585_v42, 4  ;;  %v605_v52 = vrot.slane %v603_v48, 4  ;;  %v606_v56 = vshll.u32 %v10266_v28, 16  ;;  %8579 = vmatprep.subr.bf16.mxu0 %v9026_v22 }
  0x75   : > { %v596_v59 = vrot.slane %v595_v62, 4  ;;  %v2995_v61 = vsel %vm10217_vm7, %v2993_v63, %v2994_v45  ;;  %v612_v6 = vshll.u32 %v10277_v18, 16  ;;  %v616_v0 = vshrl.u32 %v10277_v18, 16  ;;  %v10322_v45 = vld [vmem:[%s9951_s12 + $0x9c] sm:$0xf] }
  0x76   : > { %8372 = vmatmul.mubr.msk.bf16.gmra.mrb[16].mxu1 %vm791_vm4, %v7425_v53  ;;  %v591_v4 = vsel %vm9973_vm3, %v586_v55, %v590_v60  ;;  %v7741_v10 = vcombine.low %v2992_v43, %v2995_v61  ;;  %v608_v11 = vrot.slane %v606_v56, 5  ;;  %v622_v46 = vshll.u32 %v330_v50, 16  ;;  %v10326_v43 = vld [vmem:[%s9951_s12 + $0xa0] sm:$0xf]  ;;  %v332_v61 = vld [vmem:[%s9951_s12 + $0xa4] sm:$0x1] }
  0x77   : > { %v601_v1 = vsel %vm9973_vm3, %v596_v59, %v600_v44  ;;  %v614_v14 = vrot.slane %v612_v6, 5  ;;  %v618_v27 = vrot.slane %v616_v0, 4  ;;  %v7721_v30 = vrot.slane %v7705_v51, 9  ;;  %8580 = vmatpush3.bf16.msra.mxu0 %v9026_v22  ;;  %v7706_v22 = vld [vmem:[%s9951_s12 + $0x3c] sm:$0xe] }
  0x78   : > { %v7426_v25 = vcombine.low %v591_v4, %v601_v1  ;;  %8549 = vmatprep.mubr.msk.bf16.mxu0 %vm791_vm4, %v7741_v10  ;;  %v609_v29 = vor.u32 %v608_v11, %v605_v52  ;;  %v624_v31 = vrot.slane %v622_v46, 5  ;;  %v2998_v60 = vrot.slane %v10053_v24, 5  ;;  %8960 = vmatprep.subr.msk.bf16.mxu0 %vm840_vm0, %v10294_v35  ;;  %v7707_v11 = vld [vmem:[%s9951_s12 + $0x48] sm:$0xe] }
  0x79   : > { %v619_v34 = vor.u32 %v618_v27, %v614_v14  ;;  %v3001_v37 = vrot.slane %v10064_v38, 5  ;;  %v627_v39 = vshrl.u32 %v10289_v58, 16  ;;  %v630_v40 = vshll.u32 %v10289_v58, 16 }
  0x7a   : > { %8375 = vmatprep.mubr.msk.bf16.mxu1 %vm791_vm4, %v7426_v25  ;;  %v610_v41 = vrot.slane %v609_v29, 4  ;;  %v2999_v42 = vsel %vm10217_vm7, %v7721_v30, %v2998_v60  ;;  %v3000_v44 = vrot.slane %v2998_v60, 4  ;;  %v636_v24 = vshll.u32 %v10301_v3, 16  ;;  %v10346_v29 = vld [vmem:[%s9951_s12 + $0xa8] sm:$0xf] }
  0x7b   : > { %v620_v48 = vrot.slane %v619_v34, 4  ;;  %v629_v49 = vrot.slane %v627_v39, 4  ;;  %v632_v38 = vrot.slane %v630_v40, 5  ;;  %v640_v62 = vshrl.u32 %v10301_v3, 16 }
  0x7c   : > { %v615_v63 = vsel %vm9973_vm3, %v610_v41, %v614_v14  ;;  %v3002_v50 = vsel %vm10217_vm7, %v3000_v44, %v3001_v37  ;;  %v638_v51 = vrot.slane %v636_v24, 5  ;;  %v646_v53 = vshll.u32 %v331_v15, 16  ;;  %v10352_v37 = vld [vmem:[%s9951_s12 + $0xac] sm:$0xf] }
  0x7d   : > { %v625_v55 = vsel %vm9973_vm3, %v620_v48, %v624_v31  ;;  %v7742_v52 = vcombine.low %v2999_v42, %v3002_v50  ;;  %v633_v56 = vor.u32 %v632_v38, %v629_v49  ;;  %v642_v59 = vrot.slane %v640_v62, 4  ;;  %v333_v49 = vld [vmem:[%s9951_s12 + $0xb0] sm:$0x1] }
  0x7e   : > { %v7427_v6 = vcombine.low %v615_v63, %v625_v55  ;;  %v648_v0 = vrot.slane %v646_v53, 5  ;;  %v7722_v4 = vrot.slane %v7706_v22, 9  ;;  %v3005_v10 = vrot.slane %v10083_v17, 5 }
  0x7f   : > { %8550 = vmatmul.mubr.msk.bf16.gmra.mrb[4].mxu0 %vm791_vm4, %v7742_v52  ;;  %v634_v46 = vrot.slane %v633_v56, 4  ;;  %v643_v1 = vor.u32 %v642_v59, %v638_v51  ;;  %v3008_v14 = vrot.slane %v10088_v26, 5  ;;  %v651_v27 = vshrl.u32 %v10322_v45, 16  ;;  %v7708_v56 = vld [vmem:[%s9951_s12 + $0x54] sm:$0xe] }
  0x80   : > { %8376 = vmatmul.mubr.msk.bf16.gmra.mrb[20].mxu1 %vm791_vm4, %v7427_v6  ;;  %v3006_v30 = vsel %vm10217_vm7, %v7722_v4, %v3005_v10  ;;  %v3007_v15 = vrot.slane %v3005_v10, 4  ;;  %v654_v25 = vshll.u32 %v10322_v45, 16  ;;  %v660_v17 = vshll.u32 %v10326_v43, 16 }
  0x81   : > { %v639_v31 = vsel %vm9973_vm3, %v634_v46, %v638_v51  ;;  %v644_v60 = vrot.slane %v643_v1, 4  ;;  %v653_v26 = vrot.slane %v651_v27, 4  ;;  %v664_v34 = vshrl.u32 %v10326_v43, 16 }
  0x82   : > { %v3009_v39 = vsel %vm10217_vm7, %v3007_v15, %v3008_v14  ;;  %v656_v40 = vrot.slane %v654_v25, 5  ;;  %v662_v22 = vrot.slane %v660_v17, 5  ;;  %v670_v41 = vshll.u32 %v332_v61, 16 }
  0x83   : > { %v649_v42 = vsel %vm9973_vm3, %v644_v60, %v648_v0  ;;  %v7743_v44 = vcombine.low %v3006_v30, %v3009_v39  ;;  %v666_v24 = vrot.slane %v664_v34, 4  ;;  %v7723_v48 = vrot.slane %v7707_v11, 9  ;;  %v10370_v0 = vld [vmem:[%s9951_s12 + $0xb4] sm:$0xf]  ;;  %v10378_v30 = vld [vmem:[%s9951_s12 + $0xb8] sm:$0xf] }
  0x84   : > { %v7428_v38 = vcombine.low %v639_v31, %v649_v42  ;;  %v657_v62 = vor.u32 %v656_v40, %v653_v26  ;;  %v672_v63 = vrot.slane %v670_v41, 5  ;;  %v3012_v50 = vrot.slane %v10106_v8, 5  ;;  %v334_v60 = vld [vmem:[%s9951_s12 + $0xbc] sm:$0x1] }
  0x85   : > { %8553 = vmatprep.mubr.msk.bf16.mxu0 %vm791_vm4, %v7743_v44  ;;  %v667_v51 = vor.u32 %v666_v24, %v662_v22  ;;  %v3015_v53 = vrot.slane %v10114_v21, 5  ;;  %v675_v55 = vshrl.u32 %v10346_v29, 16  ;;  %v678_v52 = vshll.u32 %v10346_v29, 16  ;;  %v7709_v24 = vld [vmem:[%s9951_s12 + $0x60] sm:$0xe] }
  0x86   : > { %8379 = vmatprep.mubr.msk.bf16.mxu1 %vm791_vm4, %v7428_v38  ;;  %v658_v59 = vrot.slane %v657_v62, 4  ;;  %v3013_v61 = vsel %vm10217_vm7, %v7723_v48, %v3012_v50  ;;  %v3014_v6 = vrot.slane %v3012_v50, 4  ;;  %v684_v8 = vshll.u32 %v10352_v37, 16 }
  0x87   : > { %v668_v4 = vrot.slane %v667_v51, 4  ;;  %v677_v21 = vrot.slane %v675_v55, 4  ;;  %v680_v10 = vrot.slane %v678_v52, 5  ;;  %v688_v11 = vshrl.u32 %v10352_v37, 16  ;;  %v7639_v51 = vld [vmem:[%s9951_s12 + $0x70] sm:$0xf] }
  0x88   : > { %v663_v46 = vsel %vm9973_vm3, %v658_v59, %v662_v22  ;;  %v3016_v1 = vsel %vm10217_vm7, %v3014_v6, %v3015_v53  ;;  %v686_v14 = vrot.slane %v684_v8, 5  ;;  %v694_v27 = vshll.u32 %v333_v49, 16  ;;  %v7710_v59 = vld [vmem:[%s9951_s12 + $0x6c] sm:$0xe] }
  0x89   : > { %v673_v15 = vsel %vm9973_vm3, %v668_v4, %v672_v63  ;;  %v7744_v25 = vcombine.low %v3013_v61, %v3016_v1  ;;  %v681_v17 = vor.u32 %v680_v10, %v677_v21  ;;  %v690_v31 = vrot.slane %v688_v11, 4  ;;  %v10403_v61 = vld [vmem:[%s13282_s2 + $0x28] sm:$0xff]  }
  0x8a   : > { %v7429_v26 = vcombine.low %v663_v46, %v673_v15  ;;  %v696_v34 = vrot.slane %v694_v27, 5  ;;  %v7724_v39 = vrot.slane %v7708_v56, 9  ;;  %v3019_v40 = vrot.slane %v10137_v2, 5 }
  0x8b   : > { %8554 = vmatmul.mubr.msk.bf16.gmra.mrb[8].mxu0 %vm791_vm4, %v7744_v25  ;;  %v682_v22 = vrot.slane %v681_v17, 4  ;;  %v691_v41 = vor.u32 %v690_v31, %v686_v14  ;;  %v3022_v42 = vrot.slane %v10143_v16, 5  ;;  %v699_v44 = vshrl.u32 %v10370_v0, 16 }
  0x8c   : > { %8380 = vmatmul.mubr.msk.bf16.gmra.mrb[24].mxu1 %vm791_vm4, %v7429_v26  ;;  %v3020_v48 = vsel %vm10217_vm7, %v7724_v39, %v3019_v40  ;;  %v3021_v49 = vrot.slane %v3019_v40, 4  ;;  %v702_v38 = vshll.u32 %v10370_v0, 16  ;;  %v708_v2 = vshll.u32 %v10378_v30, 16  ;;  %v7711_v40 = vld [vmem:[%s9951_s12 + $0x78] sm:$0xe] }
  0x8d   : > { %v687_v62 = vsel %vm9973_vm3, %v682_v22, %v686_v14  ;;  %v692_v63 = vrot.slane %v691_v41, 4  ;;  %v701_v50 = vrot.slane %v699_v44, 4  ;;  %v712_v16 = vshrl.u32 %v10378_v30, 16  ;;  %v7640_v14 = vld [vmem:[%s9951_s12 + $0x74] sm:$0x1] }
  0x8e   : > { %v3023_v53 = vsel %vm10217_vm7, %v3021_v49, %v3022_v42  ;;  %v704_v55 = vrot.slane %v702_v38, 5  ;;  %v710_v52 = vrot.slane %v708_v2, 5  ;;  %v718_v56 = vshll.u32 %v334_v60, 16  ;;  %v9601_v38 = vld [vmem:[%s9951_s12] sm:$0xf] }
  0x8f   : > { %v697_v6 = vsel %vm9973_vm3, %v692_v63, %v696_v34  ;;  %v7745_v8 = vcombine.low %v3020_v48, %v3023_v53  ;;  %v714_v4 = vrot.slane %v712_v16, 4  ;;  %v7725_v21 = vrot.slane %v7709_v24, 9  ;;  %v10417_v34 = vld [vmem:[%s9951_s12 + $0x7c] sm:$0xf]  ;;  %v7645_v24 = vld [vmem:[%s9951_s12 + $0x88] sm:$0xf] }
  0x90   : > { %v7430_v10 = vcombine.low %v687_v62, %v697_v6  ;;  %v705_v11 = vor.u32 %v704_v55, %v701_v50  ;;  %v720_v46 = vrot.slane %v718_v56, 5  ;;  %v3026_v1 = vrot.slane %v10167_v57, 5  ;;  %v10435_v2 = vld [vmem:[%s9951_s12 + $0x4] sm:$0xf]  ;;  %v7646_v63 = vld [vmem:[%s9951_s12 + $0x8c] sm:$0x1] }
  0x91   : > { %8557 = vmatprep.mubr.msk.bf16.mxu0 %vm791_vm4, %v7745_v8  ;;  %v715_v27 = vor.u32 %v714_v4, %v710_v52  ;;  %v3029_v15 = vrot.slane %v10174_v5, 5  ;;  %v1149_v25 = vsel %vm840_vm0, %v10197_v54, 0  ;;  %v7726_v17 = vrot.slane %v7710_v59, 9  ;;  %v10420_v54 = vld [vmem:[%s9951_s12 + $0x80] sm:$0x1] }
  0x92   : > { %8383 = vmatprep.mubr.msk.bf16.mxu1 %vm791_vm4, %v7430_v10  ;;  %v706_v31 = vrot.slane %v705_v11, 4  ;;  %v3027_v60 = vsel %vm10217_vm7, %v7725_v21, %v3026_v1  ;;  %v3028_v57 = vrot.slane %v3026_v1, 4  ;;  %8392 = vmatpush3.bf16.msra.mxu1 %v1149_v25  ;;  %v3033_v26 = vrot.slane %v7639_v51, 5  ;;  %v7712_v50 = vld [vmem:[%s9951_s12 + $0x84] sm:$0xe] }
  0x93   : > { %v716_v5 = vrot.slane %v715_v27, 4  ;;  %v3036_v39 = vrot.slane %v7640_v14, 5  ;;  %8425 = vmatprep.subr.bf16.mxu1 %v10403_v61  ;;  %v7451_v62 = vcombine.low %v9601_v38, %v10435_v2  ;;  %v7727_v53 = vrot.slane %v7711_v40, 9  ;;  %v7648_v59 = vld [vmem:[%s9951_s12 + $0x94] sm:$0xf] }
  0x94   : > { %v711_v22 = vsel %vm9973_vm3, %v706_v31, %v710_v52  ;;  %v3030_v41 = vsel %vm10217_vm7, %v3028_v57, %v3029_v15  ;;  %v3034_v42 = vsel %vm10217_vm7, %v7726_v17, %v3033_v26  ;;  %v3035_v44 = vrot.slane %v3033_v26, 4  ;;  %v7649_v6 = vld [vmem:[%s9951_s12 + $0x98] sm:$0x1]  ;;  %v7713_v21 = vld [vmem:[%s9951_s12 + $0x90] sm:$0xe] }
  0x95   : > { %v721_v48 = vsel %vm9973_vm3, %v716_v5, %v720_v46  ;;  %v7746_v49 = vcombine.low %v3027_v60, %v3030_v41  ;;  %v3040_v52 = vrot.slane %v10417_v34, 5  ;;  %v3043_v56 = vrot.slane %v10420_v54, 5  ;;  %v7714_v1 = vld [vmem:[%s9951_s12 + $0x9c] sm:$0xe]  ;;  %v10459_v15 = vld [vmem:[%s13282_s2 + $0x8c] sm:$0xff]  }
  0x96   : > { %v7431_v16 = vcombine.low %v711_v22, %v721_v48  ;;  %v3037_v51 = vsel %vm10217_vm7, %v3035_v44, %v3036_v39  ;;  %v7728_v8 = vrot.slane %v7712_v50, 9  ;;  %v3047_v4 = vrot.slane %v7645_v24, 5  ;;  %v9603_v25 = vld [vmem:[%s9951_s12 + $0xc] sm:$0xf]  ;;  %v10463_v17 = vld [vmem:[%s9951_s12 + $0x10] sm:$0xf] }
  0x97   : > { %8558 = vmatmul.mubr.msk.bf16.gmra.mrb[12].mxu0 %vm791_vm4, %v7746_v49  ;;  %v7747_v55 = vcombine.low %v3034_v42, %v3037_v51  ;;  %v3041_v10 = vsel %vm10217_vm7, %v7727_v53, %v3040_v52  ;;  %v3042_v11 = vrot.slane %v3040_v52, 4  ;;  %v3050_v46 = vrot.slane %v7646_v63, 5  ;;  %v7651_v5 = vld [vmem:[%s9951_s12 + $0xa0] sm:$0xf]  ;;  %v7652_v39 = vld [vmem:[%s9951_s12 + $0xa4] sm:$0x1] }
  0x98   : > { %8384 = vmatmul.mubr.msk.bf16.gmra.mrb[28].mxu1 %vm791_vm4, %v7431_v16  ;;  %v3048_v14 = vsel %vm10217_vm7, %v7728_v8, %v3047_v4  ;;  %v3049_v27 = vrot.slane %v3047_v4, 4  ;;  %v7452_v31 = vcombine.low %v9603_v25, %v10463_v17  ;;  %v7729_v57 = vrot.slane %v7713_v21, 9  ;;  %v9605_v44 = vld [vmem:[%s9951_s12 + $0x18] sm:$0xf]  ;;  %v10476_v24 = vld [vmem:[%s9951_s12 + $0x1c] sm:$0xf] }
  0x99   : > { %8393 = vmatprep.mubr.msk.bf16.mxu1 %vm791_vm4, %v7451_v62  ;;  %8561 = vmatprep.mubr.msk.bf16.mxu0 %vm791_vm4, %v7747_v55  ;;  %v3044_v60 = vsel %vm10217_vm7, %v3042_v11, %v3043_v56  ;;  %v3054_v26 = vrot.slane %v7648_v59, 5  ;;  %v3057_v41 = vrot.slane %v7649_v6, 5  ;;  %v3583_v42 = vsel %vm840_vm0, %v10294_v35, 0  ;;  %v7654_v63 = vld [vmem:[%s9951_s12 + $0xac] sm:$0xf]  ;;  %v9051_v35 = vld [vmem:[%s13282_s2 + $0x30] sm:$0xff]  }
  0x9a   : > { %v7748_v40 = vcombine.low %v3041_v10, %v3044_v60  ;;  %v3051_v22 = vsel %vm10217_vm7, %v3049_v27, %v3050_v46  ;;  %v7453_v48 = vcombine.low %v9605_v44, %v10476_v24  ;;  %8582 = vmatpush3.bf16.msra.mxu0 %v3583_v42  ;;  %v7730_v62 = vrot.slane %v7714_v1, 9  ;;  %v7657_v51 = vld [vmem:[%s9951_s12 + $0xb8] sm:$0xf]  ;;  %v7655_v56 = vld [vmem:[%s9951_s12 + $0xb0] sm:$0x1]  ;;  %v10520_v44 = vld [vmem:[%s13282_s2 + $0x3c] sm:$0xff]  }
  0x9b   : > { %v7749_v49 = vcombine.low %v3048_v14, %v3051_v22  ;;  %v3056_v38 = vrot.slane %v3054_v26, 4  ;;  %v3061_v50 = vrot.slane %v7651_v5, 5  ;;  %v3064_v16 = vrot.slane %v7652_v39, 5  ;;  %8615 = vmatprep.subr.bf16.mxu0 %v10459_v15  ;;  %v7715_v8 = vld [vmem:[%s9951_s12 + $0xa8] sm:$0xe] }
  0x9c   : > { %v3055_v53 = vsel %vm10217_vm7, %v7729_v57, %v3054_v26  ;;  %v3068_v59 = vrot.slane %v7654_v63, 5  ;;  %v7658_v4 = vld [vmem:[%s9951_s12 + $0xbc] sm:$0x1]  ;;  %v3075_v21 = vrot.slane %v7657_v51, 5  ;;  %v7716_v11 = vld [vmem:[%s9951_s12 + $0xb4] sm:$0xe] }
  0x9d   : > { %v3058_v55 = vsel %vm10217_vm7, %v3056_v38, %v3057_v41  ;;  %v3063_v52 = vrot.slane %v3061_v50, 4  ;;  %v3062_v6 = vsel %vm10217_vm7, %v7730_v62, %v3061_v50  ;;  %v9057_v46 = vld [vmem:[%s13282_s2 + $0x38] ss:$0 sps:$4 sm:$0x33]   ;;  %v9607_v1 = vld [vmem:[%s9951_s12 + $0x24] sm:$0xf] }
  0x9e   : > { %v10507_v14 = vld [vmem:[%s9951_s12 + $0x28] sm:$0xf]  ;;  %v7750_v25 = vcombine.low %v3055_v53, %v3058_v55  ;;  %v7731_v60 = vrot.slane %v7715_v8, 9  ;;  %v3070_v57 = vrot.slane %v3068_v59, 4  ;;  %v9609_v26 = vld [vmem:[%s9951_s12 + $0x30] sm:$0xf] }
  0x9f   : > { %8562 = vmatmul.mubr.msk.bf16.gmra.mrb[16].mxu0 %vm791_vm4, %v7748_v40  ;;  %v3065_v10 = vsel %vm10217_vm7, %v3063_v52, %v3064_v16  ;;  %v7454_v27 = vcombine.low %v9607_v1, %v10507_v14  ;;  %v10512_v5 = vld [vmem:[%s9951_s12 + $0x34] sm:$0xf]  ;;  %v7732_v40 = vrot.slane %v7716_v11, 9  ;;  %v3077_v22 = vrot.slane %v3075_v21, 4  ;;  %v7660_v42 = vld [vmem:[%s9951_s12 + $0xc4] sm:$0xf] }
  0xa0   : > { %8394 = vmatmul.mubr.msk.bf16.vlgmr.msra.gmra.mrb[0].mxu1 %vm791_vm4, %v7452_v31  ;;  %8565 = vmatprep.mubr.msk.bf16.mxu0 %vm791_vm4, %v7749_v49  ;;  %v7751_v31 = vcombine.low %v3062_v6, %v3065_v10  ;;  %v7455_v39 = vcombine.low %v9609_v26, %v10512_v5  ;;  %v3078_v41 = vrot.slane %v7658_v4, 5  ;;  %v3082_v38 = vrot.slane %v7660_v42, 5  ;;  %v7661_v16 = vld [vmem:[%s9951_s12 + $0xc8] sm:$0x1]  ;;  %v7717_v51 = vld [vmem:[%s9951_s12 + $0xc0] sm:$0xe] }
  0xa1   : > { %8397 = vmatprep.mubr.msk.bf16.mxu1 %vm791_vm4, %v7453_v48  ;;  %8426 = vmatpush3.bf16.msra.mxu1 %v10403_v61  ;;  %v3071_v61 = vrot.slane %v7655_v56, 5  ;;  %v3069_v48 = vsel %vm10217_vm7, %v7731_v60, %v3068_v59  ;;  %v1593_v62 = vsel %vm840_vm0, %v9057_v46, 0  ;;  %v3076_v63 = vsel %vm10217_vm7, %v7732_v40, %v3075_v21  ;;  %v10540_v53 = vld [vmem:[%s9951_s12 + $0x40] sm:$0xf]  ;;  %v9613_v4 = vld [vmem:[%s9951_s12 + $0x48] sm:$0xf] }
  0xa2   : > { %8427 = vmatprep.subr.bf16.mxu1 %v9051_v35  ;;  %v3079_v50 = vsel %vm10217_vm7, %v3077_v22, %v3078_v41  ;;  %v7733_v59 = vrot.slane %v7717_v51, 9  ;;  %v3084_v6 = vrot.slane %v3082_v38, 4  ;;  %v3085_v8 = vrot.slane %v7661_v16, 5  ;;  %v10545_v21 = vld [vmem:[%s9951_s12 + $0x4c] sm:$0xf]  ;;  %v9044_v51 = vld [vmem:[%s9951_s12 + $0x30] sm:$0xff]  }
  0xa3   : > { %v3072_v49 = vsel %vm10217_vm7, %v3070_v57, %v3071_v61  ;;  %v7753_v56 = vcombine.low %v3076_v63, %v3079_v50  ;;  %v7457_v10 = vcombine.low %v9613_v4, %v10545_v21  ;;  %v2440_v11 = vshll.u32 %v10417_v34, 16  ;;  %v9039_v57 = vld [vmem:[%s9951_s12 + $0x18] sm:$0xff]   ;;  %v1312_v22 = vld [vmem:[%s9951_s12] sm:$0xe]  ;;  %v1313_v41 = vld [vmem:[%s9951_s12 + $0xc] sm:$0xe] }
  0xa4   : > { %v7752_v52 = vcombine.low %v3069_v48, %v3072_v49  ;;  %v3083_v1 = vsel %vm10217_vm7, %v7733_v59, %v3082_v38  ;;  %v7458_v60 = vcombine.low %v10147_v23, %v10153_v32  ;;  %v1372_v61 = vrot.slane %v10463_v17, 5  ;;  %v9615_v42 = vld [vmem:[%s9951_s12 + $0x8] sm:$0x1]  ;;  %v1314_v23 = vld [vmem:[%s9951_s12 + $0x18] sm:$0xe] }
  0xa5   : > { %8428 = vmatpush3.bf16.msra.mxu1 %v9051_v35  ;;  %v9611_v35 = vld [vmem:[%s9951_s12 + $0x3c] sm:$0xf]  ;;  %v2450_v26 = vshll.u32 %v10420_v54, 16  ;;  %v1368_v48 = vrot.slane %v9615_v42, 5  ;;  %v9616_v32 = vld [vmem:[%s9951_s12 + $0x14] sm:$0x1]  ;;  %v7460_v38 = vcombine.low %v10204_v9, %v10211_v12  ;;  %v7461_v16 = vcombine.low %v10237_v47, %v10243_v19 }
  0xa6   : > { %8955 = vmatprep.subr.msk.bf16.mxu1 %vm840_vm0, %v9057_v46  ;;  %v7456_v55 = vcombine.low %v9611_v35, %v10540_v53  ;;  %v2444_v46 = vshrl.u32 %v10417_v34, 16  ;;  %v1375_v54 = vrot.slane %v9616_v32, 5  ;;  %v1374_v63 = vrot.slane %v1372_v61, 4  ;;  %v9042_v50 = vld [vmem:[%s9951_s12 + $0x24] sm:$0xff]   ;;  %v9052_v47 = vld [vmem:[%s13282_s2 + $0x94] sm:$0xff]  }
  0xa7   : > { %8566 = vmatmul.mubr.msk.bf16.gmra.mrb[20].mxu0 %vm791_vm4, %v7750_v25  ;;  %v10558_v25 = vrot.slane %v2440_v11, 5  ;;  %v10576_v17 = vrot.slane %v2450_v26, 5  ;;  %v7462_v35 = vcombine.low %v10266_v28, %v10277_v18  ;;  %v7463_v9 = vcombine.low %v10289_v58, %v10301_v3  ;;  %v1316_v59 = vld [vmem:[%s9951_s12 + $0x30] sm:$0xe]  ;;  %v9618_v26 = vld [vmem:[%s9951_s12 + $0x2c] sm:$0x1] }
  0xa8   : > { %8398 = vmatmul.mubr.msk.bf16.gmra.mrb[4].mxu1 %vm791_vm4, %v7454_v27  ;;  %8569 = vmatprep.mubr.msk.bf16.mxu0 %vm791_vm4, %v7751_v31  ;;  %v3086_v27 = vsel %vm10217_vm7, %v3084_v6, %v3085_v8  ;;  %v2446_v34 = vrot.slane %v2444_v46, 4  ;;  %v7464_v12 = vcombine.low %v10322_v45, %v10326_v43  ;;  %v7465_v19 = vcombine.low %v10346_v29, %v10352_v37  ;;  %v1317_v46 = vld [vmem:[%s9951_s12 + $0x3c] sm:$0xe]  ;;  %v9050_v28 = vld [vmem:[%s9951_s12 + $0x54] sm:$0xff]   ;;  %v7850_v58 = vld [vmem:[%s9951_s12 + $0x28] sm:$0xf] }
  0xa9   : > { %8401 = vmatprep.mubr.msk.bf16.mxu1 %vm791_vm4, %v7455_v39  ;;  %8430 = vmatpush3.bf16.msra.mxu1 %v1593_v62  ;;  %13382 = vst [vmem:[#allocation10_spill] sm:$0xff] %v10558_v25  ;;  %v7754_v31 = vcombine.low %v3083_v1, %v3086_v27  ;;  %v7459_v39 = vcombine.low %v10178_v13, %v10184_v36  ;;  %13383 = vst [vmem:[#allocation11_spill] sm:$0xff] %v10576_v17  ;;  %v7486_v13 = vrot.slane %v1312_v22, 9 }
  0xaa   : > { %8463 = vmatprep.subr.bf16.mxu1 %v10520_v44  ;;  %v2447_v40 = vor.u32 %v2446_v34, %v10558_v25  ;;  %v1365_v36 = vrot.slane %v10435_v2, 5  ;;  %v7487_v62 = vrot.slane %v1313_v41, 9  ;;  %v1379_v2 = vrot.slane %v10476_v24, 5  ;;  %v9062_v24 = vld [vmem:[%s13282_s2 + $0x9c] ss:$0 sps:$4 sm:$0x33]  }
  0xab   : > { %v10622_v1 = vsel %vm10217_vm7, %v1374_v63, %v1375_v54  ;;  %v1393_v27 = vrot.slane %v10512_v5, 5  ;;  %v1400_v34 = vrot.slane %v10540_v53, 5  ;;  %v4328_v53 = vsel %vm840_vm0, %v9062_v24, 0  ;;  %v9619_v41 = vld [vmem:[%s9951_s12 + $0x58] sm:$0xf] }
  0xac   : > { %v10580_v49 = vrot.slane %v2447_v40, 4  ;;  %v10612_v8 = vsel %vm10217_vm7, %v7486_v13, %v1365_v36  ;;  %v1367_v4 = vrot.slane %v1365_v36, 4  ;;  %v1319_v40 = vld [vmem:[%s9951_s12 + $0x54] sm:$0xe]  ;;  %v1407_v22 = vrot.slane %v10545_v21, 5  ;;  %v9046_v36 = vld [vmem:[%s9951_s12 + $0x3c] sm:$0xff]  }
  0xad   : > { %v1414_v42 = vrot.slane %v9619_v41, 5  ;;  %v7490_v54 = vrot.slane %v1316_v59, 9  ;;  %v9620_v13 = vld [vmem:[%s9951_s12 + $0x38] sm:$0x1]  ;;  %v7491_v63 = vrot.slane %v1317_v46, 9 }
  0xae   : > { %13384 = vst [vmem:[#allocation12_spill] sm:$0xff] %v10580_v49  ;;  %v10645_v32 = vsel %vm10217_vm7, %v1367_v4, %v1368_v48  ;;  %v1396_v21 = vrot.slane %v9620_v13, 5  ;;  %v9623_v4 = vld [vmem:[%s9951_s12 + $0x5c] sm:$0x1]  ;;  %v1409_v59 = vrot.slane %v1407_v22, 4 }
  0xaf   : > { %8570 = vmatmul.mubr.msk.bf16.gmra.mrb[24].mxu0 %vm791_vm4, %v7752_v52  ;;  %v10592_v52 = vld [vmem:[%s9951_s12 + $0x24] sm:$0xe]  ;;  %v7847_v41 = vld [vmem:[%s9951_s12 + $0x1c] sm:$0xf]  ;;  %v11080_v49 = vld [vmem:[%s9951_s12 + $0x8c] sm:$0x1] }
  0xb0   : > { %8402 = vmatmul.mubr.msk.bf16.gmra.mrb[8].mxu1 %vm791_vm4, %v7456_v55  ;;  %8573 = vmatprep.mubr.msk.bf16.mxu0 %vm791_vm4, %v7753_v56  ;;  %v7488_v55 = vrot.slane %v1314_v23, 9  ;;  %v1386_v56 = vrot.slane %v10507_v14, 5  ;;  %v10618_v14 = vsel %vm10217_vm7, %v7487_v62, %v1372_v61  ;;  %v7489_v61 = vrot.slane %v10592_v52, 9  ;;  %v7846_v23 = vld [vmem:[%s9951_s12 + $0x18] sm:$0xf]  ;;  %13402 = vst [vmem:[#allocation21_spill] sm:$0xff] %v11080_v49 }
  0xb1   : > { %8405 = vmatprep.mubr.msk.bf16.mxu1 %vm791_vm4, %v7457_v10  ;;  %v9617_v10 = vld [vmem:[%s9951_s12 + $0x20] sm:$0x1]  ;;  %v1395_v62 = vrot.slane %v1393_v27, 4  ;;  %v7493_v52 = vrot.slane %v1319_v40, 9  ;;  %v3827_v13 = vshrl.u32 %v7846_v23, 16 }
  0xb2   : > { %v1382_v11 = vrot.slane %v9617_v10, 5  ;;  %v1388_v5 = vrot.slane %v1386_v56, 4  ;;  %v1417_v10 = vrot.slane %v9623_v4, 5 }
  0xb7   : > { %8574 = vmatmul.mubr.msk.bf16.gmra.mrb[28].mxu0 %vm791_vm4, %v7754_v31  ;;  %v1318_v31 = vld [vmem:[%s9951_s12 + $0x48] sm:$0xe] }
  0xb8   : > { %8406 = vmatmul.mubr.msk.bf16.gmra.mrb[12].mxu1 %vm791_vm4, %v7458_v60  ;;  %8583 = vmatprep.mubr.msk.bf16.mxu0 %vm791_vm4, %v9039_v57  ;;  %v10630_v60 = vsel %vm10217_vm7, %v7488_v55, %v1379_v2  ;;  %v1381_v57 = vrot.slane %v1379_v2, 4  ;;  %v7492_v55 = vrot.slane %v1318_v31, 9  ;;  %v9622_v2 = vld [vmem:[%s9951_s12 + $0x50] sm:$0x1]  ;;  %v10662_v31 = vsel %vm10217_vm7, %v7489_v61, %v1386_v56  ;;  %v9624_v61 = vld [vmem:[%s9951_s12 + $0x64] sm:$0xf] }
  0xb9   : > { %8409 = vmatprep.mubr.msk.bf16.mxu1 %vm791_vm4, %v7459_v39  ;;  %v1389_v39 = vrot.slane %v9618_v26, 5  ;;  %v1410_v48 = vrot.slane %v9622_v2, 5  ;;  %v1416_v26 = vrot.slane %v1414_v42, 4 }
  0xba   : > { %v10658_v46 = vsel %vm10217_vm7, %v1381_v57, %v1382_v11  ;;  %v10679_v11 = vsel %vm10217_vm7, %v7491_v63, %v1400_v34  ;;  %v1320_v57 = vld [vmem:[%s9951_s12 + $0x60] sm:$0xe]  ;;  %v7849_v63 = vld [vmem:[%s9951_s12 + $0x24] sm:$0xf] }
  0xbb   : > { %v10666_v40 = vsel %vm10217_vm7, %v1388_v5, %v1389_v39  ;;  %v10695_v39 = vsel %vm10217_vm7, %v7492_v55, %v1407_v22  ;;  %v3836_v5 = vshll.u32 %v7847_v41, 16  ;;  %v10712_v22 = vsel %vm10217_vm7, %v1416_v26, %v1417_v10  ;;  %v7852_v55 = vld [vmem:[%s9951_s12 + $0x30] sm:$0xf]  ;;  %v9054_v10 = vld [vmem:[%s9951_s12 + $0x60] sm:$0xff]   ;;  %v1321_v26 = vld [vmem:[%s9951_s12 + $0x6c] sm:$0xe] }
  0xbc   : > { %v3875_v3 = vshrl.u32 %v7852_v55, 16 }
  0xbf   : > { %8584 = vmatmul.mubr.msk.bf16.vlgmr.msra.gmra.mrb[0].mxu0 %vm791_vm4, %v9042_v50  ;;  %v1402_v50 = vrot.slane %v1400_v34, 4  ;;  %v10699_v34 = vsel %vm10217_vm7, %v7493_v52, %v1414_v42  ;;  %v10715_v42 = vld [vmem:[%s9951_s12 + $0x20] sm:$0x1]  ;;  %v10742_v52 = vrot.slane %v3836_v5, 5  ;;  %v3864_v5 = vshrl.u32 %v7850_v58, 16 }
  0xc0   : > { %8410 = vmatmul.mubr.msk.bf16.gmra.mrb[16].mxu1 %vm791_vm4, %v7460_v38  ;;  %8616 = vmatpush3.bf16.msra.mxu0 %v10459_v15  ;;  %v9048_v38 = vld [vmem:[%s9951_s12 + $0x48] sm:$0xff]   ;;  %v3830_v15 = vshll.u32 %v7846_v23, 16  ;;  %v10675_v23 = vsel %vm10217_vm7, %v1395_v62, %v1396_v21  ;;  %v10708_v21 = vsel %vm10217_vm7, %v1409_v59, %v1410_v48  ;;  %v3846_v2 = vshll.u32 %v10715_v42, 16 }
  0xc1   : > { %8413 = vmatprep.mubr.msk.bf16.mxu1 %vm791_vm4, %v7461_v16  ;;  %8587 = vmatprep.mubr.msk.bf16.mxu0 %vm791_vm4, %v9044_v51  ;;  %v9621_v16 = vld [vmem:[%s9951_s12 + $0x44] sm:$0x1]  ;;  %v3860_v48 = vshll.u32 %v7850_v58, 16  ;;  %v3866_v45 = vrot.slane %v3864_v5, 4  ;;  %v9058_v5 = vld [vmem:[%s9951_s12 + $0x78] sm:$0xff]  }
  0xc2   : > { %8617 = vmatprep.subr.bf16.mxu0 %v9052_v47  ;;  %v1403_v51 = vrot.slane %v9621_v16, 5  ;;  %v3832_v62 = vrot.slane %v3830_v15, 5  ;;  %v7494_v15 = vrot.slane %v1320_v57, 9  ;;  %v9625_v16 = vld [vmem:[%s9951_s12 + $0x68] sm:$0x1]  ;;  %v3851_v57 = vshrl.u32 %v7849_v63, 16 }
  0xc4   : > { %8618 = vmatpush3.bf16.msra.mxu0 %v9052_v47  ;;  %v10671_v47 = vsel %vm10217_vm7, %v7490_v54, %v1393_v27  ;;  %v10683_v56 = vsel %vm10217_vm7, %v1402_v50, %v1403_v51  ;;  %v10690_v27 = vld [vmem:[%s13282_s2 + $0xa0] sm:$0xff]   ;;  %v3840_v54 = vshrl.u32 %v7847_v41, 16  ;;  %v1424_v51 = vrot.slane %v9625_v16, 5  ;;  %v9626_v41 = vld [vmem:[%s9951_s12 + $0x70] sm:$0xf] }
  0xc5   : > { %8961 = vmatprep.subr.msk.bf16.mxu0 %vm840_vm0, %v9062_v24  ;;  %v1421_v24 = vrot.slane %v9624_v61, 5  ;;  %v3854_v61 = vshll.u32 %v7849_v63, 16 }
  0xc6   : > { %v3842_v4 = vrot.slane %v3840_v54, 4  ;;  %v3878_v54 = vshll.u32 %v7852_v55, 16  ;;  %v7854_v55 = vld [vmem:[%s9951_s12 + $0x38] sm:$0x1] }
  0xc7   : > { %8588 = vmatmul.mubr.msk.bf16.gmra.mrb[4].mxu0 %vm791_vm4, %v9046_v36  ;;  %v3829_v36 = vrot.slane %v3827_v13, 4  ;;  %v1423_v50 = vrot.slane %v1421_v24, 4  ;;  %v1428_v13 = vrot.slane %v9626_v41, 5  ;;  %v10749_v16 = vsel %vm10217_vm7, %v7494_v15, %v1421_v24  ;;  %v9627_v15 = vld [vmem:[%s9951_s12 + $0x74] sm:$0x1] }
  0xc8   : > { %8414 = vmatmul.mubr.msk.bf16.gmra.mrb[20].mxu1 %vm791_vm4, %v7462_v35  ;;  %8591 = vmatprep.mubr.msk.bf16.mxu0 %vm791_vm4, %v9048_v38  ;;  %v3843_v41 = vor.u32 %v3842_v4, %v10742_v52  ;;  %v7495_v24 = vrot.slane %v1321_v26, 9  ;;  %v1431_v42 = vrot.slane %v9627_v15, 5  ;;  %v1322_v38 = vld [vmem:[%s9951_s12 + $0x78] sm:$0xe] }
  0xc9   : > { %8417 = vmatprep.mubr.msk.bf16.mxu1 %vm791_vm4, %v7463_v9  ;;  %8620 = vmatpush3.bf16.msra.mxu0 %v4328_v53  ;;  %v7853_v53 = vld [vmem:[%s9951_s12 + $0x34] sm:$0xf]  ;;  %v3833_v59 = vor.u32 %v3832_v62, %v3829_v36  ;;  %v7851_v9 = vld [vmem:[%s9951_s12 + $0x2c] sm:$0x1]  ;;  %v10756_v63 = vsel %vm10217_vm7, %v1423_v50, %v1424_v51  ;;  %v1430_v58 = vrot.slane %v1428_v13, 4  ;;  %v3853_v50 = vrot.slane %v3851_v57, 4 }
  0xca   : > { %8653 = vmatprep.subr.bf16.mxu0 %v10690_v27  ;;  %v3884_v36 = vshll.u32 %v7853_v53, 16  ;;  %v3888_v62 = vshrl.u32 %v7853_v53, 16  ;;  %v3856_v51 = vrot.slane %v3854_v61, 5  ;;  %v10773_v53 = vrot.slane %v3860_v48, 5  ;;  %v9056_v61 = vld [vmem:[%s9951_s12 + $0x6c] sm:$0xff]  }
  0xcb   : > { %v3870_v43 = vshll.u32 %v7851_v9, 16  ;;  %v3844_v37 = vrot.slane %v3843_v41, 4  ;;  %v10783_v48 = vsel %vm10217_vm7, %v7495_v24, %v1428_v13  ;;  %v7855_v9 = vld [vmem:[%s9951_s12 + $0x3c] sm:$0xf]  ;;  %v9629_v24 = vld [vmem:[%s9951_s12 + $0x80] sm:$0x1] }
  0xcc   : > { %v10776_v26 = vrot.slane %v3884_v36, 5  ;;  %v3890_v57 = vrot.slane %v3888_v62, 4  ;;  %v3857_v36 = vor.u32 %v3856_v51, %v3853_v50  ;;  %v7856_v62 = vld [vmem:[%s9951_s12 + $0x40] sm:$0xf]  ;;  %v3867_v13 = vor.u32 %v3866_v45, %v10773_v53 }
  0xcd   : > { %v1438_v15 = vrot.slane %v9629_v24, 5  ;;  %v10798_v29 = vrot.slane %v3870_v43, 5  ;;  %v3899_v50 = vshrl.u32 %v7855_v9, 16  ;;  %v3902_v51 = vshll.u32 %v7855_v9, 16  ;;  %v7857_v9 = vld [vmem:[%s9951_s12 + $0x44] sm:$0x1] }
  0xce   : > { %v3891_v18 = vor.u32 %v3890_v57, %v10776_v26  ;;  %v3858_v45 = vrot.slane %v3857_v36, 4  ;;  %v13386_v57 = vcombine.low %v10612_v8, %v10645_v32  ;;  %v10831_v8 = vld [vmem:[%s9951_s12 + $0x4c] sm:$0xf] }
  0xcf   : > { %8592 = vmatmul.mubr.msk.bf16.gmra.mrb[8].mxu0 %vm791_vm4, %v9050_v28  ;;  %v10766_v28 = vrot.slane %v3833_v59, 4  ;;  %v3880_v59 = vrot.slane %v3878_v54, 5  ;;  %v10793_v54 = vsel %vm10217_vm7, %v1430_v58, %v1431_v42  ;;  %v7858_v42 = vld [vmem:[%s9951_s12 + $0x48] sm:$0xf]  ;;  %v3901_v32 = vrot.slane %v3899_v50, 4 }
  0xd0   : > { %8418 = vmatmul.mubr.msk.bf16.gmra.mrb[24].mxu1 %vm791_vm4, %v7464_v12  ;;  %8595 = vmatprep.mubr.msk.bf16.mxu0 %vm791_vm4, %v9054_v10  ;;  %v9628_v12 = vld [vmem:[%s9951_s12 + $0x7c] sm:$0xf]  ;;  %v3877_v10 = vrot.slane %v3875_v3, 4  ;;  %v3892_v36 = vrot.slane %v3891_v18, 4 }
  0xd1   : > { %8421 = vmatprep.mubr.msk.bf16.mxu1 %vm791_vm4, %v7465_v19  ;;  %v1435_v4 = vrot.slane %v9628_v12, 5  ;;  %v3848_v19 = vrot.slane %v3846_v2, 5  ;;  %v3839_v3 = vsel %vm9973_vm3, %v10766_v28, %v10742_v52  ;;  %v7496_v2 = vrot.slane %v1322_v38, 9  ;;  %v1323_v52 = vld [vmem:[%s9951_s12 + $0x84] sm:$0xe] }
  0xd2   : > { %v3894_v12 = vshll.u32 %v7854_v55, 16  ;;  %v3881_v35 = vor.u32 %v3880_v59, %v3877_v10  ;;  %v9630_v28 = vld [vmem:[%s9951_s12 + $0x88] sm:$0xf]  ;;  %v13385_v55 = vcombine.low %v10370_v0, %v10378_v30  ;;  %v3908_v10 = vshll.u32 %v7856_v62, 16 }
  0xd3   : > { %v1437_v41 = vrot.slane %v1435_v4, 4  ;;  %v1442_v6 = vrot.slane %v9630_v28, 5  ;;  %v3849_v38 = vsel %vm9973_vm3, %v3844_v37, %v3848_v19  ;;  %v10816_v43 = vsel %vm10217_vm7, %v7496_v2, %v1435_v4  ;;  %v9060_v4 = vld [vmem:[%s9951_s12 + $0x90] sm:$0xff]  }
  0xd4   : > { %v3912_v59 = vshrl.u32 %v7856_v62, 16  ;;  %v3868_v0 = vrot.slane %v3867_v13, 4  ;;  %v3896_v37 = vrot.slane %v3894_v12, 5  ;;  %v7497_v19 = vrot.slane %v1323_v52, 9  ;;  %v9631_v62 = vld [vmem:[%s9951_s12 + $0x8c] sm:$0x1] }
  0xd5   : > { %v10825_v30 = vsel %vm10217_vm7, %v1437_v41, %v1438_v15  ;;  %v1444_v2 = vrot.slane %v1442_v6, 4  ;;  %v1445_v24 = vrot.slane %v9631_v62, 5  ;;  %v3904_v28 = vrot.slane %v3902_v51, 5  ;;  %v9069_v51 = vld [vmem:[%s13282_s2 + $0x44] sm:$0xff]  }
  0xd6   : > { %v3923_v13 = vshrl.u32 %v7858_v42, 16  ;;  %v10834_v58 = vcombine.low %v3839_v3, %v3849_v38  ;;  %v3863_v41 = vsel %vm9973_vm3, %v3858_v45, %v10773_v53  ;;  %v10839_v15 = vrot.slane %v3908_v10, 5  ;;  %v1324_v10 = vld [vmem:[%s9951_s12 + $0x90] sm:$0xe] }
  0xd7   : > { %8596 = vmatmul.mubr.msk.bf16.gmra.mrb[12].mxu0 %vm791_vm4, %v9056_v61  ;;  %v9059_v61 = vld [vmem:[%s9951_s12 + $0x84] sm:$0xff]   ;;  %v3914_v18 = vrot.slane %v3912_v59, 4  ;;  %v3873_v12 = vsel %vm9973_vm3, %v3868_v0, %v10798_v29  ;;  %v3932_v3 = vshll.u32 %v10831_v8, 16  ;;  %v10856_v38 = vsel %vm10217_vm7, %v7497_v19, %v1442_v6  ;;  %v10875_v19 = vld [vmem:[%s9951_s12 + $0x50] sm:$0x1] }
  0xd8   : > { %8422 = vmatmul.mubr.msk.bf16.gmra.mrb[28].mxu1 %vm791_vm4, %v13385_v55  ;;  %8599 = vmatprep.mubr.msk.bf16.mxu0 %vm791_vm4, %v9058_v5  ;;  %v3882_v5 = vrot.slane %v3881_v35, 4  ;;  %v3926_v55 = vshll.u32 %v7858_v42, 16  ;;  %v10842_v35 = vld [vmem:[%s9951_s12 + $0x58] sm:$0xf]  ;;  %v3936_v42 = vshrl.u32 %v10831_v8, 16  ;;  %v10860_v50 = vsel %vm10217_vm7, %v1444_v2, %v1445_v24 }
  0xd9   : > { %8431 = vmatprep.mubr.msk.bf16.mxu1 %vm791_vm4, %v13386_v57  ;;  %v7861_v57 = vld [vmem:[%s9951_s12 + $0x54] sm:$0xf]  ;;  %v3918_v29 = vshll.u32 %v7857_v9, 16  ;;  %v3897_v45 = vsel %vm9973_vm3, %v3892_v36, %v3896_v37  ;;  %v3925_v59 = vrot.slane %v3923_v13, 4  ;;  %v13387_v0 = vcombine.low %v10618_v14, %v10622_v1  ;;  %v9061_v14 = vld [vmem:[%s9951_s12 + $0x9c] sm:$0xff]   ;;  %v9063_v13 = vld [vmem:[%s9951_s12 + $0xa8] sm:$0xff]  }
  0xda   : > { %v3887_v53 = vsel %vm9973_vm3, %v3882_v5, %v10776_v26  ;;  %v3905_v26 = vor.u32 %v3904_v28, %v3901_v32  ;;  %v3928_v6 = vrot.slane %v3926_v55, 5  ;;  %v3947_v9 = vshrl.u32 %v7861_v57, 16  ;;  %v9071_v24 = vld [vmem:[%s13282_s2 + $0x4c] ss:$0 sps:$4 sm:$0x33]  }
  0xdb   : > { %v3950_v5 = vshll.u32 %v7861_v57, 16  ;;  %v3960_v37 = vshrl.u32 %v10842_v35, 16  ;;  %v13388_v36 = vcombine.low %v10630_v60, %v10658_v46  ;;  %v10885_v1 = vcombine.low %v3863_v41, %v3873_v12  ;;  %v7864_v28 = vld [vmem:[%s9951_s12 + $0x60] sm:$0xf]  ;;  %v9632_v57 = vld [vmem:[%s9951_s12 + $0x94] sm:$0xf] }
  0xdc   : > { %v10888_v2 = vrot.slane %v3932_v3, 5  ;;  %v3938_v62 = vrot.slane %v3936_v42, 4  ;;  %v10893_v60 = vcombine.low %v3887_v53, %v3897_v45  ;;  %v10897_v32 = vrot.slane %v3918_v29, 5  ;;  %v9633_v12 = vld [vmem:[%s9951_s12 + $0xa0] sm:$0xf] }
  0xdd   : > { %v10901_v55 = vrot.slane %v3905_v26, 4  ;;  %v1449_v41 = vrot.slane %v9632_v57, 5  ;;  %v1456_v3 = vrot.slane %v9633_v12, 5  ;;  %v1325_v42 = vld [vmem:[%s9951_s12 + $0x9c] sm:$0xe]  ;;  %v3949_v53 = vrot.slane %v3947_v9, 4 }
  0xde   : > { %v3952_v45 = vrot.slane %v3950_v5, 5  ;;  %v3962_v29 = vrot.slane %v3960_v37, 4  ;;  %v3939_v26 = vor.u32 %v3938_v62, %v10888_v2  ;;  %v3942_v52 = vshll.u32 %v10875_v19, 16  ;;  %v10914_v57 = vld [vmem:[%s9951_s12 + $0x5c] sm:$0x1] }
  0xdf   : > { %8600 = vmatmul.mubr.msk.bf16.gmra.mrb[16].mxu0 %vm791_vm4, %v9059_v61  ;;  %v3956_v61 = vshll.u32 %v10842_v35, 16  ;;  %v3974_v9 = vshll.u32 %v7864_v28, 16  ;;  %v1971_v5 = vsel %vm840_vm0, %v9071_v24, 0  ;;  %v9635_v62 = vld [vmem:[%s9951_s12 + $0xa4] sm:$0x1] }
  0xe0   : > { %8432 = vmatmul.mubr.msk.bf16.vlgmr.msra.gmra.mrb[0].mxu1 %vm791_vm4, %v13387_v0  ;;  %8603 = vmatprep.mubr.msk.bf16.mxu0 %vm791_vm4, %v9060_v4  ;;  %v3915_v4 = vor.u32 %v3914_v18, %v10839_v15  ;;  %v3929_v18 = vor.u32 %v3928_v6, %v3925_v59  ;;  %v3971_v6 = vshrl.u32 %v7864_v28, 16  ;;  %v1459_v12 = vrot.slane %v9635_v62, 5 }
  0xe1   : > { %8435 = vmatprep.mubr.msk.bf16.mxu1 %vm791_vm4, %v13388_v36  ;;  %8464 = vmatpush3.bf16.msra.mxu1 %v10520_v44  ;;  %v7498_v44 = vrot.slane %v1324_v10, 9  ;;  %v10906_v0 = vrot.slane %v3956_v61, 5  ;;  %v9634_v10 = vld [vmem:[%s9951_s12 + $0x98] sm:$0x1]  ;;  %v1451_v61 = vrot.slane %v1449_v41, 4  ;;  %v1458_v28 = vrot.slane %v1456_v3, 4 }
  0xe2   : > { %8465 = vmatprep.subr.bf16.mxu1 %v9069_v51  ;;  %v10908_v36 = vrot.slane %v3915_v4, 4  ;;  %v1452_v46 = vrot.slane %v9634_v10, 5  ;;  %v3930_v37 = vrot.slane %v3929_v18, 4  ;;  %v7499_v4 = vrot.slane %v1325_v42, 9 }
  0xe3   : > { %v10918_v59 = vsel %vm10217_vm7, %v7498_v44, %v1449_v41  ;;  %v13390_v44 = vcombine.low %v10662_v31, %v10666_v40  ;;  %v3966_v41 = vshll.u32 %v10914_v57, 16  ;;  %v13391_v18 = vcombine.low %v10671_v47, %v10675_v23  ;;  %v10949_v23 = vld [vmem:[%s13282_s2 + $0x50] sm:$0xff]  }
  0xe4   : > { %v3911_v31 = vsel %vm9973_vm3, %v10901_v55, %v10839_v15  ;;  %v3940_v40 = vrot.slane %v3939_v26, 4  ;;  %v3944_v42 = vrot.slane %v3942_v52, 5  ;;  %v3976_v10 = vrot.slane %v3974_v9, 5  ;;  %13392 = vst [vmem:[#allocation14_spill] sm:$0xff] %v10949_v23  ;;  %v9064_v15 = vld [vmem:[%s9951_s12 + $0xb4] sm:$0xff]   ;;  %v9065_v9 = vld [vmem:[%s9951_s12 + $0xc0] sm:$0xff]  }
  0xe5   : > { %8466 = vmatpush3.bf16.msra.mxu1 %v9069_v51  ;;  %v10925_v51 = vld [vmem:[%s9951_s12 + $0x64] sm:$0xf]  ;;  %v3921_v52 = vsel %vm9973_vm3, %v10908_v36, %v10897_v32  ;;  %v10959_v55 = vsel %vm10217_vm7, %v1451_v61, %v1452_v46  ;;  %v3935_v26 = vsel %vm9973_vm3, %v3930_v37, %v10888_v2  ;;  %v10974_v46 = vld [vmem:[%s9951_s12 + $0x68] sm:$0x1] }
  0xe6   : > { %8956 = vmatprep.subr.msk.bf16.mxu1 %vm840_vm0, %v9071_v24  ;;  %13389 = vst [vmem:[#allocation13_spill] sm:$0xff] %v10925_v51  ;;  %v3953_v24 = vor.u32 %v3952_v45, %v3949_v53  ;;  %v1326_v45 = vld [vmem:[%s9951_s12 + $0xa8] sm:$0xe]  ;;  %v3980_v62 = vshll.u32 %v10925_v51, 16  ;;  %v3984_v47 = vshrl.u32 %v10925_v51, 16  ;;  %13393 = vst [vmem:[#allocation15_spill] sm:$0xff] %v10974_v46  ;;  %v3945_v61 = vsel %vm9973_vm3, %v3940_v40, %v3944_v42 }
  0xe7   : > { %8604 = vmatmul.mubr.msk.bf16.gmra.mrb[20].mxu0 %vm791_vm4, %v9061_v14  ;;  %v3963_v14 = vor.u32 %v3962_v29, %v10906_v0  ;;  %v3973_v29 = vrot.slane %v3971_v6, 4  ;;  %v10966_v6 = vsel %vm10217_vm7, %v7499_v4, %v1456_v3  ;;  %v7500_v2 = vrot.slane %v1326_v45, 9  ;;  %v7867_v4 = vld [vmem:[%s9951_s12 + $0x6c] sm:$0xf]  ;;  %v7876_v40 = vld [vmem:[%s9951_s12 + $0x90] sm:$0xf] }
  0xe8   : > { %8436 = vmatmul.mubr.msk.bf16.gmra.mrb[4].mxu1 %vm791_vm4, %v13390_v44  ;;  %8607 = vmatprep.mubr.msk.bf16.mxu0 %vm791_vm4, %v9063_v13  ;;  %v9636_v13 = vld [vmem:[%s9951_s12 + $0xac] sm:$0xf]  ;;  %v3954_v32 = vrot.slane %v3953_v24, 4  ;;  %v3968_v44 = vrot.slane %v3966_v41, 5  ;;  %v10980_v7 = vrot.slane %v3980_v62, 5  ;;  %v3986_v25 = vrot.slane %v3984_v47, 4 }
  0xe9   : > { %8439 = vmatprep.mubr.msk.bf16.mxu1 %vm791_vm4, %v13391_v18  ;;  %v1463_v53 = vrot.slane %v9636_v13, 5  ;;  %8468 = vmatpush3.bf16.msra.mxu1 %v1971_v5  ;;  %v10971_v5 = vsel %vm10217_vm7, %v1458_v28, %v1459_v12  ;;  %v3964_v36 = vrot.slane %v3963_v14, 4  ;;  %v9638_v18 = vld [vmem:[%s9951_s12 + $0xb0] sm:$0x1]  ;;  %v3977_v13 = vor.u32 %v3976_v10, %v3973_v29  ;;  %v1327_v12 = vld [vmem:[%s9951_s12 + $0xb4] sm:$0xe] }
  0xea   : > { %8691 = vmatprep.subr.bf16.mxu1 %v10949_v23  ;;  %v1466_v3 = vrot.slane %v9638_v18, 5  ;;  %v9639_v28 = vld [vmem:[%s9951_s12 + $0xb8] sm:$0xf]  ;;  %v10985_v14 = vcombine.low %v3911_v31, %v3921_v52  ;;  %v3990_v42 = vshll.u32 %v10974_v46, 16  ;;  %v13394_v45 = vcombine.low %v10679_v11, %v10683_v56  ;;  %v11003_v10 = vld [vmem:[%s9951_s12 + $0x70] sm:$0xf] }
  0xeb   : > { %v1465_v37 = vrot.slane %v1463_v53, 4  ;;  %v1470_v24 = vrot.slane %v9639_v28, 5  ;;  %v3959_v31 = vsel %vm9973_vm3, %v3954_v32, %v10906_v0  ;;  %v3969_v29 = vsel %vm9973_vm3, %v3964_v36, %v3968_v44  ;;  %13395 = vst [vmem:[#allocation16_spill] sm:$0xff] %v11003_v10  ;;  %v11021_v32 = vld [vmem:[%s9951_s12 + $0x7c] sm:$0xf] }
  0xec   : > { %v3995_v62 = vshrl.u32 %v7867_v4, 16  ;;  %v3998_v47 = vshll.u32 %v7867_v4, 16  ;;  %v13396_v11 = vcombine.low %v10695_v39, %v10708_v21  ;;  %v11009_v56 = vcombine.low %v3935_v26, %v3945_v61  ;;  %13397 = vst [vmem:[#allocation17_spill] sm:$0xff] %v11021_v32  ;;  %v9640_v26 = vld [vmem:[%s9951_s12 + $0xbc] sm:$0x1] }
  0xed   : > { %v11017_v0 = vsel %vm10217_vm7, %v1465_v37, %v1466_v3  ;;  %v7501_v52 = vrot.slane %v1327_v12, 9  ;;  %v11023_v36 = vrot.slane %v3977_v13, 4  ;;  %v3987_v39 = vor.u32 %v3986_v25, %v10980_v7  ;;  %v7873_v61 = vld [vmem:[%s9951_s12 + $0x84] sm:$0xf]  ;;  %v11036_v25 = vld [vmem:[%s9951_s12 + $0x88] sm:$0xf] }
  0xee   : > { %v1472_v21 = vrot.slane %v1470_v24, 4  ;;  %v1473_v44 = vrot.slane %v9640_v26, 5  ;;  %v11031_v18 = vrot.slane %v3990_v42, 5  ;;  %v4004_v37 = vshll.u32 %v11003_v10, 16  ;;  %13398 = vst [vmem:[#allocation18_spill] sm:$0xff] %v11036_v25 }
  0xef   : > { %8608 = vmatmul.mubr.msk.bf16.gmra.mrb[24].mxu0 %vm791_vm4, %v9064_v15  ;;  %v11013_v15 = vsel %vm10217_vm7, %v7500_v2, %v1463_v53  ;;  %v9066_v53 = vld [vmem:[%s9951_s12 + $0xcc] sm:$0xff]   ;;  %v11029_v2 = vcombine.low %v3959_v31, %v3969_v29  ;;  %v4008_v3 = vshrl.u32 %v11003_v10, 16  ;;  %v3997_v4 = vrot.slane %v3995_v62, 4 }
  0xf0   : > { %8440 = vmatmul.mubr.msk.bf16.gmra.mrb[8].mxu1 %vm791_vm4, %v13394_v45  ;;  %8611 = vmatprep.mubr.msk.bf16.mxu0 %vm791_vm4, %v9065_v9  ;;  %v7870_v9 = vld [vmem:[%s9951_s12 + $0x78] sm:$0xf]  ;;  %v4000_v13 = vrot.slane %v3998_v47, 5  ;;  %v11039_v45 = vld [vmem:[%s9951_s12 + $0x74] sm:$0x1]  ;;  %v4028_v31 = vshll.u32 %v11021_v32, 16  ;;  %v11051_v47 = vsel %vm10217_vm7, %v7501_v52, %v1470_v24 }
  0xf1   : > { %8443 = vmatprep.mubr.msk.bf16.mxu1 %vm791_vm4, %v13396_v11  ;;  %v4019_v12 = vshrl.u32 %v7870_v9, 16  ;;  %v4022_v28 = vshll.u32 %v7870_v9, 16  ;;  %13399 = vst [vmem:[#allocation19_spill] sm:$0xff] %v11039_v45  ;;  %v4032_v42 = vshrl.u32 %v11021_v32, 16  ;;  %v4043_v29 = vshrl.u32 %v7873_v61, 16 }
  0xf2   : > { %v4046_v11 = vshll.u32 %v7873_v61, 16  ;;  %v11047_v62 = vrot.slane %v3987_v39, 4  ;;  %v11055_v9 = vsel %vm10217_vm7, %v1472_v21, %v1473_v44  ;;  %v11059_v61 = vld [vmem:[%s9951_s12 + $0x94] sm:$0xf]  ;;  %v11062_v41 = vrot.slane %v4004_v37, 5 }
  0xf3   : > { %13400 = vst [vmem:[#allocation20_spill] sm:$0xff] %v11059_v61  ;;  %v11064_v26 = vrot.slane %v4008_v3, 4  ;;  %v4052_v39 = vshll.u32 %v11036_v25, 16  ;;  %v4056_v24 = vshrl.u32 %v11036_v25, 16  ;;  %v7879_v52 = vld [vmem:[%s9951_s12 + $0x9c] sm:$0xf]  ;;  %v13401_v21 = vcombine.low %v10699_v34, %v10712_v22 }
  0xf4   : > { %v4001_v44 = vor.u32 %v4000_v13, %v3997_v4  ;;  %v11077_v37 = vld [vmem:[%s9951_s12 + $0x80] sm:$0x1]  ;;  %v4021_v3 = vrot.slane %v4019_v12, 4  ;;  %v4024_v23 = vrot.slane %v4022_v28, 5  ;;  %v13403_v25 = vcombine.low %v10749_v16, %v10756_v63 }
  0xf5   : > { %v11087_v34 = vrot.slane %v4028_v31, 5  ;;  %v4034_v22 = vrot.slane %v4032_v42, 4  ;;  %v11090_v4 = vld [vmem:[%s9951_s12 + $0xa0] sm:$0xf]  ;;  %v4067_v13 = vshrl.u32 %v7876_v40, 16  ;;  %v4070_v12 = vshll.u32 %v7876_v40, 16 }
  0xf6   : > { %13404 = vst [vmem:[#allocation22_spill] sm:$0xff] %v11090_v4  ;;  %v4076_v16 = vshll.u32 %v11059_v61, 16  ;;  %v4080_v63 = vshrl.u32 %v11059_v61, 16  ;;  %v5091_v28 = vld [vmem:[%s11095_s15] sm:$0xff]  ;;  %v11101_v31 = vrot.slane %v4052_v39, 5  ;;  %v4058_v42 = vrot.slane %v4056_v24, 4 }
  0xf7   : > { %8612 = vmatmul.mubr.msk.bf16.gmra.mrb[28].mxu0 %vm791_vm4, %v9066_v53  ;;  %v4014_v53 = vshll.u32 %v11039_v45, 16  ;;  %5179 = vrot.lane.b32.xlu0 %v5091_v28, %s9825_s17  ;;  %v11105_v17 = vrot.slane %v4001_v44, 4  ;;  %v4011_v40 = vor.u32 %v11064_v26, %v11062_v41  ;;  %v4100_v61 = vshll.u32 %v11090_v4, 16  ;;  %v5092_v39 = vld [vmem:[%s11095_s15 + $0x8] sm:$0xff]  ;;  %v11119_v45 = vld [vmem:[%s9951_s12 + $0x98] sm:$0x1] }
  0xf8   : > { %8444 = vmatmul.mubr.msk.bf16.gmra.mrb[12].mxu1 %vm791_vm4, %v13401_v21  ;;  %8621 = vmatprep.mubr.msk.bf16.mxu0 %vm791_vm4, %v10834_v58  ;;  %v4045_v21 = vrot.slane %v4043_v29, 4  ;;  %v4048_v58 = vrot.slane %v4046_v11, 5  ;;  %v4091_v29 = vshrl.u32 %v7879_v52, 16  ;;  %v4094_v11 = vshll.u32 %v7879_v52, 16  ;;  %v9070_v24 = vld [vmem:[%s13282_s2 + $0xa8] sm:$0xff]  }
  0xf9   : > { %8447 = vmatprep.mubr.msk.bf16.mxu1 %vm791_vm4, %v13403_v25  ;;  %v5093_v25 = vld [vmem:[%s11095_s15 + $0x10] sm:$0xff]  ;;  %v4104_v32 = vshrl.u32 %v11090_v4, 16  ;;  %v4025_v52 = vor.u32 %v4024_v23, %v4021_v3  ;;  %v4035_v28 = vor.u32 %v4034_v22, %v11087_v34  ;;  %v4062_v44 = vshll.u32 %v11080_v49, 16 }
  0xfa   : > { %5183 = vrot.lane.b32.xlu1 %v5093_v25, %s9825_s17  ;;  %v4038_v25 = vshll.u32 %v11077_v37, 16  ;;  %v4069_v26 = vrot.slane %v4067_v13, 4  ;;  %v4072_v10 = vrot.slane %v4070_v12, 5  ;;  %v11121_v46 = vrot.slane %v4076_v16, 5  ;;  %v5094_v13 = vld [vmem:[%s11095_s15 + $0x18] sm:$0xff] }
  0xfb   : > { %v4082_v4 = vrot.slane %v4080_v63, 4  ;;  %v4049_v23 = vor.u32 %v4048_v58, %v4045_v21  ;;  %v4059_v3 = vor.u32 %v4058_v42, %v11101_v31  ;;  %v4093_v22 = vrot.slane %v4091_v29, 4  ;;  %v9076_v49 = vld [vmem:[%s13282_s2 + $0xb0] ss:$0 sps:$4 sm:$0x33]   ;;  %5181 = vrot.lane.b32.xlu0 %v5092_v39, %s9825_s17  ;;  %v5095_v42 = vld [vmem:[%s11095_s15 + $0x20] sm:$0xff] }
  0xfc   : > { %v4096_v51 = vrot.slane %v4094_v11, 5  ;;  %v13405_v12 = vcombine.low %v10783_v48, %v10793_v54  ;;  %v11140_v21 = vrot.slane %v4014_v53, 5  ;;  %v11143_v58 = vld [vmem:[%s9951_s12 + $0xa4] sm:$0x1]  ;;  %v11145_v16 = vrot.slane %v4100_v61, 5 }
  0xfd   : > { %v4106_v63 = vrot.slane %v4104_v32, 4  ;;  %v13406_v48 = vcombine.low %v10816_v43, %v10825_v30  ;;  %v11158_v54 = vrot.slane %v4011_v40, 4  ;;  %v11160_v61 = vrot.slane %v4025_v52, 4  ;;  %v7882_v53 = vld [vmem:[%s9951_s12 + $0xa8] sm:$0xf] }
  0xfe   : > { %v4040_v32 = vrot.slane %v4038_v25, 5  ;;  %v4036_v29 = vrot.slane %v4035_v28, 4  ;;  %v4073_v43 = vor.u32 %v4072_v10, %v4069_v26  ;;  %v4083_v30 = vor.u32 %v4082_v4, %v11121_v46  ;;  %v11166_v11 = vld [vmem:[%s9951_s12 + $0xac] sm:$0xf]  ;;  %5185 = vrot.lane.b32.xlu1 %v5094_v13, %s9825_s17  ;;  %v5097_v26 = vld [vmem:[%s11095_s15 + $0x30] sm:$0xff] }
  0xff   : > { %8622 = vmatmul.mubr.msk.bf16.vlgmr.msra.gmra.mrb[0].mxu0 %vm791_vm4, %v10885_v1  ;;  %v3993_v1 = vsel %vm9973_vm3, %v11047_v62, %v11031_v18  ;;  %v4050_v39 = vrot.slane %v4049_v23, 4  ;;  %v4060_v40 = vrot.slane %v4059_v3, 4  ;;  %5187 = vrot.lane.b32.xlu0 %v5095_v42, %s9825_s17  ;;  %v5096_v52 = vld [vmem:[%s11095_s15 + $0x28] sm:$0xff]  ;;  %v4107_v28 = vor.u32 %v4106_v63, %v11145_v16 }
 0x100   : > { %8448 = vmatmul.mubr.msk.bf16.gmra.mrb[16].mxu1 %vm791_vm4, %v13405_v12  ;;  %8654 = vmatpush3.bf16.msra.mxu0 %v10690_v27  ;;  %v4007_v27 = vsel %vm9973_vm3, %v11105_v17, %v11062_v41  ;;  %v4064_v12 = vrot.slane %v4062_v44, 5  ;;  %v4110_v10 = vshll.u32 %v11143_v58, 16  ;;  %v4115_v25 = vshrl.u32 %v7882_v53, 16  ;;  %v5638_v62 = vld [vmem:[%s11095_s15 + $0x48] sm:$0xff]  ;;  %v7939_v41 = vld [vmem:[%s9951_s12 + $0x54] sm:$0xe] }
 0x101   : > { %8451 = vmatprep.mubr.msk.bf16.mxu1 %vm791_vm4, %v13406_v48  ;;  %8625 = vmatprep.mubr.msk.bf16.mxu0 %vm791_vm4, %v10893_v60  ;;  %v4086_v60 = vshll.u32 %v11119_v45, 16  ;;  %v4097_v48 = vor.u32 %v4096_v51, %v4093_v22  ;;  %v4118_v4 = vshll.u32 %v7882_v53, 16  ;;  %v4017_v23 = vsel %vm9973_vm3, %v11158_v54, %v11140_v21 }
 0x102   : > { %8655 = vmatprep.subr.bf16.mxu0 %v9070_v24  ;;  %v4031_v51 = vsel %vm9973_vm3, %v11160_v61, %v11087_v34  ;;  %v4128_v44 = vshrl.u32 %v11166_v11, 16  ;;  %v4074_v3 = vrot.slane %v4073_v43, 4  ;;  %v4084_v22 = vrot.slane %v4083_v30, 4  ;;  %5189 = vrot.lane.b32.xlu1 %v5096_v52, %s9825_s17  ;;  %v11197_v61 = vld [vmem:[%s9951_s12 + $0xb0] sm:$0x1]  ;;  %v5637_v43 = vld [vmem:[%s11095_s15 + $0x40] sm:$0xff] }
 0x103   : > { %v4088_v13 = vrot.slane %v4086_v60, 5  ;;  %v4817_v63 = vsel %vm840_vm0, %v9076_v49, 0  ;;  %v4041_v34 = vsel %vm9973_vm3, %v4036_v29, %v4040_v32  ;;  %v4055_v21 = vsel %vm9973_vm3, %v4050_v39, %v11101_v31  ;;  %5191 = vrot.lane.b32.xlu0 %v5097_v26, %s9825_s17  ;;  %v7885_v39 = vld [vmem:[%s9951_s12 + $0xb4] sm:$0xf] }
 0x104   : > { %8656 = vmatpush3.bf16.msra.mxu0 %v9070_v24  ;;  %v4124_v24 = vshll.u32 %v11166_v11, 16  ;;  %v4065_v42 = vsel %vm9973_vm3, %v4060_v40, %v4064_v12  ;;  %v4098_v54 = vrot.slane %v4097_v48, 4  ;;  %v4108_v31 = vrot.slane %v4107_v28, 4  ;;  %v7938_v40 = vld [vmem:[%s9951_s12 + $0x48] sm:$0xe] }
 0x105   : > { %8962 = vmatprep.subr.msk.bf16.mxu0 %vm840_vm0, %v9076_v49  ;;  %v5098_v49 = vld [vmem:[%s11095_s15 + $0x38] sm:$0xff]  ;;  %v4112_v32 = vrot.slane %v4110_v10, 5  ;;  %v4117_v53 = vrot.slane %v4115_v25, 4  ;;  %v4120_v29 = vrot.slane %v4118_v4, 5  ;;  %v13408_v30 = vcombine.low %v10918_v59, %v10959_v55 }
 0x106   : > { %v7521_v60 = vcombine.low %v11013_v15, %v11017_v0  ;;  %v13409_v59 = vsel %vm9973_vm3, %v11023_v36, %v10980_v7  ;;  %v4079_v15 = vsel %vm9973_vm3, %v4074_v3, %v11121_v46  ;;  %v4089_v0 = vsel %vm9973_vm3, %v4084_v22, %v4088_v13  ;;  %v11239_v48 = vld [vmem:[%s9951_s12 + $0xb8] sm:$0xf]  ;;  %5193 = vrot.lane.b32.xlu1 %v5098_v49, %s9825_s17 }
 0x107   : > { %8626 = vmatmul.mubr.msk.bf16.gmra.mrb[4].mxu0 %vm791_vm4, %v10985_v14  ;;  %v13407_v14 = vcombine.low %v10856_v38, %v10860_v50  ;;  %v7522_v38 = vcombine.low %v11051_v47, %v11055_v9  ;;  %v11216_v50 = vrot.slane %v4124_v24, 5  ;;  %v7905_v55 = vcombine.low %v13409_v59, %v3993_v1  ;;  %5725 = vrot.lane.b32.xlu0 %v5637_v43, %s9825_s17  ;;  %v6181_v47 = vld [vmem:[%s11095_s15 + $0x80] sm:$0xff] }
 0x108   : > { %8629 = vmatprep.mubr.msk.bf16.mxu0 %vm791_vm4, %v11009_v56  ;;  %8658 = vmatpush3.bf16.msra.mxu0 %v4817_v63  ;;  %v11218_v56 = vrot.slane %v4128_v44, 4  ;;  %v4134_v12 = vshll.u32 %v11197_v61, 16  ;;  %v11247_v7 = vcombine.low %v4007_v27, %v4017_v23  ;;  %v11249_v36 = vcombine.low %v4031_v51, %v4041_v34  ;;  %v5639_v27 = vld [vmem:[%s11095_s15 + $0x50] sm:$0xff]  ;;  %v7940_v44 = vld [vmem:[%s9951_s12 + $0x60] sm:$0xe] }
 0x109   : > { %8452 = vmatmul.mubr.msk.bf16.gmra.mrb[20].mxu1 %vm791_vm4, %v13407_v14  ;;  %v11251_v46 = vcombine.low %v4055_v21, %v4065_v42  ;;  %v4103_v18 = vsel %vm9973_vm3, %v4098_v54, %v11145_v16  ;;  %v4113_v1 = vsel %vm9973_vm3, %v4108_v31, %v4112_v32  ;;  %v4121_v52 = vor.u32 %v4120_v29, %v4117_v53  ;;  %v7941_v34 = vld [vmem:[%s9951_s12 + $0x6c] sm:$0xe]  ;;  %v5641_v42 = vld [vmem:[%s11095_s15 + $0x60] sm:$0xff]  ;;  %v11305_v14 = vld [vmem:[%s9951_s12 + $0xbc] sm:$0x1] }
 0x10a   : > { %8455 = vmatprep.mubr.msk.bf16.mxu1 %vm791_vm4, %v13408_v30  ;;  %v4139_v28 = vshrl.u32 %v7885_v39, 16  ;;  %v7954_v17 = vrot.slane %v7938_v40, 9  ;;  %v11262_v10 = vcombine.low %v4079_v15, %v4089_v0  ;;  %v4131_v25 = vor.u32 %v11218_v56, %v11216_v50  ;;  %5727 = vrot.lane.b32.xlu1 %v5638_v62, %s9825_s17  ;;  %v13411_v32 = vld [vmem:[#allocation13_spill] sm:$0xff]  ;;  %v13412_v29 = vld [vmem:[#allocation15_spill] sm:$0xff]  ;;  %v13413_v40 = vld [vmem:[#allocation16_spill] sm:$0xff] }
 0x10b   : > { %v4142_v16 = vshll.u32 %v7885_v39, 16  ;;  %v4148_v4 = vshll.u32 %v11239_v48, 16  ;;  %v11267_v26 = vrot.slane %v4134_v12, 5  ;;  %v4152_v23 = vshrl.u32 %v11239_v48, 16  ;;  %5729 = vrot.lane.b32.xlu0 %v5639_v27, %s9825_s17  ;;  %v5642_v0 = vld [vmem:[%s11095_s15 + $0x68] sm:$0xff] }
 0x10c   : > { %v4617_v51 = vrot.slane %v10831_v8, 5  ;;  %v4620_v24 = vrot.slane %v10875_v19, 5  ;;  %v11276_v3 = vcombine.low %v4103_v18, %v4113_v1  ;;  %v7955_v22 = vrot.slane %v7939_v41, 9  ;;  %v5640_v8 = vld [vmem:[%s11095_s15 + $0x58] sm:$0xff]  ;;  %v11328_v18 = vld [vmem:[%s9951_s12 + $0xc4] sm:$0xf] }
 0x10d   : > { %v4624_v13 = vrot.slane %v10842_v35, 5  ;;  %v4627_v63 = vrot.slane %v10914_v57, 5  ;;  %v13410_v19 = vcombine.low %v10966_v6, %v10971_v5  ;;  %v11290_v21 = vrot.slane %v4139_v28, 4  ;;  %v5643_v28 = vld [vmem:[%s11095_s15 + $0x70] sm:$0xff] }
 0x10e   : > { %v11294_v35 = vsel %vm10217_vm7, %v7954_v17, %v4617_v51  ;;  %v4619_v57 = vrot.slane %v4617_v51, 4  ;;  %v11298_v54 = vrot.slane %v4142_v16, 5  ;;  %v7956_v49 = vrot.slane %v7940_v44, 9  ;;  %5731 = vrot.lane.b32.xlu1 %v5640_v8, %s9825_s17  ;;  %v9072_v17 = vld [vmem:[%s9951_s12 + $0xc] sm:$0xff]   ;;  %v7942_v51 = vld [vmem:[%s9951_s12 + $0x78] sm:$0xe] }
 0x10f   : > { %8630 = vmatmul.mubr.msk.bf16.gmra.mrb[8].mxu0 %vm791_vm4, %v11029_v2  ;;  %v11288_v2 = vrot.slane %v4121_v52, 4  ;;  %v11302_v6 = vsel %vm10217_vm7, %v7955_v22, %v4624_v13  ;;  %v4626_v5 = vrot.slane %v4624_v13, 4  ;;  %v4631_v53 = vrot.slane %v13411_v32, 5  ;;  %5733 = vrot.lane.b32.xlu0 %v5641_v42, %s9825_s17  ;;  %v7641_v22 = vld [vmem:[%s9951_s12 + $0x78] sm:$0xf] }
 0x110   : > { %8633 = vmatprep.mubr.msk.bf16.mxu0 %vm791_vm4, %v7905_v55  ;;  %v11309_v31 = vsel %vm10217_vm7, %v4619_v57, %v4620_v24  ;;  %v4634_v43 = vrot.slane %v13412_v29, 5  ;;  %v7957_v30 = vrot.slane %v7941_v34, 9  ;;  %v4638_v59 = vrot.slane %v13413_v40, 5  ;;  %v13414_v55 = vld [vmem:[#allocation19_spill] sm:$0xff]  ;;  %v5644_v8 = vld [vmem:[%s11095_s15 + $0x78] sm:$0xff] }
 0x111   : > { %8456 = vmatmul.mubr.msk.bf16.gmra.mrb[24].mxu1 %vm791_vm4, %v13410_v19  ;;  %v7975_v56 = vcombine.low %v11294_v35, %v11309_v31  ;;  %v11319_v39 = vsel %vm10217_vm7, %v4626_v5, %v4627_v63  ;;  %v4641_v15 = vrot.slane %v13414_v55, 5  ;;  %v11325_v12 = vrot.slane %v4131_v25, 4  ;;  %v7943_v42 = vld [vmem:[%s9951_s12 + $0x84] sm:$0xe]  ;;  %v11400_v40 = vld [vmem:[%s9951_s12 + $0xd0] sm:$0xf] }
 0x112   : > { %8459 = vmatprep.mubr.msk.bf16.mxu1 %vm791_vm4, %v7521_v60  ;;  %v7888_v60 = vld [vmem:[%s9951_s12 + $0xc0] sm:$0xf]  ;;  %v7976_v62 = vcombine.low %v11302_v6, %v11319_v39  ;;  %v11334_v1 = vsel %vm10217_vm7, %v7956_v49, %v4631_v53  ;;  %v4633_v52 = vrot.slane %v4631_v53, 4  ;;  %v11338_v41 = vrot.slane %v4148_v4, 5  ;;  %5735 = vrot.lane.b32.xlu1 %v5642_v0, %s9825_s17  ;;  %v7891_v53 = vld [vmem:[%s9951_s12 + $0xcc] sm:$0xf] }
 0x113   : > { %v11340_v27 = vrot.slane %v4152_v23, 4  ;;  %v11344_v25 = vsel %vm10217_vm7, %v7957_v30, %v4638_v59  ;;  %v4640_v16 = vrot.slane %v4638_v59, 4  ;;  %v4127_v24 = vsel %vm9973_vm3, %v11288_v2, %v11216_v50  ;;  %5737 = vrot.lane.b32.xlu0 %v5643_v28, %s9825_s17  ;;  %v13417_v30 = vld [vmem:[#allocation12_spill] sm:$0xff]  ;;  %v6182_v0 = vld [vmem:[%s11095_s15 + $0x88] sm:$0xff]  ;;  %v9655_v39 = vld [vmem:[%s9951_s12 + $0xa0] sm:$0xf] }
 0x114   : > { %v4145_v44 = vor.u32 %v11298_v54, %v11290_v21  ;;  %v4158_v4 = vshll.u32 %v11305_v14, 16  ;;  %v11356_v23 = vsel %vm10217_vm7, %v4633_v52, %v4634_v43  ;;  %v4163_v13 = vshrl.u32 %v7888_v60, 16  ;;  %v13416_v43 = vld [vmem:[#allocation11_spill] sm:$0xff] }
 0x115   : > { %v4166_v63 = vshll.u32 %v7888_v60, 16  ;;  %v7977_v50 = vcombine.low %v11334_v1, %v11356_v23  ;;  %v11366_v34 = vsel %vm10217_vm7, %v4640_v16, %v4641_v15  ;;  %v4172_v19 = vshll.u32 %v11328_v18, 16 }
 0x116   : > { %v7978_v2 = vcombine.low %v11344_v25, %v11366_v34  ;;  %v7958_v57 = vrot.slane %v7942_v51, 9  ;;  %v4176_v9 = vshrl.u32 %v11328_v18, 16  ;;  %v4648_v5 = vrot.slane %v11077_v37, 5  ;;  %5739 = vrot.lane.b32.xlu1 %v5644_v8, %s9825_s17  ;;  %v6183_v51 = vld [vmem:[%s11095_s15 + $0x90] sm:$0xff]  ;;  %v9659_v34 = vld [vmem:[%s9951_s12 + $0xac] sm:$0xf] }
 0x117   : > { %8634 = vmatmul.mubr.msk.bf16.gmra.mrb[12].mxu0 %vm791_vm4, %v11247_v7  ;;  %v4137_v7 = vsel %vm9973_vm3, %v11325_v12, %v11267_v26  ;;  %v2431_v26 = vshrl.u32 %v7641_v22, 16  ;;  %v4155_v49 = vor.u32 %v11340_v27, %v11338_v41  ;;  %v11391_v32 = vrot.slane %v4158_v4, 5  ;;  %6269 = vrot.lane.b32.xlu0 %v6181_v47, %s9825_s17  ;;  %v9073_v12 = vld [vmem:[%s9951_s12 + $0x18] sm:$0xff]   ;;  %v13418_v27 = vld [vmem:[#allocation18_spill] sm:$0xff]  ;;  %v13419_v47 = vld [vmem:[#allocation21_spill] sm:$0xff] }
 0x118   : > { %8637 = vmatprep.mubr.msk.bf16.mxu0 %vm791_vm4, %v11249_v36  ;;  %v2434_v29 = vshll.u32 %v7641_v22, 16  ;;  %v2453_v60 = vsel %vm9973_vm3, %v13417_v30, %v13416_v43  ;;  %v7959_v15 = vrot.slane %v7943_v42, 9  ;;  %v4165_v52 = vrot.slane %v4163_v13, 4  ;;  %v9074_v4 = vld [vmem:[%s9951_s12 + $0x24] sm:$0xff]  }
 0x119   : > { %8460 = vmatmul.mubr.msk.bf16.gmra.mrb[28].mxu1 %vm791_vm4, %v7522_v38  ;;  %v13415_v38 = vld [vmem:[#allocation17_spill] sm:$0xff]  ;;  %v2433_v55 = vrot.slane %v2431_v26, 4  ;;  %v4168_v28 = vrot.slane %v4166_v63, 5  ;;  %v4652_v16 = vrot.slane %v13418_v27, 5  ;;  %v11413_v22 = vld [vmem:[%s9951_s12 + $0xc8] sm:$0x1] }
 0x11a   : > { %8469 = vmatprep.mubr.msk.bf16.mxu1 %vm791_vm4, %v9072_v17  ;;  %v4645_v36 = vrot.slane %v13415_v38, 5  ;;  %v2436_v17 = vrot.slane %v2434_v29, 5  ;;  %v11415_v8 = vrot.slane %v4172_v19, 5  ;;  %v4655_v38 = vrot.slane %v13419_v47, 5  ;;  %v7944_v29 = vld [vmem:[%s9951_s12 + $0x90] sm:$0xe]  ;;  %6271 = vrot.lane.b32.xlu1 %v6182_v0, %s9825_s17 }
 0x11b   : > { %v4187_v13 = vshrl.u32 %v7891_v53, 16  ;;  %v4190_v19 = vshll.u32 %v7891_v53, 16  ;;  %6273 = vrot.lane.b32.xlu0 %v6183_v51, %s9825_s17  ;;  %v4169_v43 = vor.u32 %v4168_v28, %v4165_v52  ;;  %v4182_v30 = vshll.u32 %v11413_v22, 16  ;;  %v9641_v27 = vld [vmem:[%s13282_s2 + $0x58] sm:$0xff]   ;;  %v6186_v47 = vld [vmem:[%s11095_s15 + $0xa8] sm:$0xff] }
 0x11c   : > { %v11404_v37 = vsel %vm10217_vm7, %v7958_v57, %v4645_v36  ;;  %v4647_v59 = vrot.slane %v4645_v36, 4  ;;  %v4178_v57 = vrot.slane %v4176_v9, 4  ;;  %v11422_v36 = vcombine.low %v4127_v24, %v4137_v7  ;;  %v6184_v7 = vld [vmem:[%s11095_s15 + $0x98] sm:$0xff] }
 0x11d   : > { %v2437_v26 = vor.u32 %v2436_v17, %v2433_v55  ;;  %v4196_v9 = vshll.u32 %v11400_v40, 16  ;;  %v4654_v24 = vrot.slane %v4652_v16, 4  ;;  %v4146_v28 = vrot.slane %v4145_v44, 4 }
 0x11e   : > { %v11419_v42 = vsel %vm10217_vm7, %v4647_v59, %v4648_v5  ;;  %v11433_v5 = vsel %vm10217_vm7, %v7959_v15, %v4652_v16  ;;  %v6185_v59 = vld [vmem:[%s11095_s15 + $0xa0] sm:$0xff]  ;;  %v4179_v55 = vor.u32 %v4178_v57, %v11415_v8  ;;  %v13420_v15 = vld [vmem:[#allocation14_spill] sm:$0xff]  ;;  %v4156_v17 = vrot.slane %v4155_v49, 4  ;;  %6275 = vrot.lane.b32.xlu1 %v6184_v7, %s9825_s17  ;;  %v9075_v57 = vld [vmem:[%s9951_s12 + $0x30] sm:$0xff]  }
 0x11f   : > { %v7979_v63 = vcombine.low %v11404_v37, %v11419_v42  ;;  %8638 = vmatmul.mubr.msk.bf16.gmra.mrb[16].mxu0 %vm791_vm4, %v11251_v46  ;;  %v4200_v46 = vshrl.u32 %v11400_v40, 16  ;;  %v2438_v53 = vrot.slane %v2437_v26, 4  ;;  %v11448_v0 = vsel %vm10217_vm7, %v4654_v24, %v4655_v38  ;;  %v13422_v16 = vld [vmem:[#allocation10_spill] sm:$0xff]  ;;  %6277 = vrot.lane.b32.xlu0 %v6185_v59, %s9825_s17  ;;  %v11471_v38 = vld [vmem:[%s9951_s12 + $0xd4] sm:$0x1] }
 0x120   : > { %8641 = vmatprep.mubr.msk.bf16.mxu0 %vm791_vm4, %v11262_v10  ;;  %v7960_v10 = vrot.slane %v7944_v29, 9  ;;  %v4189_v21 = vrot.slane %v4187_v13, 4  ;;  %v4192_v54 = vrot.slane %v4190_v19, 5  ;;  %v11464_v44 = vrot.slane %v4196_v9, 5  ;;  %v6187_v13 = vld [vmem:[%s11095_s15 + $0xb0] sm:$0xff]  ;;  %v9077_v19 = vld [vmem:[%s9951_s12 + $0x3c] sm:$0xff]  }
 0x121   : > { %8470 = vmatmul.mubr.msk.bf16.vlgmr.msra.gmra.mrb[0].mxu1 %vm791_vm4, %v9073_v12  ;;  %v13421_v12 = vld [vmem:[#allocation20_spill] sm:$0xff]  ;;  %v2443_v51 = vsel %vm9973_vm3, %v2438_v53, %v13422_v16  ;;  %v4202_v26 = vrot.slane %v4200_v46, 4  ;;  %v4662_v7 = vrot.slane %v11119_v45, 5  ;;  %v4170_v9 = vrot.slane %v4169_v43, 4 }
 0x122   : > { %8473 = vmatprep.mubr.msk.bf16.mxu1 %vm791_vm4, %v9074_v4  ;;  %8694 = vmatpush3.bf16.msra.mxu1 %v13420_v15  ;;  %v4659_v52 = vrot.slane %v13421_v12, 5  ;;  %v7980_v4 = vcombine.low %v11433_v5, %v11448_v0  ;;  %v11466_v49 = vcombine.low %v2443_v51, %v2453_v60  ;;  %v4180_v53 = vrot.slane %v4179_v55, 4  ;;  %v7945_v15 = vld [vmem:[%s9951_s12 + $0x9c] sm:$0xe]  ;;  %v7934_v12 = vld [vmem:[%s9951_s12 + $0x18] sm:$0xe] }
 0x123   : > { %8692 = vmatprep.subr.bf16.mxu1 %v9641_v27  ;;  %v4184_v60 = vrot.slane %v4182_v30, 5  ;;  %v9642_v46 = vld [vmem:[%s13282_s2 + $0x60] ss:$0 sps:$4 sm:$0x33]   ;;  %6279 = vrot.lane.b32.xlu1 %v6186_v47, %s9825_s17  ;;  %v4151_v45 = vsel %vm9973_vm3, %v4146_v28, %v11338_v41  ;;  %v4161_v43 = vsel %vm9973_vm3, %v4156_v17, %v11391_v32  ;;  %v4206_v30 = vshll.u32 %v11471_v38, 16  ;;  %v13423_v32 = vld [vmem:[#allocation22_spill] sm:$0xff] }
 0x124   : > { %v11475_v29 = vsel %vm10217_vm7, %v7960_v10, %v4659_v52  ;;  %v4661_v24 = vrot.slane %v4659_v52, 4  ;;  %6281 = vrot.lane.b32.xlu0 %v6187_v13, %s9825_s17  ;;  %v6188_v10 = vld [vmem:[%s11095_s15 + $0xb8] sm:$0xff]  ;;  %v4203_v41 = vor.u32 %v4202_v26, %v11464_v44  ;;  %v7961_v52 = vrot.slane %v7945_v15, 9  ;;  %v6725_v17 = vld [vmem:[%s11095_s15 + $0xc0] sm:$0xff]  ;;  %v9078_v13 = vld [vmem:[%s9951_s12 + $0x48] sm:$0xff]  }
 0x125   : > { %v4666_v28 = vrot.slane %v13423_v32, 5  ;;  %v4185_v16 = vsel %vm9973_vm3, %v4180_v53, %v4184_v60  ;;  %v4208_v26 = vrot.slane %v4206_v30, 5  ;;  %v7946_v60 = vld [vmem:[%s9951_s12 + $0xa8] sm:$0xe]  ;;  %v6727_v15 = vld [vmem:[%s11095_s15 + $0xd0] sm:$0xff]  ;;  %v6728_v32 = vld [vmem:[%s11095_s15 + $0xd8] sm:$0xff] }
 0x126   : > { %8695 = vmatpush3.bf16.msra.mxu1 %v9641_v27  ;;  %v11487_v59 = vsel %vm10217_vm7, %v4661_v24, %v4662_v7  ;;  %v4175_v27 = vsel %vm9973_vm3, %v4170_v9, %v11415_v8  ;;  %v7912_v8 = vcombine.low %v4151_v45, %v4161_v43  ;;  %v7950_v24 = vrot.slane %v7934_v12, 9  ;;  %v6726_v7 = vld [vmem:[%s11095_s15 + $0xc8] sm:$0xff]  ;;  %v9644_v45 = vld [vmem:[%s9951_s12 + $0x20] sm:$0x1] }
 0x127   : > { %8958 = vmatprep.subr.msk.bf16.mxu1 %vm840_vm0, %v9642_v46  ;;  %8642 = vmatmul.mubr.msk.bf16.gmra.mrb[20].mxu0 %vm791_vm4, %v11276_v3  ;;  %v7981_v55 = vcombine.low %v11475_v29, %v11487_v59  ;;  %v4193_v3 = vor.u32 %v4192_v54, %v4189_v21  ;;  %v4669_v21 = vrot.slane %v11143_v58, 5  ;;  %v11521_v54 = vsel %vm10217_vm7, %v7961_v52, %v4666_v28  ;;  %v9079_v46 = vld [vmem:[%s9951_s12 + $0x54] sm:$0xff]  }
 0x128   : > { %8645 = vmatprep.mubr.msk.bf16.mxu0 %vm791_vm4, %v11422_v36  ;;  %v9643_v36 = vld [vmem:[%s9951_s12 + $0x1c] sm:$0xf]  ;;  %v4668_v47 = vrot.slane %v4666_v28, 4  ;;  %6283 = vrot.lane.b32.xlu1 %v6188_v10, %s9825_s17  ;;  %v4204_v58 = vrot.slane %v4203_v41, 4  ;;  %v4592_v43 = vrot.slane %v9644_v45, 5  ;;  %v7962_v41 = vrot.slane %v7946_v60, 9 }
 0x129   : > { %8474 = vmatmul.mubr.msk.bf16.gmra.mrb[4].mxu1 %vm791_vm4, %v9075_v57  ;;  %v4589_v51 = vrot.slane %v9643_v36, 5  ;;  %v13424_v57 = vld [vmem:[#allocation9_spill] sm:$0xff]  ;;  %6813 = vrot.lane.b32.xlu0 %v6725_v17, %s9825_s17  ;;  %v4194_v9 = vrot.slane %v4193_v3, 4  ;;  %v4673_v12 = vrot.slane %v11166_v11, 5  ;;  %v4676_v52 = vrot.slane %v11197_v61, 5 }
 0x12a   : > { %8477 = vmatprep.mubr.msk.bf16.mxu1 %vm791_vm4, %v9077_v19  ;;  %8696 = vmatpush3.bf16.msra.mxu1 %v13424_v57  ;;  %v7913_v19 = vcombine.low %v4175_v27, %v4185_v16  ;;  %v11529_v53 = vsel %vm10217_vm7, %v4668_v47, %v4669_v21  ;;  %v7935_v3 = vld [vmem:[%s9951_s12 + $0x24] sm:$0xe]  ;;  %v4209_v17 = vsel %vm9973_vm3, %v4204_v58, %v4208_v26  ;;  %v9645_v61 = vld [vmem:[%s9951_s12 + $0x28] sm:$0xf]  ;;  %v7947_v16 = vld [vmem:[%s9951_s12 + $0xb4] sm:$0xe] }
 0x12b   : > { %v4591_v10 = vrot.slane %v4589_v51, 4  ;;  %v7982_v30 = vcombine.low %v11521_v54, %v11529_v53  ;;  %v4199_v28 = vsel %vm9973_vm3, %v4194_v9, %v11464_v44  ;;  %v4590_v11 = vsel %vm10217_vm7, %v7950_v24, %v4589_v51  ;;  %v6729_v36 = vld [vmem:[%s11095_s15 + $0xe0] sm:$0xff]  ;;  %v9646_v21 = vld [vmem:[%s9951_s12 + $0x34] sm:$0xf]  ;;  %v7936_v26 = vld [vmem:[%s9951_s12 + $0x30] sm:$0xe] }
 0x12c   : > { %6815 = vrot.lane.b32.xlu1 %v6726_v7, %s9825_s17  ;;  %v4596_v27 = vrot.slane %v9645_v61, 5  ;;  %v4603_v44 = vrot.slane %v9646_v21, 5  ;;  %v11562_v47 = vsel %vm10217_vm7, %v7962_v41, %v4673_v12  ;;  %v7951_v51 = vrot.slane %v7935_v3, 9  ;;  %v9647_v7 = vld [vmem:[%s9951_s12 + $0x2c] sm:$0x1]  ;;  %v9080_v60 = vld [vmem:[%s9951_s12 + $0x60] sm:$0xff]  }
 0x12d   : > { %6817 = vrot.lane.b32.xlu0 %v6727_v15, %s9825_s17  ;;  %v4593_v57 = vsel %vm10217_vm7, %v4591_v10, %v4592_v43  ;;  %v7914_v24 = vcombine.low %v4199_v28, %v4209_v17  ;;  %v7963_v9 = vrot.slane %v7947_v16, 9  ;;  %v6730_v58 = vld [vmem:[%s11095_s15 + $0xe8] sm:$0xff]  ;;  %v4680_v45 = vrot.slane %v11239_v48, 5  ;;  %v6731_v43 = vld [vmem:[%s11095_s15 + $0xf0] sm:$0xff]  ;;  %v7937_v61 = vld [vmem:[%s9951_s12 + $0x3c] sm:$0xe] }
 0x12e   : > { %v7971_v15 = vcombine.low %v4590_v11, %v4593_v57  ;;  %v9081_v3 = vld [vmem:[%s9951_s12 + $0x6c] sm:$0xff]   ;;  %v7952_v41 = vrot.slane %v7936_v26, 9  ;;  %v4683_v28 = vrot.slane %v11305_v14, 5  ;;  %v9649_v48 = vld [vmem:[%s9951_s12 + $0x40] sm:$0xf]  ;;  %v6732_v57 = vld [vmem:[%s11095_s15 + $0xf8] sm:$0xff]  ;;  %v4597_v14 = vsel %vm10217_vm7, %v7951_v51, %v4596_v27 }
 0x12f   : > { %8646 = vmatmul.mubr.msk.bf16.gmra.mrb[24].mxu0 %vm791_vm4, %v7912_v8  ;;  %v4675_v8 = vrot.slane %v4673_v12, 4  ;;  %v4605_v12 = vrot.slane %v4603_v44, 4  ;;  %v11583_v17 = vsel %vm10217_vm7, %v7963_v9, %v4680_v45  ;;  %v4682_v11 = vrot.slane %v4680_v45, 4  ;;  %v9082_v45 = vld [vmem:[%s9951_s12 + $0x78] sm:$0xff]   ;;  %v9664_v54 = vld [vmem:[%s9951_s12 + $0xc8] sm:$0x1] }
 0x130   : > { %8649 = vmatprep.mubr.msk.bf16.mxu0 %vm791_vm4, %v7913_v19  ;;  %6819 = vrot.lane.b32.xlu1 %v6728_v32, %s9825_s17  ;;  %v4610_v16 = vrot.slane %v9649_v48, 5  ;;  %v4604_v26 = vsel %vm10217_vm7, %v7952_v41, %v4603_v44  ;;  %v7953_v51 = vrot.slane %v7937_v61, 9  ;;  %v4690_v44 = vrot.slane %v11413_v22, 5  ;;  %v9083_v41 = vld [vmem:[%s9951_s12 + $0x84] sm:$0xff]   ;;  %v9651_v48 = vld [vmem:[%s9951_s12 + $0x70] sm:$0xf] }
 0x131   : > { %8478 = vmatmul.mubr.msk.bf16.gmra.mrb[8].mxu1 %vm791_vm4, %v9078_v13  ;;  %v4599_v13 = vrot.slane %v9647_v7, 5  ;;  %v11569_v19 = vsel %vm10217_vm7, %v4675_v8, %v4676_v52  ;;  %6821 = vrot.lane.b32.xlu0 %v6729_v36, %s9825_s17  ;;  %v9648_v52 = vld [vmem:[%s9951_s12 + $0x38] sm:$0x1]  ;;  %v7948_v36 = vld [vmem:[%s9951_s12 + $0xc0] sm:$0xe]  ;;  %v11600_v8 = vsel %vm10217_vm7, %v4682_v11, %v4683_v28  ;;  %v2594_v53 = vshll.u32 %v9664_v54, 16 }
 0x132   : > { %8481 = vmatprep.mubr.msk.bf16.mxu1 %vm791_vm4, %v9079_v46  ;;  %v4598_v46 = vrot.slane %v4596_v27, 4  ;;  %v7983_v10 = vcombine.low %v11562_v47, %v11569_v19  ;;  %v4606_v32 = vrot.slane %v9648_v52, 5  ;;  %v7984_v27 = vcombine.low %v11583_v17, %v11600_v8  ;;  %v9650_v7 = vld [vmem:[%s9951_s12 + $0x44] sm:$0x1] }
 0x133   : > { %v7964_v9 = vrot.slane %v7948_v36, 9  ;;  %v4611_v11 = vsel %vm10217_vm7, %v7953_v51, %v4610_v16  ;;  %v2416_v36 = vshll.u32 %v9651_v48, 16 }
 0x134   : > { %6823 = vrot.lane.b32.xlu1 %v6730_v58, %s9825_s17  ;;  %v4600_v21 = vsel %vm10217_vm7, %v4598_v46, %v4599_v13  ;;  %v4613_v13 = vrot.slane %v9650_v7, 5  ;;  %v4687_v46 = vrot.slane %v11328_v18, 5 }
 0x135   : > { %6825 = vrot.lane.b32.xlu0 %v6731_v43, %s9825_s17  ;;  %v7972_v58 = vcombine.low %v4597_v14, %v4600_v21  ;;  %v4694_v14 = vrot.slane %v11400_v40, 5  ;;  %v4697_v21 = vrot.slane %v11471_v38, 5 }
 0x136   : > { %v4689_v52 = vrot.slane %v4687_v46, 4 }
 0x137   : > { %8650 = vmatmul.mubr.msk.bf16.gmra.mrb[28].mxu0 %vm791_vm4, %v7914_v24  ;;  %v4607_v24 = vsel %vm10217_vm7, %v4605_v12, %v4606_v32  ;;  %v11619_v12 = vsel %vm10217_vm7, %v7964_v9, %v4687_v46  ;;  %v4696_v7 = vrot.slane %v4694_v14, 4  ;;  %v9084_v9 = vld [vmem:[%s9951_s12 + $0x90] sm:$0xff]   ;;  %v7644_v46 = vld [vmem:[%s9951_s12 + $0x84] sm:$0xf] }
 0x138   : > { %8659 = vmatprep.mubr.msk.bf16.mxu0 %vm791_vm4, %v7971_v15  ;;  %6827 = vrot.lane.b32.xlu1 %v6732_v57, %s9825_s17  ;;  %v7638_v15 = vld [vmem:[%s9951_s12 + $0x6c] sm:$0xf]  ;;  %v7973_v43 = vcombine.low %v4604_v26, %v4607_v24  ;;  %v11628_v22 = vsel %vm10217_vm7, %v4689_v52, %v4690_v44  ;;  %v2420_v57 = vshrl.u32 %v9651_v48, 16  ;;  %v9653_v52 = vld [vmem:[%s9951_s12 + $0x88] sm:$0xf] }
 0x139   : > { %8482 = vmatmul.mubr.msk.bf16.gmra.mrb[12].mxu1 %vm791_vm4, %v9080_v60  ;;  %v4612_v60 = vrot.slane %v4610_v16, 4  ;;  %v2407_v32 = vshrl.u32 %v7638_v15, 16  ;;  %v2410_v28 = vshll.u32 %v7638_v15, 16  ;;  %v7985_v16 = vcombine.low %v11619_v12, %v11628_v22  ;;  %v9085_v15 = vld [vmem:[%s9951_s12 + $0x9c] sm:$0xff]  }
 0x13a   : > { %8485 = vmatprep.mubr.msk.bf16.mxu1 %vm791_vm4, %v9081_v3  ;;  %v7949_v3 = vld [vmem:[%s9951_s12 + $0xcc] sm:$0xe]  ;;  %v11645_v40 = vsel %vm10217_vm7, %v4696_v7, %v4697_v21 }
 0x13b   : > { %v4614_v18 = vsel %vm10217_vm7, %v4612_v60, %v4613_v13  ;;  %v7965_v61 = vrot.slane %v7949_v3, 9  ;;  %v2409_v26 = vrot.slane %v2407_v32, 4  ;;  %v2412_v24 = vrot.slane %v2410_v28, 5 }
 0x13c   : > { %v7974_v13 = vcombine.low %v4611_v11, %v4614_v18  ;;  %v2422_v60 = vrot.slane %v2420_v57, 4  ;;  %v2455_v3 = vshrl.u32 %v7644_v46, 16  ;;  %v2464_v32 = vshll.u32 %v9653_v52, 16  ;;  %v7647_v18 = vld [vmem:[%s9951_s12 + $0x90] sm:$0xf]  ;;  %v9087_v57 = vld [vmem:[%s9951_s12 + $0xb4] sm:$0xff]  }
 0x13d   : > { %v11640_v51 = vsel %vm10217_vm7, %v7965_v61, %v4694_v14  ;;  %v2413_v44 = vor.u32 %v2412_v24, %v2409_v26  ;;  %v2468_v28 = vshrl.u32 %v9653_v52, 16  ;;  %v9086_v61 = vld [vmem:[%s9951_s12 + $0xa8] sm:$0xff]   ;;  %v2479_v26 = vshrl.u32 %v7647_v18, 16 }
 0x13e   : > { %v7986_v38 = vcombine.low %v11640_v51, %v11645_v40  ;;  %v2457_v31 = vrot.slane %v2455_v3, 4  ;;  %v11664_v14 = vrot.slane %v2464_v32, 5  ;;  %v2482_v24 = vshll.u32 %v7647_v18, 16  ;;  %v9088_v32 = vld [vmem:[%s9951_s12 + $0xc0] sm:$0xff]  }
 0x13f   : > { %8660 = vmatmul.mubr.msk.bf16.vlgmr.msra.gmra.mrb[0].mxu0 %vm791_vm4, %v7972_v58  ;;  %v2418_v58 = vrot.slane %v2416_v36, 5  ;;  %v2414_v11 = vrot.slane %v2413_v44, 4  ;;  %v7650_v36 = vld [vmem:[%s9951_s12 + $0x9c] sm:$0xf]  ;;  %v2470_v21 = vrot.slane %v2468_v28, 4  ;;  %v2512_v44 = vshll.u32 %v9655_v39, 16 }
 0x140   : > { %8663 = vmatprep.mubr.msk.bf16.mxu0 %vm791_vm4, %v7973_v43  ;;  %v2481_v3 = vrot.slane %v2479_v26, 4  ;;  %v2484_v1 = vrot.slane %v2482_v24, 5  ;;  %v9658_v24 = vld [vmem:[%s9951_s12 + $0xa4] sm:$0x1] }
 0x141   : > { %8486 = vmatmul.mubr.msk.bf16.gmra.mrb[16].mxu1 %vm791_vm4, %v9082_v45  ;;  %v2423_v20 = vor.u32 %v2422_v60, %v2418_v58  ;;  %v9652_v45 = vld [vmem:[%s9951_s12 + $0x74] sm:$0x1]  ;;  %v2419_v7 = vsel %vm9973_vm3, %v2414_v11, %v2418_v58  ;;  %v11687_v18 = vrot.slane %v2512_v44, 5 }
 0x142   : > { %8489 = vmatprep.mubr.msk.bf16.mxu1 %vm791_vm4, %v9083_v41  ;;  %v2426_v43 = vshll.u32 %v9652_v45, 16  ;;  %v2458_v41 = vshll.u32 %v7644_v46, 16  ;;  %v2506_v46 = vshll.u32 %v7650_v36, 16  ;;  %v9656_v45 = vld [vmem:[%s9951_s12 + $0x8c] sm:$0x1] }
 0x143   : > { %v2424_v48 = vrot.slane %v2423_v20, 4  ;;  %v2471_v20 = vor.u32 %v2470_v21, %v11664_v14 }
 0x144   : > { %v2428_v35 = vrot.slane %v2426_v43, 5  ;;  %v2474_v43 = vshll.u32 %v9656_v45, 16  ;;  %v2508_v52 = vrot.slane %v2506_v46, 5 }
 0x146   : > { %v2429_v58 = vsel %vm9973_vm3, %v2424_v48, %v2428_v35  ;;  %v7653_v48 = vld [vmem:[%s9951_s12 + $0xa8] sm:$0xf]  ;;  %v2472_v35 = vrot.slane %v2471_v20, 4 }
 0x147   : > { %8664 = vmatmul.mubr.msk.bf16.gmra.mrb[4].mxu0 %vm791_vm4, %v7974_v13  ;;  %v9654_v13 = vld [vmem:[%s9951_s12 + $0x94] sm:$0xf]  ;;  %v7675_v28 = vcombine.low %v2419_v7, %v2429_v58  ;;  %v2522_v7 = vshll.u32 %v9658_v24, 16  ;;  %v2530_v25 = vshll.u32 %v7653_v48, 16 }
 0x148   : > { %8667 = vmatprep.mubr.msk.bf16.mxu0 %vm791_vm4, %v7975_v56  ;;  %v2460_v56 = vrot.slane %v2458_v41, 5  ;;  %v2492_v60 = vshrl.u32 %v9654_v13, 16 }
 0x149   : > { %8490 = vmatmul.mubr.msk.bf16.gmra.mrb[20].mxu1 %vm791_vm4, %v9084_v9  ;;  %v2488_v9 = vshll.u32 %v9654_v13, 16  ;;  %v2527_v13 = vshrl.u32 %v7653_v48, 16  ;;  %v7659_v48 = vld [vmem:[%s9951_s12 + $0xc0] sm:$0xf] }
 0x14a   : > { %8493 = vmatprep.mubr.msk.bf16.mxu1 %vm791_vm4, %v9085_v15  ;;  %v2503_v15 = vshrl.u32 %v7650_v36, 16  ;;  %v2461_v6 = vor.u32 %v2460_v56, %v2457_v31  ;;  %v2476_v31 = vrot.slane %v2474_v43, 5  ;;  %v2485_v56 = vor.u32 %v2484_v1, %v2481_v3  ;;  %v9657_v36 = vld [vmem:[%s9951_s12 + $0x98] sm:$0x1] }
 0x14b   : > { %v11684_v23 = vrot.slane %v2488_v9, 5  ;;  %v7656_v9 = vld [vmem:[%s9951_s12 + $0xb4] sm:$0xf]  ;;  %v2524_v43 = vrot.slane %v2522_v7, 5  ;;  %v2529_v3 = vrot.slane %v2527_v13, 4 }
 0x14c   : > { %v2505_v41 = vrot.slane %v2503_v15, 4  ;;  %v2462_v11 = vrot.slane %v2461_v6, 4  ;;  %v2540_v15 = vshrl.u32 %v9659_v34, 16  ;;  %v2477_v58 = vsel %vm9973_vm3, %v2472_v35, %v2476_v31  ;;  %v9663_v13 = vld [vmem:[%s9951_s12 + $0xbc] sm:$0x1] }
 0x14d   : > { %v2486_v6 = vrot.slane %v2485_v56, 4  ;;  %v2551_v37 = vshrl.u32 %v7656_v9, 16  ;;  %v2554_v42 = vshll.u32 %v7656_v9, 16  ;;  %v2570_v29 = vshll.u32 %v9663_v13, 16 }
 0x14e   : > { %v2509_v26 = vor.u32 %v2508_v52, %v2505_v41  ;;  %v2467_v46 = vsel %vm9973_vm3, %v2462_v11, %v11664_v14  ;;  %v2542_v52 = vrot.slane %v2540_v15, 4 }
 0x14f   : > { %8668 = vmatmul.mubr.msk.bf16.gmra.mrb[8].mxu0 %vm791_vm4, %v7976_v62  ;;  %v2516_v62 = vshrl.u32 %v9655_v39, 16  ;;  %v7677_v14 = vcombine.low %v2467_v46, %v2477_v58  ;;  %v2491_v35 = vsel %vm9973_vm3, %v2486_v6, %v11684_v23 }
 0x150   : > { %8671 = vmatprep.mubr.msk.bf16.mxu0 %vm791_vm4, %v7977_v50  ;;  %v2494_v50 = vrot.slane %v2492_v60, 4  ;;  %v2510_v45 = vrot.slane %v2509_v26, 4 }
 0x151   : > { %8494 = vmatmul.mubr.msk.bf16.gmra.mrb[24].mxu1 %vm791_vm4, %v9086_v61  ;;  %v2518_v61 = vrot.slane %v2516_v62, 4 }
 0x152   : > { %8497 = vmatprep.mubr.msk.bf16.mxu1 %vm791_vm4, %v9087_v57  ;;  %v2498_v57 = vshll.u32 %v9657_v36, 16  ;;  %v2495_v21 = vor.u32 %v2494_v50, %v11684_v23  ;;  %v2532_v50 = vrot.slane %v2530_v25, 5  ;;  %v2515_v56 = vsel %vm9973_vm3, %v2510_v45, %v11687_v18  ;;  %v9661_v23 = vld [vmem:[%s9951_s12 + $0xb0] sm:$0x1] }
 0x153   : > { %v2519_v60 = vor.u32 %v2518_v61, %v11687_v18  ;;  %v2546_v36 = vshll.u32 %v9661_v23, 16  ;;  %v2578_v18 = vshll.u32 %v7659_v48, 16  ;;  %v2596_v45 = vrot.slane %v2594_v53, 5 }
 0x154   : > { %v2500_v39 = vrot.slane %v2498_v57, 5  ;;  %v2496_v20 = vrot.slane %v2495_v21, 4  ;;  %v2533_v0 = vor.u32 %v2532_v50, %v2529_v3  ;;  %v2575_v57 = vshrl.u32 %v7659_v48, 16  ;;  %v9662_v21 = vld [vmem:[%s9951_s12 + $0xc4] sm:$0xf] }
 0x155   : > { %v2520_v1 = vrot.slane %v2519_v60, 4  ;;  %v2584_v26 = vshll.u32 %v9662_v21, 16  ;;  %v2588_v24 = vshrl.u32 %v9662_v21, 16  ;;  %v2548_v25 = vrot.slane %v2546_v36, 5 }
 0x156   : > { %v2501_v31 = vsel %vm9973_vm3, %v2496_v20, %v2500_v39  ;;  %v2534_v9 = vrot.slane %v2533_v0, 4  ;;  %v2572_v39 = vrot.slane %v2570_v29, 5 }
 0x157   : > { %8672 = vmatmul.mubr.msk.bf16.gmra.mrb[12].mxu0 %vm791_vm4, %v7978_v2  ;;  %v2536_v2 = vshll.u32 %v9659_v34, 16  ;;  %v2525_v5 = vsel %vm9973_vm3, %v2520_v1, %v2524_v43  ;;  %v7678_v59 = vcombine.low %v2491_v35, %v2501_v31  ;;  %v2577_v34 = vrot.slane %v2575_v57, 4 }
 0x158   : > { %8675 = vmatprep.mubr.msk.bf16.mxu0 %vm791_vm4, %v7979_v63  ;;  %v9660_v63 = vld [vmem:[%s9951_s12 + $0xb8] sm:$0xf]  ;;  %v2586_v15 = vrot.slane %v2584_v26, 5  ;;  %v2590_v46 = vrot.slane %v2588_v24, 4  ;;  %s13205_s12 = scalar_lea.hbm %s13286_s6, %s8177_s20 }
 0x159   : > { %8498 = vmatmul.mubr.msk.bf16.gmra.mrb[28].mxu1 %vm791_vm4, %v9088_v32  ;;  %v2560_v44 = vshll.u32 %v9660_v63, 16  ;;  %v2564_v62 = vshrl.u32 %v9660_v63, 16  ;;  %v2538_v41 = vrot.slane %v2536_v2, 5  ;;  %v2553_v32 = vrot.slane %v2551_v37, 4 }
 0x15a   : > { %8523 = vmatprep.mubr.msk.bf16.mxu1 %vm791_vm4, %v7675_v28  ;;  %v2556_v28 = vrot.slane %v2554_v42, 5  ;;  %v2580_v2 = vrot.slane %v2578_v18, 5 }
 0x15b   : > { %v2562_v11 = vrot.slane %v2560_v44, 5  ;;  %v2566_v61 = vrot.slane %v2564_v62, 4  ;;  %v2539_v37 = vsel %vm9973_vm3, %v2534_v9, %v2538_v41  ;;  %v2591_v44 = vor.u32 %v2590_v46, %v2586_v15 }
 0x15c   : > { %v2581_v63 = vor.u32 %v2580_v2, %v2577_v34 }
 0x15d   : > { %v2567_v7 = vor.u32 %v2566_v61, %v2562_v11  ;;  %v2592_v20 = vrot.slane %v2591_v44, 4 }
 0x15e   : > { %v2582_v62 = vrot.slane %v2581_v63, 4 }
 0x15f   : > { %8676 = vmatmul.mubr.msk.bf16.gmra.mrb[16].mxu0 %vm791_vm4, %v7980_v4  ;;  %v2543_v4 = vor.u32 %v2542_v52, %v2538_v41  ;;  %v2568_v6 = vrot.slane %v2567_v7, 4  ;;  %v2597_v3 = vsel %vm9973_vm3, %v2592_v20, %v2596_v45 }
 0x160   : > { %8679 = vmatprep.mubr.msk.bf16.mxu0 %vm791_vm4, %v7981_v55  ;;  %v7679_v55 = vcombine.low %v2515_v56, %v2525_v5  ;;  %v2587_v43 = vsel %vm9973_vm3, %v2582_v62, %v2586_v15 }
 0x161   : > { %8524 = vmatmul.mubr.msk.bf16.vlgmr.msra.gmra.mrb[16].mxu1 %vm791_vm4, %v11466_v49  ;;  %v2557_v49 = vor.u32 %v2556_v28, %v2553_v32  ;;  %v2544_v60 = vrot.slane %v2543_v4, 4  ;;  %v2573_v47 = vsel %vm9973_vm3, %v2568_v6, %v2572_v39  ;;  %v7682_v1 = vcombine.low %v2587_v43, %v2597_v3 }
 0x162   : > { %8527 = vmatprep.mubr.msk.bf16.mxu1 %vm791_vm4, %v7677_v14 }
 0x163   : > { %v2558_v58 = vrot.slane %v2557_v49, 4  ;;  %v2549_v42 = vsel %vm9973_vm3, %v2544_v60, %v2548_v25 }
 0x164   : > { %v7680_v19 = vcombine.low %v2539_v37, %v2549_v42 }
 0x167   : > { %8680 = vmatmul.mubr.msk.bf16.gmra.mrb[20].mxu0 %vm791_vm4, %v7982_v30  ;;  %v2563_v30 = vsel %vm9973_vm3, %v2558_v58, %v2562_v11 }
 0x168   : > { %8683 = vmatprep.mubr.msk.bf16.mxu0 %vm791_vm4, %v7983_v10  ;;  %v7681_v10 = vcombine.low %v2563_v30, %v2573_v47 }
 0x169   : > { %8528 = vmatmul.mubr.msk.bf16.gmra.mrb[20].mxu1 %vm791_vm4, %v7678_v59  ;;  %v11820_v3 = vpop.permute.xlu0 %5179 }
 0x16a   : > { %8531 = vmatprep.mubr.msk.bf16.mxu1 %vm791_vm4, %v7679_v55 }
 0x16f   : > { %8684 = vmatmul.mubr.msk.bf16.gmra.mrb[24].mxu0 %vm791_vm4, %v7984_v27 }
 0x170   : > { %8687 = vmatprep.mubr.msk.bf16.mxu0 %vm791_vm4, %v7985_v16 }
 0x171   : > { %8532 = vmatmul.mubr.msk.bf16.gmra.mrb[24].mxu1 %vm791_vm4, %v7680_v19 }
 0x172   : > { %8535 = vmatprep.mubr.msk.bf16.mxu1 %vm791_vm4, %v7681_v10 }
 0x177   : > { %8688 = vmatmul.mubr.msk.bf16.gmra.mrb[28].mxu0 %vm791_vm4, %v7986_v38  ;;  %v11778_v38 = vld [vmem:[%s13284_s4] ss:$0 sm:$0xff] }
 0x179   : > { %8536 = vmatmul.mubr.msk.bf16.gmra.mrb[28].mxu1 %vm791_vm4, %v7682_v1 }
 0x1f4   : > { %v8471_v17 = vpop.f32.mrb[0].mxu1 }
 0x1f5   : > { %v2007_v8 = vpop.f32.mrb[1].mxu1 }
 0x1f6   : > { %v8472_v27 = vpop.f32.mrb[2].mxu1 }
 0x1f7   : > { %v2010_v12 = vpop.f32.mrb[3].mxu1 }
 0x1fc   : > { %v8475_v22 = vpop.f32.mrb[4].mxu1 }
 0x1fd   : > { %v2023_v16 = vpop.f32.mrb[5].mxu1 }
 0x1fe   : > { %v8476_v50 = vpop.f32.mrb[6].mxu1 }
 0x1ff   : > { %v2026_v41 = vpop.f32.mrb[7].mxu1 }
 0x204   : > { %v8479_v52 = vpop.f32.mrb[8].mxu1 }
 0x205   : > { %v2039_v14 = vpop.f32.mrb[9].mxu1 }
 0x206   : > { %v8480_v33 = vpop.f32.mrb[10].mxu1 }
 0x207   : > { %v2042_v32 = vpop.f32.mrb[11].mxu1 }
 0x20c   : > { %v8483_v28 = vpop.f32.mrb[12].mxu1 }
 0x20d   : > { %v2055_v11 = vpop.f32.mrb[13].mxu1 }
 0x20e   : > { %v8484_v61 = vpop.f32.mrb[14].mxu1 }
 0x20f   : > { %v2058_v51 = vpop.f32.mrb[15].mxu1 }
 0x212   : > { %v8661_v40 = vpop.f32.mrb[0].mxu0 }
 0x213   : > { %v8697_v48 = vadd.f32 %v8661_v40, %v8471_v17  ;;  %v4853_v35 = vpop.f32.mrb[1].mxu0  ;;  %v11824_v17 = vpop.permute.xlu1 %5183 }
 0x214   : > { %v8698_v31 = vadd.f32 %v4853_v35, %v2007_v8  ;;  %v8662_v56 = vpop.f32.mrb[2].mxu0  ;;  %v11838_v40 = vpop.permute.xlu0 %5181 }
 0x215   : > { %v11781_v5 = vadd.f32 %v8697_v48, %v11778_v38  ;;  %v8699_v0 = vadd.f32 %v8662_v56, %v8472_v27  ;;  %v4856_v4 = vpop.f32.mrb[3].mxu0 }
 0x216   : > { %v8700_v23 = vadd.f32 %v4856_v4, %v2010_v12  ;;  %v11785_v36 = vadd.f32 %v8698_v31, %v11778_v38 }
 0x217   : > { %9089 = vtanh.f32 %v11781_v5  ;;  %v11788_v57 = vadd.f32 %v8699_v0, %v11778_v38  ;;  %v11844_v35 = vpop.permute.xlu1 %5185 }
 0x218   : > { %v11793_v29 = vadd.f32 %v8700_v23, %v11778_v38 }
 0x219   : > { %9091 = vtanh.f32 %v11788_v57 }
 0x21a   : > { %v8665_v18 = vpop.f32.mrb[4].mxu0  ;;  %9093 = vtanh.f32 %v11785_v36 }
 0x21b   : > { %v8701_v21 = vadd.f32 %v8665_v18, %v8475_v22  ;;  %v4869_v26 = vpop.f32.mrb[5].mxu0  ;;  %9095 = vtanh.f32 %v11793_v29 }
 0x21c   : > { %v8702_v24 = vadd.f32 %v4869_v26, %v2023_v16  ;;  %v8666_v49 = vpop.f32.mrb[6].mxu0 }
 0x21d   : > { %v8703_v7 = vadd.f32 %v8666_v49, %v8476_v50  ;;  %v4872_v13 = vpop.f32.mrb[7].mxu0  ;;  %v11796_v9 = vadd.f32 %v8701_v21, %v11778_v38 }
 0x21e   : > { %v8704_v59 = vadd.f32 %v4872_v13, %v2026_v41  ;;  %v11803_v6 = vadd.f32 %v8702_v24, %v11778_v38 }
 0x21f   : > { %9097 = vtanh.f32 %v11796_v9  ;;  %v11807_v63 = vadd.f32 %v8703_v7, %v11778_v38 }
 0x220   : > { %13425 = vst [vmem:[#allocation13_spill] sm:$0xff] %v11803_v6  ;;  %9099 = vtanh.f32 %v11803_v6  ;;  %v11812_v44 = vadd.f32 %v8704_v59, %v11778_v38 }
 0x221   : > { %v9090_v55 = vpop.eup %9089  ;;  %9101 = vtanh.f32 %v11807_v63 }
 0x222   : > { %v8669_v60 = vpop.f32.mrb[8].mxu0  ;;  %5295 = vrot.lane.b32.xlu0 %v9090_v55, %s9826_s11  ;;  %13426 = vst [vmem:[#allocation15_spill] sm:$0xff] %v11812_v44  ;;  %9103 = vtanh.f32 %v11812_v44 }
 0x223   : > { %v9092_v25 = vpop.eup %9091  ;;  %v4885_v34 = vpop.f32.mrb[9].mxu0  ;;  %v8705_v2 = vadd.f32 %v8669_v60, %v8479_v52 }
 0x224   : > { %v8706_v15 = vadd.f32 %v4885_v34, %v2039_v14  ;;  %v8670_v46 = vpop.f32.mrb[10].mxu0  ;;  %5297 = vrot.lane.b32.xlu1 %v9092_v25, %s9826_s11  ;;  %v9094_v58 = vpop.eup %9093 }
 0x225   : > { %v8707_v39 = vadd.f32 %v8670_v46, %v8480_v33  ;;  %v4888_v37 = vpop.f32.mrb[11].mxu0  ;;  %v9096_v53 = vpop.eup %9095  ;;  %v11816_v62 = vadd.f32 %v8705_v2, %v11778_v38 }
 0x226   : > { %v8708_v42 = vadd.f32 %v4888_v37, %v2042_v32  ;;  %5291 = vrot.lane.b32.xlu0 %v9094_v58, %s9826_s11  ;;  %v11828_v8 = vadd.f32 %v8706_v15, %v11778_v38  ;;  %v11866_v2 = vpop.permute.xlu0 %5187  ;;  %v11869_v15 = vpop.permute.xlu1 %5189 }
 0x227   : > { %13427 = vst [vmem:[#allocation16_spill] sm:$0xff] %v11816_v62  ;;  %9105 = vtanh.f32 %v11816_v62  ;;  %v11832_v33 = vadd.f32 %v8707_v39, %v11778_v38  ;;  %13431 = vst [vmem:[#allocation12_spill] sm:$0xff] %v11869_v15 }
 0x228   : > { %5293 = vrot.lane.b32.xlu1 %v9096_v53, %s9826_s11  ;;  %13428 = vst [vmem:[#allocation19_spill] sm:$0xff] %v11828_v8  ;;  %9107 = vtanh.f32 %v11828_v8  ;;  %v11842_v48 = vadd.f32 %v8708_v42, %v11778_v38 }
 0x229   : > { %v9098_v45 = vpop.eup %9097  ;;  %9109 = vtanh.f32 %v11832_v33 }
 0x22a   : > { %v8673_v54 = vpop.f32.mrb[12].mxu0  ;;  %5303 = vrot.lane.b32.xlu0 %v9098_v45, %s9826_s11  ;;  %v9100_v12 = vpop.eup %9099  ;;  %13429 = vst [vmem:[#allocation17_spill] sm:$0xff] %v11842_v48  ;;  %9111 = vtanh.f32 %v11842_v48 }
 0x22b   : > { %v8709_v30 = vadd.f32 %v8673_v54, %v8483_v28  ;;  %v4901_v47 = vpop.f32.mrb[13].mxu0  ;;  %v9102_v14 = vpop.eup %9101 }
 0x22c   : > { %v8710_v19 = vadd.f32 %v4901_v47, %v2055_v11  ;;  %v8674_v10 = vpop.f32.mrb[14].mxu0  ;;  %5305 = vrot.lane.b32.xlu1 %v9102_v14, %s9826_s11 }
 0x22d   : > { %v4904_v20 = vpop.f32.mrb[15].mxu0  ;;  %v8711_v43 = vadd.f32 %v8674_v10, %v8484_v61  ;;  %v11850_v18 = vadd.f32 %v8709_v30, %v11778_v38 }
 0x22e   : > { %v11822_v1 = vadd.f32 %v4904_v20, %v2058_v51  ;;  %5299 = vrot.lane.b32.xlu0 %v9100_v12, %s9826_s11  ;;  %v9104_v51 = vpop.eup %9103  ;;  %v11864_v34 = vadd.f32 %v8710_v19, %v11778_v38 }
 0x22f   : > { %9113 = vtanh.f32 %v11850_v18  ;;  %v11872_v39 = vadd.f32 %v8711_v43, %v11778_v38 }
 0x230   : > { %5301 = vrot.lane.b32.xlu1 %v9104_v51, %s9826_s11  ;;  %13430 = vst [vmem:[#allocation11_spill] sm:$0xff] %v11864_v34  ;;  %9115 = vtanh.f32 %v11864_v34  ;;  %v11883_v43 = vadd.f32 %v11822_v1, %v11778_v38 }
 0x231   : > { %v9106_v23 = vpop.eup %9105  ;;  %9117 = vtanh.f32 %v11872_v39 }
 0x232   : > { %v8677_v27 = vpop.f32.mrb[16].mxu0  ;;  %5841 = vrot.lane.b32.xlu0 %v9106_v23, %s9826_s11  ;;  %v9108_v25 = vpop.eup %9107  ;;  %13432 = vst [vmem:[#allocation18_spill] sm:$0xff] %v11883_v43  ;;  %9119 = vtanh.f32 %v11883_v43 }
 0x233   : > { %v4917_v16 = vpop.f32.mrb[17].mxu0  ;;  %v9110_v58 = vpop.eup %9109 }
 0x234   : > { %v8525_v22 = vpop.f32.mrb[16].mxu1  ;;  %v8678_v52 = vpop.f32.mrb[18].mxu0  ;;  %5843 = vrot.lane.b32.xlu1 %v9110_v58, %s9826_s11 }
 0x235   : > { %v8713_v50 = vadd.f32 %v8677_v27, %v8525_v22  ;;  %v2816_v41 = vpop.f32.mrb[17].mxu1  ;;  %v4920_v11 = vpop.f32.mrb[19].mxu0 }
 0x236   : > { %v11834_v32 = vadd.f32 %v4917_v16, %v2816_v41  ;;  %v8526_v28 = vpop.f32.mrb[18].mxu1  ;;  %5837 = vrot.lane.b32.xlu0 %v9108_v25, %s9826_s11  ;;  %v9112_v45 = vpop.eup %9111 }
 0x237   : > { %v2819_v61 = vpop.f32.mrb[19].mxu1  ;;  %v11847_v31 = vadd.f32 %v8678_v52, %v8526_v28  ;;  %v11885_v27 = vpop.permute.xlu0 %5191  ;;  %v11893_v41 = vadd.f32 %v8713_v50, %v11778_v38 }
 0x238   : > { %v11854_v24 = vadd.f32 %v4920_v11, %v2819_v61  ;;  %5839 = vrot.lane.b32.xlu1 %v9112_v45, %s9826_s11  ;;  %v11890_v16 = vpop.permute.xlu1 %5193  ;;  %v11904_v50 = vadd.f32 %v11834_v32, %v11778_v38 }
 0x239   : > { %v9114_v22 = vpop.eup %9113  ;;  %9121 = vtanh.f32 %v11893_v41 }
 0x23a   : > { %v8681_v56 = vpop.f32.mrb[20].mxu0  ;;  %5849 = vrot.lane.b32.xlu0 %v9114_v22, %s9826_s11  ;;  %13434 = vst [vmem:[#allocation14_spill] sm:$0xff] %v11904_v50  ;;  %9123 = vtanh.f32 %v11904_v50  ;;  %v11926_v58 = vadd.f32 %v11854_v24, %v11778_v38 }
 0x23b   : > { %v4933_v4 = vpop.f32.mrb[21].mxu0 }
 0x23c   : > { %v8529_v0 = vpop.f32.mrb[20].mxu1  ;;  %v8682_v26 = vpop.f32.mrb[22].mxu0  ;;  %13437 = vst [vmem:[#allocation22_spill] sm:$0xff] %v11926_v58 }
 0x23d   : > { %v2832_v21 = vpop.f32.mrb[21].mxu1  ;;  %v11856_v49 = vadd.f32 %v8681_v56, %v8529_v0  ;;  %v4936_v59 = vpop.f32.mrb[23].mxu0 }
 0x23e   : > { %v11858_v7 = vadd.f32 %v4933_v4, %v2832_v21  ;;  %v8530_v13 = vpop.f32.mrb[22].mxu1  ;;  %v9116_v0 = vpop.eup %9115 }
 0x23f   : > { %v11860_v55 = vadd.f32 %v8682_v26, %v8530_v13  ;;  %v2835_v60 = vpop.f32.mrb[23].mxu1  ;;  %v11899_v4 = vpop.permute.xlu0 %5725  ;;  %5845 = vrot.lane.b32.xlu0 %v9116_v0, %s9826_s11 }
 0x240   : > { %v11876_v30 = vadd.f32 %v4936_v59, %v2835_v60  ;;  %13433 = vst [vmem:[#allocation21_spill] sm:$0xff] %v11899_v4  ;;  %v11909_v26 = vpop.permute.xlu1 %5727  ;;  %v9118_v13 = vpop.eup %9117  ;;  %v11913_v59 = vadd.f32 %v11847_v31, %v11778_v38 }
 0x241   : > { %13435 = vst [vmem:[#allocation20_spill] sm:$0xff] %v11909_v26  ;;  %5851 = vrot.lane.b32.xlu1 %v9118_v13, %s9826_s11  ;;  %v11953_v45 = vadd.f32 %v11860_v55, %v11778_v38  ;;  %v9665_v13 = vld [vmem:[%s11095_s15 + $0x10] sm:$0xff] }
 0x242   : > { %v8685_v46 = vpop.f32.mrb[24].mxu0  ;;  %9125 = vtanh.f32 %v11913_v59 }
 0x243   : > { %v4949_v42 = vpop.f32.mrb[25].mxu0  ;;  %v11921_v32 = vpop.permute.xlu0 %5729  ;;  %9127 = vtanh.f32 %v11926_v58  ;;  %13443 = vst [vmem:[#allocation27_spill] sm:$0xff] %v11953_v45 }
 0x244   : > { %v8533_v37 = vpop.f32.mrb[24].mxu1  ;;  %v8686_v53 = vpop.f32.mrb[26].mxu0  ;;  %13436 = vst [vmem:[#allocation10_spill] sm:$0xff] %v11921_v32 }
 0x245   : > { %v2848_v54 = vpop.f32.mrb[25].mxu1  ;;  %v4952_v19 = vpop.f32.mrb[27].mxu0  ;;  %v11878_v10 = vadd.f32 %v8685_v46, %v8533_v37 }
 0x246   : > { %v8534_v47 = vpop.f32.mrb[26].mxu1  ;;  %v11888_v12 = vadd.f32 %v4949_v42, %v2848_v54  ;;  %v9120_v46 = vpop.eup %9119  ;;  %v11935_v54 = vadd.f32 %v11856_v49, %v11778_v38 }
 0x247   : > { %v2851_v20 = vpop.f32.mrb[27].mxu1  ;;  %v11897_v28 = vadd.f32 %v8686_v53, %v8534_v47  ;;  %v11928_v37 = vpop.permute.xlu1 %5731  ;;  %5847 = vrot.lane.b32.xlu1 %v9120_v46, %s9826_s11 }
 0x248   : > { %v11906_v23 = vadd.f32 %v4952_v19, %v2851_v20  ;;  %13438 = vst [vmem:[#allocation9_spill] sm:$0xff] %v11928_v37  ;;  %v9122_v42 = vpop.eup %9121  ;;  %13439 = vst [vmem:[#allocation23_spill] sm:$0xff] %v11935_v54  ;;  %v11941_v47 = vpop.permute.xlu0 %5733  ;;  %9129 = vtanh.f32 %v11935_v54  ;;  %v11948_v20 = vadd.f32 %v11858_v7, %v11778_v38  ;;  %v11964_v7 = vadd.f32 %v11876_v30, %v11778_v38  ;;  %v11980_v30 = vld [vmem:[%s13283_s3 + $0x10] sm:$0xff] }
 0x249   : > { %6385 = vrot.lane.b32.xlu0 %v9122_v42, %s9826_s11  ;;  %13440 = vst [vmem:[#allocation24_spill] sm:$0xff] %v11941_v47  ;;  %v9124_v24 = vpop.eup %9123  ;;  %v5109_v46 = vmul.f32 %v9665_v13, %v11980_v30  ;;  %v11999_v42 = vadd.f32 %v11897_v28, %v11778_v38 }
 0x24a   : > { %v8689_v52 = vpop.f32.mrb[28].mxu0  ;;  %13442 = vst [vmem:[#allocation26_spill] sm:$0xff] %v11948_v20  ;;  %9131 = vtanh.f32 %v11948_v20  ;;  %13446 = vst [vmem:[#allocation30_spill] sm:$0xff] %v11964_v7 }
 0x24b   : > { %v4965_v1 = vpop.f32.mrb[29].mxu0  ;;  %v11943_v19 = vpop.permute.xlu1 %5735  ;;  %9133 = vtanh.f32 %v11953_v45  ;;  %13452 = vst [vmem:[#allocation36_spill] sm:$0xff] %v11999_v42  ;;  %v5117_v28 = vadd.f32 %v5109_v46, %v11781_v5  ;;  %v12033_v46 = vld [vmem:[%s13283_s3 + $0x8] sm:$0xff] }
 0x24c   : > { %v8537_v14 = vpop.f32.mrb[28].mxu1  ;;  %v8690_v61 = vpop.f32.mrb[30].mxu0  ;;  %13441 = vst [vmem:[#allocation25_spill] sm:$0xff] %v11943_v19  ;;  %9135 = vtanh.f32 %v11964_v7 }
 0x24d   : > { %v2864_v11 = vpop.f32.mrb[29].mxu1  ;;  %v4968_v56 = vpop.f32.mrb[31].mxu0  ;;  %v11915_v60 = vadd.f32 %v8689_v52, %v8537_v14  ;;  %6381 = vrot.lane.b32.xlu0 %v9124_v24, %s9826_s11 }
 0x24e   : > { %v8538_v51 = vpop.f32.mrb[30].mxu1  ;;  %v11917_v25 = vadd.f32 %v4965_v1, %v2864_v11  ;;  %v9126_v49 = vpop.eup %9125  ;;  %v11971_v11 = vadd.f32 %v11878_v10, %v11778_v38  ;;  %v11985_v10 = vadd.f32 %v11888_v12, %v11778_v38  ;;  %v12004_v12 = vld [vmem:[%s13283_s3] sm:$0xff] }
 0x24f   : > { %v2867_v21 = vpop.f32.mrb[31].mxu1  ;;  %v11931_v31 = vadd.f32 %v8690_v61, %v8538_v51  ;;  %v11955_v22 = vpop.permute.xlu0 %5737  ;;  %6387 = vrot.lane.b32.xlu1 %v9126_v49, %s9826_s11  ;;  %v9666_v49 = vld [vmem:[%s11095_s15 + $0x18] sm:$0xff] }
 0x250   : > { %v11939_v53 = vadd.f32 %v4968_v56, %v2867_v21  ;;  %13444 = vst [vmem:[#allocation28_spill] sm:$0xff] %v11955_v22  ;;  %v11959_v52 = vpop.permute.xlu1 %5739  ;;  %v9128_v14 = vpop.eup %9127  ;;  %13448 = vst [vmem:[#allocation32_spill] sm:$0xff] %v11971_v11  ;;  %9137 = vtanh.f32 %v11971_v11  ;;  %v11991_v56 = vld [vmem:[%s13283_s3 + $0x18] sm:$0xff] }
 0x251   : > { %13445 = vst [vmem:[#allocation29_spill] sm:$0xff] %v11959_v52  ;;  %13450 = vst [vmem:[#allocation34_spill] sm:$0xff] %v11985_v10  ;;  %9139 = vtanh.f32 %v11985_v10  ;;  %v9671_v52 = vld [vmem:[%s11095_s15 + $0x38] sm:$0xff] }
 0x252   : > { %v9130_v55 = vpop.eup %9129  ;;  %9141 = vtanh.f32 %v11999_v42 }
 0x253   : > { %6383 = vrot.lane.b32.xlu1 %v9128_v14, %s9826_s11  ;;  %v11967_v1 = vpop.permute.xlu0 %6269  ;;  %6393 = vrot.lane.b32.xlu0 %v9130_v55, %s9826_s11  ;;  %v5110_v14 = vmul.f32 %v9666_v49, %v11991_v56 }
 0x254   : > { %13447 = vst [vmem:[#allocation31_spill] sm:$0xff] %v11967_v1  ;;  %v11975_v61 = vpop.permute.xlu1 %6271  ;;  %v9132_v51 = vpop.eup %9131 }
 0x255   : > { %13449 = vst [vmem:[#allocation33_spill] sm:$0xff] %v11975_v61  ;;  %v9134_v21 = vpop.eup %9133  ;;  %v12018_v61 = vadd.f32 %v11906_v23, %v11778_v38  ;;  %v8009_v23 = vmul.f32 -1.442695, %v5117_v28 }
 0x256   : > { %v9136_v55 = vpop.eup %9135 }
 0x257   : > { %6389 = vrot.lane.b32.xlu0 %v9132_v51, %s9826_s11  ;;  %v11993_v0 = vpop.permute.xlu0 %6273  ;;  %6395 = vrot.lane.b32.xlu1 %v9134_v21, %s9826_s11  ;;  %v9667_v51 = vld [vmem:[%s11095_s15] sm:$0xff]  ;;  %13454 = vst [vmem:[#allocation38_spill] sm:$0xff] %v12018_v61  ;;  %v5118_v21 = vadd.f32 %v5110_v14, %v11788_v57  ;;  %9143 = vtanh.f32 %v12018_v61 }
 0x258   : > { %13451 = vst [vmem:[#allocation35_spill] sm:$0xff] %v11993_v0  ;;  %v12006_v24 = vpop.permute.xlu1 %6275  ;;  %v5107_v13 = vmul.f32 %v9667_v51, %v12004_v12  ;;  %v12028_v51 = vadd.f32 %v11915_v60, %v11778_v38  ;;  %v12043_v60 = vld [vmem:[%s13283_s3 + $0x30] sm:$0xff] }
 0x259   : > { %13453 = vst [vmem:[#allocation37_spill] sm:$0xff] %v12006_v24  ;;  %v8010_v14 = vmul.f32 -1.442695, %v5118_v21 }
 0x25a   : > { %v9138_v49 = vpop.eup %9137  ;;  %13457 = vst [vmem:[#allocation41_spill] sm:$0xff] %v12028_v51  ;;  %v5115_v0 = vadd.f32 %v5107_v13, %v11785_v36  ;;  %9145 = vtanh.f32 %v12028_v51  ;;  %v12050_v13 = vadd.f32 %v11917_v25, %v11778_v38  ;;  %v12064_v25 = vld [vmem:[%s13283_s3 + $0x20] sm:$0xff] }
 0x25b   : > { %v12020_v1 = vpop.permute.xlu0 %6277  ;;  %6391 = vrot.lane.b32.xlu1 %v9136_v55, %s9826_s11  ;;  %6929 = vrot.lane.b32.xlu0 %v9138_v49, %s9826_s11  ;;  %v9140_v55 = vpop.eup %9139  ;;  %9147 = vpow2.f32 %v8009_v23  ;;  %v9669_v49 = vld [vmem:[%s11095_s15 + $0x30] sm:$0xff]  ;;  %v12072_v23 = vld [vmem:[%s13283_s3 + $0x38] sm:$0xff] }
 0x25c   : > { %13455 = vst [vmem:[#allocation39_spill] sm:$0xff] %v12020_v1  ;;  %v12024_v24 = vpop.permute.xlu1 %6279  ;;  %13459 = vst [vmem:[#allocation43_spill] sm:$0xff] %v12050_v13  ;;  %v8007_v28 = vmul.f32 -1.442695, %v5115_v0  ;;  %v5113_v47 = vmul.f32 %v9669_v49, %v12043_v60  ;;  %9149 = vpow2.f32 %v8010_v14 }
 0x25d   : > { %13456 = vst [vmem:[#allocation40_spill] sm:$0xff] %v12024_v24  ;;  %v9668_v24 = vld [vmem:[%s11095_s15 + $0x8] sm:$0xff]  ;;  %9151 = vtanh.f32 %v12050_v13 }
 0x25e   : > { %v5108_v1 = vmul.f32 %v9668_v24, %v12033_v46  ;;  %v9142_v24 = vpop.eup %9141  ;;  %9153 = vpow2.f32 %v8007_v28 }
 0x25f   : > { %v12045_v19 = vpop.permute.xlu0 %6281  ;;  %6925 = vrot.lane.b32.xlu0 %v9140_v55, %s9826_s11  ;;  %6931 = vrot.lane.b32.xlu1 %v9142_v24, %s9826_s11  ;;  %v9670_v55 = vld [vmem:[%s11095_s15 + $0x20] sm:$0xff] }
 0x260   : > { %13458 = vst [vmem:[#allocation42_spill] sm:$0xff] %v12045_v19  ;;  %v12053_v21 = vpop.permute.xlu1 %6283  ;;  %v12059_v19 = vadd.f32 %v11931_v31, %v11778_v38  ;;  %v5116_v0 = vadd.f32 %v5108_v1, %v11793_v29  ;;  %v5111_v49 = vmul.f32 %v9670_v55, %v12064_v25  ;;  %v12082_v1 = vadd.f32 %v11939_v53, %v11778_v38 }
 0x261   : > { %13460 = vst [vmem:[#allocation44_spill] sm:$0xff] %v12053_v21  ;;  %v9144_v14 = vpop.eup %9143  ;;  %v5121_v21 = vadd.f32 %v5113_v47, %v11796_v9  ;;  %v12092_v47 = vld [vmem:[%s13283_s3 + $0x28] sm:$0xff] }
 0x262   : > { %13461 = vst [vmem:[#allocation45_spill] sm:$0xff] %v12059_v19  ;;  %9155 = vtanh.f32 %v12059_v19  ;;  %13463 = vst [vmem:[#allocation47_spill] sm:$0xff] %v12082_v1  ;;  %v8008_v28 = vmul.f32 -1.442695, %v5116_v0  ;;  %v5119_v38 = vadd.f32 %v5111_v49, %v11803_v6 }
 0x263   : > { %v12074_v31 = vpop.permute.xlu0 %6813  ;;  %6927 = vrot.lane.b32.xlu1 %v9144_v14, %s9826_s11  ;;  %v8013_v26 = vmul.f32 -1.442695, %v5121_v21  ;;  %9157 = vtanh.f32 %v12082_v1 }
 0x264   : > { %13462 = vst [vmem:[#allocation46_spill] sm:$0xff] %v12074_v31  ;;  %v12084_v24 = vpop.permute.xlu1 %6815  ;;  %v5114_v31 = vmul.f32 %v9671_v52, %v12072_v23  ;;  %v9146_v22 = vpop.eup %9145  ;;  %9159 = vpow2.f32 %v8008_v28  ;;  %v9672_v52 = vld [vmem:[%s11095_s15 + $0x28] sm:$0xff]  ;;  %v8011_v28 = vmul.f32 -1.442695, %v5119_v38  ;;  %v9674_v38 = vld [vmem:[%s11095_s15 + $0x40] sm:$0xff] }
 0x265   : > { %13464 = vst [vmem:[#allocation48_spill] sm:$0xff] %v12084_v24  ;;  %v9148_v55 = vpop.eup %9147  ;;  %6937 = vrot.lane.b32.xlu0 %v9146_v22, %s9826_s11  ;;  %v5112_v14 = vmul.f32 %v9672_v52, %v12092_v47  ;;  %v12104_v24 = vld [vmem:[%s13283_s3 + $0x50] sm:$0xff]  ;;  %9161 = vpow2.f32 %v8013_v26  ;;  %v12113_v52 = vld [vmem:[%s13283_s3 + $0x40] sm:$0xff] }
 0x266   : > { %v9150_v0 = vpop.eup %9149  ;;  %13466 = vst [vmem:[#allocation50_spill] sm:$0xff] %v12104_v24  ;;  %v5122_v21 = vadd.f32 %v5114_v31, %v11807_v63  ;;  %v5149_v37 = vadd.f32 1.0, %v9148_v55  ;;  %13468 = vst [vmem:[#allocation52_spill] sm:$0xff] %v12113_v52 }
 0x267   : > { %v12097_v53 = vpop.permute.xlu0 %6817  ;;  %v9152_v49 = vpop.eup %9151  ;;  %v5150_v6 = vadd.f32 1.0, %v9150_v0 }
 0x268   : > { %13465 = vst [vmem:[#allocation49_spill] sm:$0xff] %v12097_v53  ;;  %v12107_v4 = vpop.permute.xlu1 %6819  ;;  %v9154_v22 = vpop.eup %9153  ;;  %v9673_v53 = vld [vmem:[%s11095_s15 + $0x50] sm:$0xff]  ;;  %v8014_v15 = vmul.f32 -1.442695, %v5122_v21  ;;  %9163 = vrcp.f32 %v5149_v37 }
 0x269   : > { %13467 = vst [vmem:[#allocation51_spill] sm:$0xff] %v12107_v4  ;;  %6933 = vrot.lane.b32.xlu0 %v9152_v49, %s9826_s11  ;;  %v5655_v32 = vmul.f32 %v9673_v53, %v12104_v24  ;;  %v5120_v4 = vadd.f32 %v5112_v14, %v11812_v44  ;;  %v5147_v26 = vadd.f32 1.0, %v9154_v22  ;;  %v5653_v49 = vmul.f32 %v9674_v38, %v12113_v52  ;;  %v12126_v53 = vld [vmem:[%s13283_s3 + $0x58] sm:$0xff] }
 0x26a   : > { %9165 = vpow2.f32 %v8011_v28  ;;  %13470 = vst [vmem:[#allocation54_spill] sm:$0xff] %v12126_v53  ;;  %v9675_v22 = vld [vmem:[%s11095_s15 + $0x58] sm:$0xff] }
 0x26b   : > { %v12118_v55 = vpop.permute.xlu0 %6821  ;;  %v5663_v0 = vadd.f32 %v5655_v32, %v11816_v62  ;;  %9167 = vrcp.f32 %v5150_v6  ;;  %v5656_v28 = vmul.f32 %v9675_v22, %v12126_v53  ;;  %v5661_v38 = vadd.f32 %v5653_v49, %v11828_v8  ;;  %v12138_v32 = vld [vmem:[%s13283_s3 + $0x48] sm:$0xff] }
 0x26c   : > { %v9156_v31 = vpop.eup %9155  ;;  %13469 = vst [vmem:[#allocation53_spill] sm:$0xff] %v12118_v55  ;;  %v12129_v21 = vpop.permute.xlu1 %6823  ;;  %9169 = vpow2.f32 %v8014_v15  ;;  %v9676_v49 = vld [vmem:[%s11095_s15 + $0x48] sm:$0xff] }
 0x26d   : > { %6939 = vrot.lane.b32.xlu1 %v9156_v31, %s9826_s11  ;;  %13471 = vst [vmem:[#allocation55_spill] sm:$0xff] %v12129_v21  ;;  %v9158_v14 = vpop.eup %9157  ;;  %v8012_v31 = vmul.f32 -1.442695, %v5120_v4  ;;  %9171 = vrcp.f32 %v5147_v26  ;;  %v8041_v21 = vmul.f32 -1.442695, %v5663_v0  ;;  %v12145_v26 = vld [vmem:[%s13283_s3 + $0x70] sm:$0xff]  ;;  %v5654_v22 = vmul.f32 %v9676_v49, %v12138_v32 }
 0x26e   : > { %v9160_v37 = vpop.eup %9159  ;;  %13473 = vst [vmem:[#allocation57_spill] sm:$0xff] %v12145_v26  ;;  %v8039_v55 = vmul.f32 -1.442695, %v5661_v38  ;;  %v5664_v8 = vadd.f32 %v5656_v28, %v11832_v33  ;;  %v12157_v38 = vld [vmem:[%s13283_s3 + $0x60] sm:$0xff] }
 0x26f   : > { %v12140_v6 = vpop.permute.xlu0 %6825  ;;  %v9162_v15 = vpop.eup %9161  ;;  %9173 = vpow2.f32 %v8012_v31  ;;  %v5148_v4 = vadd.f32 1.0, %v9160_v37  ;;  %v9677_v31 = vld [vmem:[%s11095_s15 + $0x70] sm:$0xff]  ;;  %13475 = vst [vmem:[#allocation59_spill] sm:$0xff] %v12157_v38 }
 0x270   : > { %13472 = vst [vmem:[#allocation56_spill] sm:$0xff] %v12140_v6  ;;  %9175 = vpow2.f32 %v8041_v21  ;;  %v5153_v6 = vadd.f32 1.0, %v9162_v15  ;;  %v5659_v37 = vmul.f32 %v9677_v31, %v12145_v26  ;;  %v8042_v28 = vmul.f32 -1.442695, %v5664_v8  ;;  %v9678_v8 = vld [vmem:[%s11095_s15 + $0x60] sm:$0xff] }
 0x271   : > { %6935 = vrot.lane.b32.xlu1 %v9158_v14, %s9826_s11  ;;  %v12147_v14 = vpop.permute.xlu1 %6827  ;;  %9177 = vrcp.f32 %v5148_v4  ;;  %v5662_v21 = vadd.f32 %v5654_v22, %v11842_v48 }
 0x272   : > { %13474 = vst [vmem:[#allocation58_spill] sm:$0xff] %v12147_v14  ;;  %v9164_v0 = vpop.eup %9163  ;;  %9179 = vpow2.f32 %v8039_v55  ;;  %v5667_v31 = vadd.f32 %v5659_v37, %v11850_v18  ;;  %v12176_v37 = vld [vmem:[%s13283_s3 + $0x68] sm:$0xff] }
 0x273   : > { %9181 = vrcp.f32 %v5153_v6  ;;  %v8040_v55 = vmul.f32 -1.442695, %v5662_v21  ;;  %v12182_v21 = vld [vmem:[%s13283_s3 + $0x90] sm:$0xff] }
 0x274   : > { %v9166_v53 = vpop.eup %9165  ;;  %9183 = vpow2.f32 %v8042_v28  ;;  %v8045_v22 = vmul.f32 -1.442695, %v5667_v31  ;;  %13477 = vst [vmem:[#allocation61_spill] sm:$0xff] %v12182_v21  ;;  %v9680_v31 = vld [vmem:[%s11095_s15 + $0x68] sm:$0xff] }
 0x275   : > { %v9168_v24 = vpop.eup %9167  ;;  %v5151_v4 = vadd.f32 1.0, %v9166_v53  ;;  %v9679_v53 = vld [vmem:[%s11095_s15 + $0x78] sm:$0xff] }
 0x276   : > { %v9170_v14 = vpop.eup %9169 }
 0x277   : > { %v9172_v49 = vpop.eup %9171  ;;  %9185 = vrcp.f32 %v5151_v4 }
 0x294   : > { %v5296_v52 = vpop.permute.xlu0 %5295 }
 0x295   : > { %v5317_v62 = vmul.f32 %v9164_v0, %v5296_v52  ;;  %v12164_v0 = vld [vmem:[%s13283_s3 + $0x78] sm:$0xff] }
 0x296   : > { %v5298_v44 = vpop.permute.xlu1 %5297  ;;  %13476 = vst [vmem:[#allocation60_spill] sm:$0xff] %v12164_v0  ;;  %v5660_v6 = vmul.f32 %v9679_v53, %v12164_v0 }
 0x297   : > { %v5318_v15 = vmul.f32 %v9168_v24, %v5298_v44  ;;  %5335 = vrot.lane.b32.xlu0 %v5317_v62, %s9825_s17  ;;  %v5657_v44 = vmul.f32 %v9678_v8, %v12157_v38  ;;  %v5154_v24 = vadd.f32 1.0, %v9170_v14  ;;  %v9174_v62 = vpop.eup %9173  ;;  %v5658_v8 = vmul.f32 %v9680_v31, %v12176_v37 }
 0x298   : > { %v5292_v52 = vpop.permute.xlu0 %5291  ;;  %v9176_v48 = vpop.eup %9175  ;;  %v5152_v14 = vadd.f32 1.0, %v9174_v62 }
 0x299   : > { %v5315_v26 = vmul.f32 %v9172_v49, %v5292_v52  ;;  %5337 = vrot.lane.b32.xlu1 %v5318_v15, %s9825_s17  ;;  %v5665_v15 = vadd.f32 %v5657_v44, %v11864_v34  ;;  %9187 = vrcp.f32 %v5154_v24  ;;  %v9178_v28 = vpop.eup %9177  ;;  %v5668_v49 = vadd.f32 %v5660_v6, %v11872_v39 }
 0x29a   : > { %9189 = vpow2.f32 %v8040_v55  ;;  %v9180_v4 = vpop.eup %9179  ;;  %v5695_v44 = vadd.f32 1.0, %v9176_v48  ;;  %v9681_v55 = vld [vmem:[%s11095_s15 + $0x90] sm:$0xff]  ;;  %v5666_v48 = vadd.f32 %v5658_v8, %v11883_v43 }
 0x29b   : > { %5331 = vrot.lane.b32.xlu0 %v5315_v26, %s9825_s17  ;;  %v5294_v26 = vpop.permute.xlu1 %5293  ;;  %9191 = vpow2.f32 %v8045_v22  ;;  %v9182_v24 = vpop.eup %9181  ;;  %v8043_v62 = vmul.f32 -1.442695, %v5665_v15  ;;  %v6199_v34 = vmul.f32 %v9681_v55, %v12182_v21  ;;  %v8046_v0 = vmul.f32 -1.442695, %v5668_v49  ;;  %v9683_v55 = vld [vmem:[%s11095_s15 + $0x98] sm:$0xff] }
 0x29c   : > { %v5316_v52 = vmul.f32 %v9178_v28, %v5294_v26  ;;  %v5304_v53 = vpop.permute.xlu0 %5303  ;;  %9193 = vrcp.f32 %v5152_v14  ;;  %v9184_v6 = vpop.eup %9183  ;;  %v12193_v28 = vld [vmem:[%s13283_s3 + $0x80] sm:$0xff]  ;;  %v5693_v22 = vadd.f32 1.0, %v9180_v4  ;;  %v12200_v26 = vld [vmem:[%s13283_s3 + $0x98] sm:$0xff] }
 0x29d   : > { %v5321_v38 = vmul.f32 %v9182_v24, %v5304_v53  ;;  %9195 = vrcp.f32 %v5695_v44  ;;  %v9186_v15 = vpop.eup %9185  ;;  %v6207_v49 = vadd.f32 %v6199_v34, %v11893_v41  ;;  %v9682_v24 = vld [vmem:[%s11095_s15 + $0x80] sm:$0xff]  ;;  %v5696_v44 = vadd.f32 1.0, %v9184_v6 }
 0x29e   : > { %5333 = vrot.lane.b32.xlu1 %v5316_v52, %s9825_s17  ;;  %9197 = vpow2.f32 %v8043_v62  ;;  %v6197_v8 = vmul.f32 %v9682_v24, %v12193_v28  ;;  %v8044_v53 = vmul.f32 -1.442695, %v5666_v48  ;;  %v6200_v21 = vmul.f32 %v9683_v55, %v12200_v26  ;;  %v9684_v24 = vld [vmem:[%s11095_s15 + $0x88] sm:$0xff]  ;;  %v9685_v55 = vld [vmem:[%s11095_s15 + $0xb0] sm:$0xff] }
 0x29f   : > { %5343 = vrot.lane.b32.xlu0 %v5321_v38, %s9825_s17  ;;  %9199 = vpow2.f32 %v8046_v0  ;;  %v5306_v38 = vpop.permute.xlu1 %5305  ;;  %v8073_v34 = vmul.f32 -1.442695, %v6207_v49  ;;  %v12212_v0 = vld [vmem:[%s13283_s3 + $0x88] sm:$0xff]  ;;  %v12218_v49 = vld [vmem:[%s13283_s3 + $0xb0] sm:$0xff] }
 0x2a0   : > { %v5300_v14 = vpop.permute.xlu0 %5299  ;;  %9201 = vrcp.f32 %v5693_v22  ;;  %v6205_v6 = vadd.f32 %v6197_v8, %v11904_v50  ;;  %13478 = vst [vmem:[#allocation62_spill] sm:$0xff] %v12218_v49 }
 0x2a1   : > { %v5319_v52 = vmul.f32 %v9186_v15, %v5300_v14  ;;  %9203 = vrcp.f32 %v5696_v44 }
 0x2a2   : > { %9205 = vpow2.f32 %v8044_v53 }
 0x2a3   : > { %v9188_v31 = vpop.eup %9187  ;;  %5339 = vrot.lane.b32.xlu0 %v5319_v52, %s9825_s17  ;;  %v5302_v48 = vpop.permute.xlu1 %5301  ;;  %v6208_v52 = vadd.f32 %v6200_v21, %v11913_v59  ;;  %9207 = vpow2.f32 %v8073_v34  ;;  %v12230_v34 = vld [vmem:[%s13283_s3 + $0xa0] sm:$0xff] }
 0x2a4   : > { %v9190_v4 = vpop.eup %9189  ;;  %v5322_v62 = vmul.f32 %v9188_v31, %v5306_v38  ;;  %v6198_v38 = vmul.f32 %v9684_v24, %v12212_v0  ;;  %13479 = vst [vmem:[#allocation63_spill] sm:$0xff] %v12230_v34 }
 0x2a5   : > { %v9192_v43 = vpop.eup %9191  ;;  %v5694_v14 = vadd.f32 1.0, %v9190_v4  ;;  %v8071_v4 = vmul.f32 -1.442695, %v6205_v6  ;;  %v8074_v50 = vmul.f32 -1.442695, %v6208_v52  ;;  %v12236_v52 = vld [vmem:[%s13283_s3 + $0xb8] sm:$0xff] }
 0x2a6   : > { %5345 = vrot.lane.b32.xlu1 %v5322_v62, %s9825_s17  ;;  %v9194_v15 = vpop.eup %9193  ;;  %v5842_v62 = vpop.permute.xlu0 %5841  ;;  %v5699_v8 = vadd.f32 1.0, %v9192_v43  ;;  %v6206_v43 = vadd.f32 %v6198_v38, %v11926_v58 }
 0x2a7   : > { %v5320_v22 = vmul.f32 %v9194_v15, %v5302_v48  ;;  %v9196_v31 = vpop.eup %9195  ;;  %9209 = vrcp.f32 %v5694_v14  ;;  %v6203_v15 = vmul.f32 %v9685_v55, %v12218_v49  ;;  %v5844_v55 = vpop.permute.xlu1 %5843 }
 0x2a8   : > { %v9198_v44 = vpop.eup %9197  ;;  %v5863_v53 = vmul.f32 %v9196_v31, %v5842_v62  ;;  %9211 = vrcp.f32 %v5699_v8  ;;  %v9686_v62 = vld [vmem:[%s11095_s15 + $0xa0] sm:$0xff] }
 0x2a9   : > { %v9200_v48 = vpop.eup %9199  ;;  %v5697_v6 = vadd.f32 1.0, %v9198_v44  ;;  %9213 = vpow2.f32 %v8071_v4  ;;  %v6211_v31 = vadd.f32 %v6203_v15, %v11935_v54  ;;  %v8072_v44 = vmul.f32 -1.442695, %v6206_v43 }
 0x2aa   : > { %5341 = vrot.lane.b32.xlu1 %v5320_v22, %s9825_s17  ;;  %5881 = vrot.lane.b32.xlu0 %v5863_v53, %s9825_s17  ;;  %v9202_v21 = vpop.eup %9201  ;;  %v5838_v22 = vpop.permute.xlu0 %5837  ;;  %v6201_v53 = vmul.f32 %v9686_v62, %v12230_v34  ;;  %9215 = vpow2.f32 %v8074_v50  ;;  %v5700_v38 = vadd.f32 1.0, %v9200_v48  ;;  %v12248_v50 = vld [vmem:[%s13283_s3 + $0xa8] sm:$0xff] }
 0x2ab   : > { %v5861_v14 = vmul.f32 %v9202_v21, %v5838_v22  ;;  %v9204_v24 = vpop.eup %9203  ;;  %9217 = vrcp.f32 %v5697_v6  ;;  %v9687_v21 = vld [vmem:[%s11095_s15 + $0xb8] sm:$0xff]  ;;  %v8077_v58 = vmul.f32 -1.442695, %v6211_v31  ;;  %v12254_v31 = vld [vmem:[%s13283_s3 + $0xd0] sm:$0xff] }
 0x2ac   : > { %v9206_v8 = vpop.eup %9205  ;;  %v5864_v4 = vmul.f32 %v9204_v24, %v5844_v55  ;;  %v6204_v22 = vmul.f32 %v9687_v21, %v12236_v52  ;;  %v6209_v48 = vadd.f32 %v6201_v53, %v11948_v20  ;;  %9219 = vrcp.f32 %v5700_v38  ;;  %13480 = vst [vmem:[#allocation64_spill] sm:$0xff] %v12254_v31  ;;  %v9688_v55 = vld [vmem:[%s11095_s15 + $0xa8] sm:$0xff] }
 0x2ad   : > { %v9208_v49 = vpop.eup %9207  ;;  %v5698_v43 = vadd.f32 1.0, %v9206_v8  ;;  %9221 = vpow2.f32 %v8072_v44 }
 0x2ae   : > { %5877 = vrot.lane.b32.xlu0 %v5861_v14, %s9825_s17  ;;  %5883 = vrot.lane.b32.xlu1 %v5864_v4, %s9825_s17  ;;  %v5840_v14 = vpop.permute.xlu1 %5839  ;;  %v6212_v24 = vadd.f32 %v6204_v22, %v11953_v45  ;;  %v6202_v4 = vmul.f32 %v9688_v55, %v12248_v50  ;;  %9223 = vpow2.f32 %v8077_v58  ;;  %v5850_v21 = vpop.permute.xlu0 %5849  ;;  %v6239_v53 = vadd.f32 1.0, %v9208_v49  ;;  %v12266_v58 = vld [vmem:[%s13283_s3 + $0xc0] sm:$0xff] }
 0x2af   : > { %v8075_v8 = vmul.f32 -1.442695, %v6209_v48  ;;  %9225 = vrcp.f32 %v5698_v43 }
 0x2b0   : > { %v8078_v34 = vmul.f32 -1.442695, %v6212_v24  ;;  %v6210_v49 = vadd.f32 %v6202_v4, %v11964_v7  ;;  %9227 = vrcp.f32 %v6239_v53  ;;  %v12272_v24 = vld [vmem:[%s13283_s3 + $0xd8] sm:$0xff] }
 0x2b1   : > { %v9210_v15 = vpop.eup %9209  ;;  %9229 = vpow2.f32 %v8075_v8  ;;  %13481 = vst [vmem:[#allocation65_spill] sm:$0xff] %v12272_v24 }
 0x2b2   : > { %v5862_v6 = vmul.f32 %v9210_v15, %v5840_v14  ;;  %v9212_v62 = vpop.eup %9211  ;;  %v9689_v15 = vld [vmem:[%s11095_s15 + $0xd0] sm:$0xff]  ;;  %9231 = vpow2.f32 %v8078_v34  ;;  %v12284_v34 = vld [vmem:[%s13283_s3 + $0xc8] sm:$0xff] }
 0x2b3   : > { %v9214_v38 = vpop.eup %9213  ;;  %v5867_v44 = vmul.f32 %v9212_v62, %v5850_v21  ;;  %v6743_v14 = vmul.f32 %v9689_v15, %v12254_v31  ;;  %v9690_v21 = vld [vmem:[%s11095_s15 + $0xc0] sm:$0xff]  ;;  %v5852_v15 = vpop.permute.xlu1 %5851 }
 0x2b4   : > { %5879 = vrot.lane.b32.xlu1 %v5862_v6, %s9825_s17  ;;  %v9216_v20 = vpop.eup %9215  ;;  %v5846_v6 = vpop.permute.xlu0 %5845  ;;  %v6237_v48 = vadd.f32 1.0, %v9214_v38  ;;  %v8076_v38 = vmul.f32 -1.442695, %v6210_v49 }
 0x2b5   : > { %5889 = vrot.lane.b32.xlu0 %v5867_v44, %s9825_s17  ;;  %v9218_v22 = vpop.eup %9217  ;;  %v6751_v62 = vadd.f32 %v6743_v14, %v11971_v11  ;;  %v6741_v44 = vmul.f32 %v9690_v21, %v12266_v58  ;;  %v6240_v4 = vadd.f32 1.0, %v9216_v20 }
 0x2b6   : > { %v5865_v43 = vmul.f32 %v9218_v22, %v5846_v6  ;;  %v9220_v55 = vpop.eup %9219  ;;  %9233 = vrcp.f32 %v6237_v48  ;;  %v9691_v22 = vld [vmem:[%s11095_s15 + $0xd8] sm:$0xff] }
 0x2b7   : > { %v9222_v53 = vpop.eup %9221  ;;  %v5868_v8 = vmul.f32 %v9220_v55, %v5852_v15  ;;  %v6744_v6 = vmul.f32 %v9691_v22, %v12272_v24  ;;  %v8105_v7 = vmul.f32 -1.442695, %v6751_v62  ;;  %v6749_v20 = vadd.f32 %v6741_v44, %v11985_v10  ;;  %v12290_v62 = vld [vmem:[%s13283_s3 + $0xf0] sm:$0xff]  ;;  %v9692_v15 = vld [vmem:[%s11095_s15 + $0xc8] sm:$0xff] }
 0x2b8   : > { %v9224_v31 = vpop.eup %9223  ;;  %9235 = vrcp.f32 %v6240_v4  ;;  %v6238_v49 = vadd.f32 1.0, %v9222_v53  ;;  %13482 = vst [vmem:[#allocation66_spill] sm:$0xff] %v12290_v62 }
 0x2b9   : > { %5885 = vrot.lane.b32.xlu0 %v5865_v43, %s9825_s17  ;;  %5891 = vrot.lane.b32.xlu1 %v5868_v8, %s9825_s17  ;;  %v9226_v14 = vpop.eup %9225  ;;  %v5848_v43 = vpop.permute.xlu1 %5847  ;;  %9237 = vpow2.f32 %v8076_v38  ;;  %v6752_v55 = vadd.f32 %v6744_v6, %v11999_v42  ;;  %v6742_v8 = vmul.f32 %v9692_v15, %v12284_v34  ;;  %v6243_v44 = vadd.f32 1.0, %v9224_v31 }
 0x2ba   : > { %v5866_v48 = vmul.f32 %v9226_v14, %v5848_v43  ;;  %v9228_v21 = vpop.eup %9227  ;;  %9239 = vpow2.f32 %v8105_v7  ;;  %v8103_v53 = vmul.f32 -1.442695, %v6749_v20  ;;  %v9693_v14 = vld [vmem:[%s11095_s15 + $0xf0] sm:$0xff]  ;;  %v12302_v7 = vld [vmem:[%s13283_s3 + $0xe0] sm:$0xff] }
 0x2bb   : > { %v6386_v22 = vpop.permute.xlu0 %6385  ;;  %v9230_v4 = vpop.eup %9229  ;;  %9241 = vrcp.f32 %v6238_v49  ;;  %v6747_v43 = vmul.f32 %v9693_v14, %v12290_v62  ;;  %v8106_v24 = vmul.f32 -1.442695, %v6752_v55  ;;  %13483 = vst [vmem:[#allocation67_spill] sm:$0xff] %v12302_v7  ;;  %v6750_v31 = vadd.f32 %v6742_v8, %v12018_v61  ;;  %v12308_v55 = vld [vmem:[%s13283_s3 + $0xf8] sm:$0xff] }
 0x2bc   : > { %v6407_v38 = vmul.f32 %v9228_v21, %v6386_v22  ;;  %v9232_v10 = vpop.eup %9231  ;;  %9243 = vrcp.f32 %v6243_v44  ;;  %v6241_v20 = vadd.f32 1.0, %v9230_v4  ;;  %13484 = vst [vmem:[#allocation68_spill] sm:$0xff] %v12308_v55  ;;  %v9694_v22 = vld [vmem:[%s11095_s15 + $0xe0] sm:$0xff] }
 0x2bd   : > { %5887 = vrot.lane.b32.xlu1 %v5866_v48, %s9825_s17  ;;  %9245 = vpow2.f32 %v8103_v53  ;;  %v6755_v21 = vadd.f32 %v6747_v43, %v12028_v51  ;;  %v6244_v8 = vadd.f32 1.0, %v9232_v10  ;;  %v8104_v4 = vmul.f32 -1.442695, %v6750_v31 }
 0x2be   : > { %6425 = vrot.lane.b32.xlu0 %v6407_v38, %s9825_s17  ;;  %v6745_v38 = vmul.f32 %v9694_v22, %v12302_v7  ;;  %9247 = vpow2.f32 %v8106_v24  ;;  %v12320_v24 = vld [vmem:[%s13283_s3 + $0xe8] sm:$0xff] }
 0x2bf   : > { %v6382_v48 = vpop.permute.xlu0 %6381  ;;  %9249 = vrcp.f32 %v6241_v20  ;;  %v8109_v61 = vmul.f32 -1.442695, %v6755_v21 }
 0x2c0   : > { %v9234_v6 = vpop.eup %9233  ;;  %v6753_v10 = vadd.f32 %v6745_v38, %v12050_v13  ;;  %9251 = vrcp.f32 %v6244_v8 }
 0x2c1   : > { %v6405_v49 = vmul.f32 %v9234_v6, %v6382_v48  ;;  %v6388_v14 = vpop.permute.xlu1 %6387  ;;  %v9695_v6 = vld [vmem:[%s11095_s15 + $0xf8] sm:$0xff]  ;;  %9253 = vpow2.f32 %v8104_v4 }
 0x2c2   : > { %v9236_v15 = vpop.eup %9235  ;;  %v6748_v48 = vmul.f32 %v9695_v6, %v12308_v55  ;;  %9255 = vpow2.f32 %v8109_v61  ;;  %v8107_v55 = vmul.f32 -1.442695, %v6753_v10  ;;  %v5205_v61 = vmul.f32 %v11824_v17, %v11980_v30 }
 0x2c3   : > { %6421 = vrot.lane.b32.xlu0 %v6405_v49, %s9825_s17  ;;  %v9238_v44 = vpop.eup %9237  ;;  %v6408_v53 = vmul.f32 %v9236_v15, %v6388_v14  ;;  %v9696_v14 = vld [vmem:[%s11095_s15 + $0xe8] sm:$0xff]  ;;  %v5206_v10 = vmul.f32 %v11844_v35, %v11991_v56  ;;  %s9827_s15 = smov 96  }
 0x2c4   : > { %v9240_v62 = vpop.eup %9239  ;;  %v6242_v31 = vadd.f32 1.0, %v9238_v44  ;;  %v6756_v15 = vadd.f32 %v6748_v48, %v12059_v19  ;;  %v6746_v21 = vmul.f32 %v9696_v14, %v12320_v24 }
 0x2c5   : > { %6427 = vrot.lane.b32.xlu1 %v6408_v53, %s9825_s17  ;;  %v9242_v43 = vpop.eup %9241  ;;  %v6384_v49 = vpop.permute.xlu1 %6383  ;;  %v6783_v6 = vadd.f32 1.0, %v9240_v62 }
 0x2c6   : > { %v6406_v20 = vmul.f32 %v9242_v43, %v6384_v49  ;;  %v9244_v22 = vpop.eup %9243  ;;  %v6394_v53 = vpop.permute.xlu0 %6393  ;;  %9257 = vrcp.f32 %v6242_v31  ;;  %v8110_v8 = vmul.f32 -1.442695, %v6756_v15  ;;  %v6754_v4 = vadd.f32 %v6746_v21, %v12082_v1 }
 0x2c7   : > { %v9246_v51 = vpop.eup %9245  ;;  %v6411_v7 = vmul.f32 %v9244_v22, %v6394_v53  ;;  %9259 = vrcp.f32 %v6783_v6  ;;  %v5203_v53 = vmul.f32 %v11820_v3, %v12004_v12 }
 0x2c8   : > { %v9248_v38 = vpop.eup %9247  ;;  %v6781_v43 = vadd.f32 1.0, %v9246_v51  ;;  %9261 = vpow2.f32 %v8107_v55  ;;  %v8108_v15 = vmul.f32 -1.442695, %v6754_v4  ;;  %v5213_v51 = vadd.f32 %v5205_v61, %v11781_v5 }
 0x2c9   : > { %6423 = vrot.lane.b32.xlu1 %v6406_v20, %s9825_s17  ;;  %6433 = vrot.lane.b32.xlu0 %v6411_v7, %s9825_s17  ;;  %v9250_v44 = vpop.eup %9249  ;;  %9263 = vpow2.f32 %v8110_v8  ;;  %v6396_v31 = vpop.permute.xlu1 %6395  ;;  %v6784_v7 = vadd.f32 1.0, %v9248_v38  ;;  %v5214_v55 = vadd.f32 %v5206_v10, %v11788_v57 }
 0x2ca   : > { %v6390_v48 = vpop.permute.xlu0 %6389  ;;  %v9252_v62 = vpop.eup %9251  ;;  %9265 = vrcp.f32 %v6781_v43  ;;  %v8017_v38 = vmul.f32 -1.442695, %v5213_v51 }
 0x2cb   : > { %v6409_v49 = vmul.f32 %v9250_v44, %v6390_v48  ;;  %v9254_v20 = vpop.eup %9253  ;;  %v6412_v22 = vmul.f32 %v9252_v62, %v6396_v31  ;;  %9267 = vrcp.f32 %v6784_v7  ;;  %v8018_v43 = vmul.f32 -1.442695, %v5214_v55 }
 0x2cc   : > { %v9256_v14 = vpop.eup %9255  ;;  %v6782_v56 = vadd.f32 1.0, %v9254_v20  ;;  %9269 = vpow2.f32 %v8108_v15  ;;  %v5204_v62 = vmul.f32 %v11838_v40, %v12033_v46 }
 0x2cd   : > { %6429 = vrot.lane.b32.xlu0 %v6409_v49, %s9825_s17  ;;  %6435 = vrot.lane.b32.xlu1 %v6412_v22, %s9825_s17  ;;  %v6392_v21 = vpop.permute.xlu1 %6391  ;;  %v6787_v4 = vadd.f32 1.0, %v9256_v14  ;;  %v5211_v49 = vadd.f32 %v5203_v53, %v11785_v36  ;;  %v5209_v14 = vmul.f32 %v11885_v27, %v12043_v60 }
 0x2ce   : > { %v6930_v44 = vpop.permute.xlu0 %6929  ;;  %9271 = vrcp.f32 %v6782_v56  ;;  %v5212_v22 = vadd.f32 %v5204_v62, %v11793_v29 }
 0x2cf   : > { %9273 = vpow2.f32 %v8017_v38  ;;  %v8015_v15 = vmul.f32 -1.442695, %v5211_v49  ;;  %v5210_v38 = vmul.f32 %v11890_v16, %v12072_v23 }
 0x2d0   : > { %v9258_v30 = vpop.eup %9257  ;;  %9275 = vrcp.f32 %v6787_v4  ;;  %v8016_v56 = vmul.f32 -1.442695, %v5212_v22 }
 0x2d1   : > { %v6410_v6 = vmul.f32 %v9258_v30, %v6392_v21  ;;  %v9260_v8 = vpop.eup %9259  ;;  %9277 = vpow2.f32 %v8018_v43  ;;  %v6932_v30 = vpop.permute.xlu1 %6931  ;;  %v5207_v43 = vmul.f32 %v11866_v2, %v12064_v25 }
 0x2d2   : > { %v9262_v48 = vpop.eup %9261  ;;  %v6951_v61 = vmul.f32 %v9260_v8, %v6930_v44  ;;  %v6926_v31 = vpop.permute.xlu0 %6925 }
 0x2d3   : > { %6431 = vrot.lane.b32.xlu1 %v6410_v6, %s9825_s17  ;;  %v9264_v10 = vpop.eup %9263  ;;  %v6785_v7 = vadd.f32 1.0, %v9262_v48  ;;  %v5217_v6 = vadd.f32 %v5209_v14, %v11796_v9 }
 0x2d4   : > { %6969 = vrot.lane.b32.xlu0 %v6951_v61, %s9825_s17  ;;  %v9266_v12 = vpop.eup %9265  ;;  %v6788_v46 = vadd.f32 1.0, %v9264_v10  ;;  %v5218_v10 = vadd.f32 %v5210_v38, %v11807_v63 }
 0x2d5   : > { %v6949_v20 = vmul.f32 %v9266_v12, %v6926_v31  ;;  %v9268_v51 = vpop.eup %9267  ;;  %9279 = vrcp.f32 %v6785_v7  ;;  %v6928_v8 = vpop.permute.xlu1 %6927  ;;  %v8021_v62 = vmul.f32 -1.442695, %v5217_v6 }
 0x2d6   : > { %v9270_v55 = vpop.eup %9269  ;;  %v6952_v21 = vmul.f32 %v9268_v51, %v6932_v30  ;;  %9281 = vpow2.f32 %v8015_v15  ;;  %v13486_v51 = vld [vmem:[#allocation13_spill] sm:$0xff]  ;;  %v8022_v14 = vmul.f32 -1.442695, %v5218_v10  ;;  %v13489_v10 = vld [vmem:[#allocation10_spill] sm:$0xff] }
 0x2d7   : > { %9283 = vrcp.f32 %v6788_v46  ;;  %v6786_v60 = vadd.f32 1.0, %v9270_v55  ;;  %v6938_v61 = vpop.permute.xlu0 %6937  ;;  %v5215_v25 = vadd.f32 %v5207_v43, %v13486_v51 }
 0x2d8   : > { %6965 = vrot.lane.b32.xlu0 %v6949_v20, %s9825_s17  ;;  %6971 = vrot.lane.b32.xlu1 %v6952_v21, %s9825_s17  ;;  %v9272_v53 = vpop.eup %9271  ;;  %9285 = vpow2.f32 %v8016_v56  ;;  %v13485_v20 = vld [vmem:[#allocation12_spill] sm:$0xff]  ;;  %v13487_v56 = vld [vmem:[#allocation15_spill] sm:$0xff] }
 0x2d9   : > { %v6950_v44 = vmul.f32 %v9272_v53, %v6928_v8  ;;  %v9274_v4 = vpop.eup %9273  ;;  %9287 = vrcp.f32 %v6786_v60  ;;  %v5208_v15 = vmul.f32 %v13485_v20, %v12092_v47  ;;  %v8019_v38 = vmul.f32 -1.442695, %v5215_v25 }
 0x2da   : > { %v9276_v48 = vpop.eup %9275  ;;  %v5245_v23 = vadd.f32 1.0, %v9274_v4  ;;  %9289 = vpow2.f32 %v8021_v62  ;;  %v13488_v62 = vld [vmem:[#allocation50_spill] sm:$0xff] }
 0x2db   : > { %v9278_v49 = vpop.eup %9277  ;;  %v6955_v12 = vmul.f32 %v9276_v48, %v6938_v61  ;;  %v6934_v22 = vpop.permute.xlu0 %6933  ;;  %v5216_v53 = vadd.f32 %v5208_v15, %v13487_v56 }
 0x2dc   : > { %6967 = vrot.lane.b32.xlu1 %v6950_v44, %s9825_s17  ;;  %v5246_v7 = vadd.f32 1.0, %v9278_v49  ;;  %9291 = vrcp.f32 %v5245_v23 }
 0x2dd   : > { %6977 = vrot.lane.b32.xlu0 %v6955_v12, %s9825_s17  ;;  %v8020_v4 = vmul.f32 -1.442695, %v5216_v53  ;;  %v5751_v12 = vmul.f32 %v13489_v10, %v13488_v62 }
 0x2de   : > { %9293 = vrcp.f32 %v5246_v7 }
 0x2df   : > { %v9280_v31 = vpop.eup %9279  ;;  %v6940_v21 = vpop.permute.xlu1 %6939  ;;  %9295 = vpow2.f32 %v8022_v14  ;;  %v13490_v14 = vld [vmem:[#allocation16_spill] sm:$0xff] }
 0x2e0   : > { %v6953_v30 = vmul.f32 %v9280_v31, %v6934_v22  ;;  %v9282_v46 = vpop.eup %9281  ;;  %9297 = vpow2.f32 %v8019_v38 }
 0x2e1   : > { %v9284_v55 = vpop.eup %9283  ;;  %v5243_v47 = vadd.f32 1.0, %v9282_v46  ;;  %v13491_v46 = vld [vmem:[#allocation54_spill] sm:$0xff] }
 0x2e2   : > { %6973 = vrot.lane.b32.xlu0 %v6953_v30, %s9825_s17  ;;  %v6956_v6 = vmul.f32 %v9284_v55, %v6940_v21  ;;  %v9286_v8 = vpop.eup %9285  ;;  %v5759_v30 = vadd.f32 %v5751_v12, %v13490_v14  ;;  %v13492_v55 = vld [vmem:[#allocation9_spill] sm:$0xff] }
 0x2e3   : > { %v9288_v60 = vpop.eup %9287  ;;  %v6936_v44 = vpop.permute.xlu1 %6935  ;;  %v5244_v43 = vadd.f32 1.0, %v9286_v8  ;;  %9299 = vrcp.f32 %v5243_v47  ;;  %v5752_v21 = vmul.f32 %v13492_v55, %v13491_v46 }
 0x2e4   : > { %6979 = vrot.lane.b32.xlu1 %v6956_v6, %s9825_s17  ;;  %v6954_v48 = vmul.f32 %v9288_v60, %v6936_v44  ;;  %v9290_v61 = vpop.eup %9289  ;;  %9301 = vpow2.f32 %v8020_v4  ;;  %v13493_v44 = vld [vmem:[#allocation52_spill] sm:$0xff] }
 0x2e5   : > { %9303 = vrcp.f32 %v5244_v43  ;;  %v5249_v31 = vadd.f32 1.0, %v9290_v61 }
 0x2e6   : > { %v9292_v49 = vpop.eup %9291 }
 0x2e7   : > { %v5269_v15 = vmul.f32 %v9292_v49, %v11824_v17  ;;  %9305 = vrcp.f32 %v5249_v31  ;;  %v13494_v17 = vld [vmem:[#allocation21_spill] sm:$0xff] }
 0x2e8   : > { %6975 = vrot.lane.b32.xlu1 %v6954_v48, %s9825_s17  ;;  %v9294_v23 = vpop.eup %9293  ;;  %v5749_v4 = vmul.f32 %v13494_v17, %v13493_v44  ;;  %v8049_v48 = vmul.f32 -1.442695, %v5759_v30 }
 0x2e9   : > { %v9296_v7 = vpop.eup %9295  ;;  %v5270_v25 = vmul.f32 %v9294_v23, %v11844_v35  ;;  %v5760_v35 = vadd.f32 %v5752_v21, %v11832_v33  ;;  %v13495_v23 = vld [vmem:[#allocation20_spill] sm:$0xff] }
 0x2ea   : > { %v5250_v6 = vadd.f32 1.0, %v9296_v7  ;;  %v9298_v8 = vpop.eup %9297  ;;  %v5750_v31 = vmul.f32 %v13495_v23, %v12138_v32  ;;  %v13496_v7 = vld [vmem:[#allocation19_spill] sm:$0xff] }
 0x2eb   : > { %v5247_v61 = vadd.f32 1.0, %v9298_v8  ;;  %v13497_v8 = vld [vmem:[#allocation17_spill] sm:$0xff] }
 0x2ec   : > { %9307 = vrcp.f32 %v5250_v6  ;;  %v5758_v32 = vadd.f32 %v5750_v31, %v13497_v8 }
 0x2ed   : > { %v9300_v60 = vpop.eup %9299  ;;  %9309 = vpow2.f32 %v8049_v48 }
 0x2ee   : > { %v9302_v43 = vpop.eup %9301  ;;  %v5267_v12 = vmul.f32 %v9300_v60, %v11820_v3  ;;  %9311 = vrcp.f32 %v5247_v61 }
 0x2ef   : > { %v9304_v62 = vpop.eup %9303  ;;  %v5248_v30 = vadd.f32 1.0, %v9302_v43 }
 0x2f0   : > { %v5268_v46 = vmul.f32 %v9304_v62, %v11838_v40  ;;  %v8048_v40 = vmul.f32 -1.442695, %v5758_v32  ;;  %v13498_v62 = vld [vmem:[#allocation57_spill] sm:$0xff] }
 0x2f1   : > { %v9306_v3 = vpop.eup %9305 }
 0x2f2   : > { %v5273_v44 = vmul.f32 %v9306_v3, %v11885_v27  ;;  %v13499_v27 = vld [vmem:[#allocation28_spill] sm:$0xff] }
 0x2f3   : > { %v13500_v3 = vld [vmem:[#allocation60_spill] sm:$0xff] }
 0x309   : > { %v5336_v22 = vpop.permute.xlu0 %5335 }
 0x30a   : > { %v5357_v53 = vadd.f32 %v5336_v22, %v5269_v15  ;;  %v5757_v15 = vadd.f32 %v5749_v4, %v13496_v7  ;;  %v8050_v22 = vmul.f32 -1.442695, %v5760_v35  ;;  %v9308_v4 = vpop.eup %9307 }
 0x30b   : > { %v5338_v38 = vpop.permute.xlu1 %5337  ;;  %v9310_v35 = vpop.eup %9309  ;;  %v5274_v43 = vmul.f32 %v9308_v4, %v11890_v16 }
 0x30c   : > { %v12371_v47 = vadd.f32 %v5338_v38, %v5270_v25  ;;  %5375 = vrot.lane.b32.xlu0 %v5357_v53, %s9825_s17  ;;  %v8047_v38 = vmul.f32 -1.442695, %v5757_v15  ;;  %9313 = vpow2.f32 %v8050_v22  ;;  %v9312_v61 = vpop.eup %9311  ;;  %v5791_v15 = vadd.f32 1.0, %v9310_v35  ;;  %v13503_v35 = vld [vmem:[#allocation24_spill] sm:$0xff] }
 0x30d   : > { %v5332_v49 = vpop.permute.xlu0 %5331  ;;  %9315 = vrcp.f32 %v5248_v30 }
 0x30e   : > { %5377 = vrot.lane.b32.xlu1 %v12371_v47, %s9825_s17  ;;  %v5355_v25 = vadd.f32 %v5332_v49, %v5267_v12  ;;  %9317 = vpow2.f32 %v8047_v38  ;;  %v5755_v12 = vmul.f32 %v13499_v27, %v13498_v62  ;;  %v13501_v38 = vld [vmem:[#allocation29_spill] sm:$0xff] }
 0x30f   : > { %9319 = vpow2.f32 %v8048_v40  ;;  %v5756_v32 = vmul.f32 %v13501_v38, %v13500_v3 }
 0x310   : > { %5600 = vrot.lane.b32.xlu0 %v5357_v53, %s9827_s15  ;;  %v5334_v21 = vpop.permute.xlu1 %5333  ;;  %9321 = vtanh.f32 %v5357_v53  ;;  %v13502_v53 = vld [vmem:[#allocation59_spill] sm:$0xff] }
 0x311   : > { %v5356_v6 = vadd.f32 %v5334_v21, %v5268_v46  ;;  %v5344_v60 = vpop.permute.xlu0 %5343  ;;  %v5271_v46 = vmul.f32 %v9312_v61, %v11866_v2  ;;  %v5763_v21 = vadd.f32 %v5755_v12, %v11850_v18  ;;  %9323 = vrcp.f32 %v5791_v15  ;;  %v13505_v15 = vld [vmem:[#allocation11_spill] sm:$0xff] }
 0x312   : > { %5602 = vrot.lane.b32.xlu1 %v12371_v47, %s9827_s15  ;;  %v12392_v48 = vadd.f32 %v5344_v60, %v5273_v44  ;;  %9325 = vtanh.f32 %v12371_v47 }
 0x313   : > { %9327 = vtanh.f32 %v5355_v25  ;;  %v8053_v61 = vmul.f32 -1.442695, %v5763_v21 }
 0x314   : > { %5371 = vrot.lane.b32.xlu0 %v5355_v25, %s9825_s17 }
 0x315   : > { %v5340_v22 = vpop.permute.xlu0 %5339 }
 0x316   : > { %5373 = vrot.lane.b32.xlu1 %v5356_v6, %s9825_s17  ;;  %v9314_v30 = vpop.eup %9313  ;;  %v12410_v60 = vadd.f32 %v5340_v22, %v5271_v46 }
 0x317   : > { %v9316_v16 = vpop.eup %9315  ;;  %v5792_v44 = vadd.f32 1.0, %v9314_v30 }
 0x318   : > { %5596 = vrot.lane.b32.xlu0 %v5355_v25, %s9827_s15  ;;  %v5346_v49 = vpop.permute.xlu1 %5345  ;;  %v9318_v40 = vpop.eup %9317  ;;  %v5272_v2 = vmul.f32 %v9316_v16, %v13485_v20  ;;  %v13504_v20 = vld [vmem:[#allocation25_spill] sm:$0xff] }
 0x319   : > { %v12400_v31 = vadd.f32 %v5346_v49, %v5274_v43  ;;  %v5753_v43 = vmul.f32 %v13503_v35, %v13502_v53  ;;  %v5764_v49 = vadd.f32 %v5756_v32, %v11872_v39  ;;  %v5789_v12 = vadd.f32 1.0, %v9318_v40  ;;  %v9320_v47 = vpop.eup %9319 }
 0x31a   : > { %5598 = vrot.lane.b32.xlu1 %v5356_v6, %s9827_s15  ;;  %9329 = vrcp.f32 %v5792_v44  ;;  %v5754_v25 = vmul.f32 %v13504_v20, %v12176_v37  ;;  %v9322_v46 = vpop.eup %9321  ;;  %v5790_v16 = vadd.f32 1.0, %v9320_v47  ;;  %v13506_v44 = vld [vmem:[#allocation18_spill] sm:$0xff] }
 0x31b   : > { %9331 = vtanh.f32 %v5356_v6  ;;  %v5761_v22 = vadd.f32 %v5753_v43, %v13505_v15  ;;  %v8054_v30 = vmul.f32 -1.442695, %v5764_v49  ;;  %v9324_v21 = vpop.eup %9323 }
 0x31c   : > { %5383 = vrot.lane.b32.xlu0 %v12392_v48, %s9825_s17  ;;  %v5342_v4 = vpop.permute.xlu1 %5341  ;;  %9333 = vpow2.f32 %v8053_v61  ;;  %v9326_v3 = vpop.eup %9325  ;;  %v5762_v6 = vadd.f32 %v5754_v25, %v13506_v44  ;;  %v5815_v40 = vmul.f32 %v9324_v21, %v13489_v10  ;;  %v13507_v25 = vld [vmem:[#allocation61_spill] sm:$0xff] }
 0x31d   : > { %v12421_v62 = vadd.f32 %v5342_v4, %v5272_v2  ;;  %9335 = vrcp.f32 %v5789_v12  ;;  %v8051_v32 = vmul.f32 -1.442695, %v5761_v22  ;;  %v9328_v4 = vpop.eup %9327  ;;  %v5882_v37 = vpop.permute.xlu0 %5881  ;;  %v13508_v22 = vld [vmem:[#allocation35_spill] sm:$0xff] }
 0x31e   : > { %5385 = vrot.lane.b32.xlu1 %v12400_v31, %s9825_s17  ;;  %9337 = vpow2.f32 %v8054_v30  ;;  %v8052_v53 = vmul.f32 -1.442695, %v5762_v6  ;;  %v12437_v43 = vadd.f32 %v5882_v37, %v5815_v40  ;;  %v6295_v30 = vmul.f32 %v13508_v22, %v13507_v25  ;;  %v13510_v40 = vld [vmem:[#allocation31_spill] sm:$0xff]  ;;  %v13512_v25 = vld [vmem:[#allocation14_spill] sm:$0xff] }
 0x31f   : > { %9339 = vrcp.f32 %v5790_v16 }
 0x320   : > { %5608 = vrot.lane.b32.xlu0 %v12392_v48, %s9827_s15  ;;  %9341 = vpow2.f32 %v8051_v32  ;;  %v5884_v49 = vpop.permute.xlu1 %5883  ;;  %v6303_v32 = vadd.f32 %v6295_v30, %v11893_v41 }
 0x321   : > { %9343 = vpow2.f32 %v8052_v53  ;;  %v5878_v21 = vpop.permute.xlu0 %5877 }
 0x322   : > { %5610 = vrot.lane.b32.xlu1 %v12400_v31, %s9827_s15  ;;  %9345 = vtanh.f32 %v12392_v48 }
 0x324   : > { %5379 = vrot.lane.b32.xlu0 %v12410_v60, %s9825_s17  ;;  %v9330_v2 = vpop.eup %9329 }
 0x325   : > { %v9332_v61 = vpop.eup %9331  ;;  %v5816_v47 = vmul.f32 %v9330_v2, %v13492_v55  ;;  %v6293_v2 = vmul.f32 %v13510_v40, %v12193_v28  ;;  %v13511_v28 = vld [vmem:[#allocation33_spill] sm:$0xff] }
 0x326   : > { %5381 = vrot.lane.b32.xlu1 %v12421_v62, %s9825_s17  ;;  %v9334_v12 = vpop.eup %9333  ;;  %v6294_v48 = vmul.f32 %v13511_v28, %v12212_v0 }
 0x327   : > { %v9336_v10 = vpop.eup %9335  ;;  %v5795_v16 = vadd.f32 1.0, %v9334_v12  ;;  %v8081_v12 = vmul.f32 -1.442695, %v6303_v32  ;;  %v6301_v30 = vadd.f32 %v6293_v2, %v13512_v25 }
 0x328   : > { %5604 = vrot.lane.b32.xlu0 %v12410_v60, %s9827_s15  ;;  %v5813_v6 = vmul.f32 %v9336_v10, %v13494_v17  ;;  %v5880_v17 = vpop.permute.xlu1 %5879 }
 0x329   : > { %9347 = vrcp.f32 %v5795_v16 }
 0x32a   : > { %5606 = vrot.lane.b32.xlu1 %v12421_v62, %s9827_s15  ;;  %v12458_v53 = vadd.f32 %v5878_v21, %v5813_v6  ;;  %9349 = vtanh.f32 %v12410_v60  ;;  %v13513_v21 = vld [vmem:[#allocation22_spill] sm:$0xff]  ;;  %v5890_v6 = vpop.permute.xlu0 %5889 }
 0x32b   : > { %9351 = vtanh.f32 %v12400_v31  ;;  %v8079_v31 = vmul.f32 -1.442695, %v6301_v30  ;;  %v6302_v0 = vadd.f32 %v6294_v48, %v13513_v21 }
 0x32c   : > { %5511 = vrot.lane.b32.xlu0 %v9322_v46, %s9826_s11  ;;  %v12445_v46 = vadd.f32 %v5884_v49, %v5816_v47 }
 0x32d   : > { %v8080_v2 = vmul.f32 -1.442695, %v6302_v0  ;;  %v13516_v0 = vld [vmem:[#allocation44_spill] sm:$0xff] }
 0x32e   : > { %5513 = vrot.lane.b32.xlu1 %v9326_v3, %s9826_s11  ;;  %v9338_v3 = vpop.eup %9337 }
 0x32f   : > { %v9340_v55 = vpop.eup %9339 }
 0x330   : > { %5507 = vrot.lane.b32.xlu0 %v9328_v4, %s9826_s11  ;;  %v13509_v4 = vld [vmem:[#allocation37_spill] sm:$0xff]  ;;  %v9342_v49 = vpop.eup %9341  ;;  %v5814_v47 = vmul.f32 %v9340_v55, %v13495_v23 }
 0x331   : > { %v6296_v37 = vmul.f32 %v13509_v4, %v12200_v26  ;;  %v5793_v60 = vadd.f32 1.0, %v9342_v49  ;;  %v9344_v23 = vpop.eup %9343  ;;  %v13515_v49 = vld [vmem:[#allocation42_spill] sm:$0xff] }
 0x332   : > { %5509 = vrot.lane.b32.xlu1 %v9332_v61, %s9826_s11  ;;  %v5796_v61 = vadd.f32 1.0, %v9338_v3  ;;  %v12471_v10 = vadd.f32 %v5880_v17, %v5814_v47  ;;  %v9346_v3 = vpop.eup %9345  ;;  %v5794_v32 = vadd.f32 1.0, %v9344_v23 }
 0x333   : > { %v6304_v26 = vadd.f32 %v6296_v37, %v11913_v59  ;;  %v9348_v55 = vpop.eup %9347 }
 0x334   : > { %5921 = vrot.lane.b32.xlu0 %v12437_v43, %s9825_s17  ;;  %9353 = vrcp.f32 %v5796_v61  ;;  %v9350_v37 = vpop.eup %9349  ;;  %v5892_v61 = vpop.permute.xlu1 %5891  ;;  %v5819_v47 = vmul.f32 %v9348_v55, %v13499_v27 }
 0x335   : > { %9355 = vpow2.f32 %v8081_v12  ;;  %v8082_v16 = vmul.f32 -1.442695, %v6304_v26  ;;  %v9352_v17 = vpop.eup %9351 }
 0x336   : > { %5923 = vrot.lane.b32.xlu1 %v12445_v46, %s9825_s17  ;;  %9357 = vtanh.f32 %v12421_v62  ;;  %v13514_v62 = vld [vmem:[#allocation62_spill] sm:$0xff]  ;;  %v12487_v30 = vadd.f32 %v5890_v6, %v5819_v47  ;;  %v13518_v6 = vld [vmem:[#allocation39_spill] sm:$0xff] }
 0x337   : > { %9359 = vrcp.f32 %v5793_v60  ;;  %v6299_v12 = vmul.f32 %v13515_v49, %v13514_v62  ;;  %v5886_v60 = vpop.permute.xlu0 %5885 }
 0x338   : > { %6145 = vrot.lane.b32.xlu0 %v12437_v43, %s9827_s15  ;;  %9361 = vpow2.f32 %v8082_v16 }
 0x339   : > { %9363 = vpow2.f32 %v8079_v31  ;;  %v6307_v16 = vadd.f32 %v6299_v12, %v11935_v54 }
 0x33a   : > { %6147 = vrot.lane.b32.xlu1 %v12445_v46, %s9827_s15  ;;  %9365 = vrcp.f32 %v5794_v32  ;;  %v5888_v32 = vpop.permute.xlu1 %5887 }
 0x33b   : > { %9367 = vpow2.f32 %v8080_v2  ;;  %v8085_v12 = vmul.f32 -1.442695, %v6307_v16  ;;  %v13520_v16 = vld [vmem:[#allocation26_spill] sm:$0xff] }
 0x33c   : > { %5917 = vrot.lane.b32.xlu0 %v12458_v53, %s9825_s17  ;;  %9369 = vtanh.f32 %v12437_v43  ;;  %v13521_v43 = vld [vmem:[#allocation30_spill] sm:$0xff] }
 0x33e   : > { %5919 = vrot.lane.b32.xlu1 %v12471_v10, %s9825_s17  ;;  %v9354_v26 = vpop.eup %9353 }
 0x33f   : > { %v9356_v48 = vpop.eup %9355  ;;  %v5820_v31 = vmul.f32 %v9354_v26, %v13501_v38  ;;  %v6426_v26 = vpop.permute.xlu0 %6425 }
 0x340   : > { %6141 = vrot.lane.b32.xlu0 %v12458_v53, %s9827_s15  ;;  %v9358_v23 = vpop.eup %9357  ;;  %v6335_v55 = vadd.f32 1.0, %v9356_v48 }
 0x341   : > { %v9360_v27 = vpop.eup %9359 }
 0x342   : > { %6143 = vrot.lane.b32.xlu1 %v12471_v10, %s9827_s15  ;;  %v9362_v62 = vpop.eup %9361  ;;  %9371 = vrcp.f32 %v6335_v55 }
 0x343   : > { %v9364_v47 = vpop.eup %9363  ;;  %9373 = vpow2.f32 %v8085_v12  ;;  %v13522_v12 = vld [vmem:[#allocation64_spill] sm:$0xff] }
 0x344   : > { %5519 = vrot.lane.b32.xlu0 %v9346_v3, %s9826_s11  ;;  %v6300_v3 = vmul.f32 %v13516_v0, %v12236_v52  ;;  %v5817_v52 = vmul.f32 %v9360_v27, %v13503_v35  ;;  %v9366_v48 = vpop.eup %9365  ;;  %v12512_v35 = vpop.permute.xlu1 %6427  ;;  %v6333_v27 = vadd.f32 1.0, %v9364_v47  ;;  %9375 = vtanh.f32 %v12458_v53  ;;  %v13523_v53 = vld [vmem:[#allocation49_spill] sm:$0xff] }
 0x345   : > { %v5818_v21 = vmul.f32 %v9366_v48, %v13504_v20  ;;  %9377 = vtanh.f32 %v12445_v46  ;;  %v6839_v47 = vmul.f32 %v13523_v53, %v13522_v12  ;;  %v13524_v20 = vld [vmem:[#allocation46_spill] sm:$0xff] }
 0x346   : > { %5521 = vrot.lane.b32.xlu1 %v9352_v17, %s9826_s11  ;;  %v12498_v17 = vadd.f32 %v5892_v61, %v5820_v31  ;;  %v6308_v38 = vadd.f32 %v6300_v3, %v11953_v45  ;;  %v6336_v61 = vadd.f32 1.0, %v9362_v62  ;;  %v12510_v3 = vadd.f32 %v5886_v60, %v5817_v52  ;;  %v9368_v45 = vpop.eup %9367 }
 0x347   : > { %v12522_v55 = vadd.f32 %v5888_v32, %v5818_v21  ;;  %v6334_v62 = vadd.f32 1.0, %v9368_v45  ;;  %v9370_v46 = vpop.eup %9369  ;;  %v6847_v21 = vadd.f32 %v6839_v47, %v11971_v11  ;;  %v13525_v32 = vld [vmem:[#allocation65_spill] sm:$0xff] }
 0x348   : > { %5515 = vrot.lane.b32.xlu0 %v9350_v37, %s9826_s11  ;;  %v13517_v37 = vld [vmem:[#allocation63_spill] sm:$0xff]  ;;  %v8086_v54 = vmul.f32 -1.442695, %v6308_v38  ;;  %9379 = vrcp.f32 %v6336_v61  ;;  %v6837_v38 = vmul.f32 %v13524_v20, %v12266_v58  ;;  %v12528_v52 = vpop.permute.xlu1 %6423 }
 0x349   : > { %v6297_v2 = vmul.f32 %v13518_v6, %v13517_v37  ;;  %9381 = vrcp.f32 %v6333_v27  ;;  %v8113_v12 = vmul.f32 -1.442695, %v6847_v21 }
 0x34a   : > { %5517 = vrot.lane.b32.xlu1 %v9358_v23, %s9826_s11  ;;  %v13519_v23 = vld [vmem:[#allocation40_spill] sm:$0xff]  ;;  %9383 = vpow2.f32 %v8086_v54  ;;  %v13526_v54 = vld [vmem:[#allocation51_spill] sm:$0xff] }
 0x34b   : > { %v6298_v37 = vmul.f32 %v13519_v23, %v12248_v50  ;;  %v6305_v31 = vadd.f32 %v6297_v2, %v13520_v16  ;;  %v6422_v2 = vpop.permute.xlu0 %6421  ;;  %9385 = vtanh.f32 %v12471_v10  ;;  %v6840_v48 = vmul.f32 %v13526_v54, %v13525_v32 }
 0x34c   : > { %5929 = vrot.lane.b32.xlu0 %v12487_v30, %s9825_s17  ;;  %v9372_v58 = vpop.eup %9371 }
 0x34d   : > { %v8083_v50 = vmul.f32 -1.442695, %v6305_v31  ;;  %v6306_v60 = vadd.f32 %v6298_v37, %v13521_v43  ;;  %v13527_v37 = vld [vmem:[#allocation34_spill] sm:$0xff]  ;;  %v9374_v10 = vpop.eup %9373  ;;  %v6848_v47 = vadd.f32 %v6840_v48, %v11999_v42  ;;  %v6359_v32 = vmul.f32 %v9372_v58, %v13508_v22 }
 0x34e   : > { %5931 = vrot.lane.b32.xlu1 %v12498_v17, %s9825_s17  ;;  %v6845_v61 = vadd.f32 %v6837_v38, %v13527_v37  ;;  %v9376_v27 = vpop.eup %9375 }
 0x34f   : > { %9387 = vpow2.f32 %v8083_v50  ;;  %v8084_v45 = vmul.f32 -1.442695, %v6306_v60  ;;  %v12539_v31 = vpop.permute.xlu0 %6433  ;;  %v12544_v50 = vpop.permute.xlu1 %6435  ;;  %v12552_v16 = vadd.f32 %v6426_v26, %v6359_v32  ;;  %v8114_v48 = vmul.f32 -1.442695, %v6848_v47  ;;  %v13529_v26 = vld [vmem:[#allocation38_spill] sm:$0xff] }
 0x350   : > { %6153 = vrot.lane.b32.xlu0 %v12487_v30, %s9827_s15  ;;  %9389 = vrcp.f32 %v6334_v62  ;;  %v9378_v60 = vpop.eup %9377  ;;  %v8111_v38 = vmul.f32 -1.442695, %v6845_v61 }
 0x351   : > { %9391 = vpow2.f32 %v8084_v45  ;;  %v6339_v45 = vadd.f32 1.0, %v9374_v10 }
 0x352   : > { %6155 = vrot.lane.b32.xlu1 %v12498_v17, %s9827_s15  ;;  %v9380_v62 = vpop.eup %9379  ;;  %9393 = vpow2.f32 %v8113_v12 }
 0x353   : > { %v9382_v37 = vpop.eup %9381  ;;  %v12554_v25 = vpop.permute.xlu0 %6429  ;;  %v6360_v22 = vmul.f32 %v9380_v62, %v13509_v4  ;;  %9395 = vpow2.f32 %v8111_v38 }
 0x354   : > { %5925 = vrot.lane.b32.xlu0 %v12510_v3, %s9825_s17  ;;  %v9384_v43 = vpop.eup %9383  ;;  %v6357_v58 = vmul.f32 %v9382_v37, %v13510_v40  ;;  %v12558_v61 = vpop.permute.xlu1 %6431  ;;  %9397 = vtanh.f32 %v12487_v30  ;;  %v13530_v40 = vld [vmem:[#allocation67_spill] sm:$0xff]  ;;  %v13531_v37 = vld [vmem:[#allocation53_spill] sm:$0xff]  ;;  %v13533_v30 = vld [vmem:[#allocation56_spill] sm:$0xff] }
 0x355   : > { %v9386_v21 = vpop.eup %9385  ;;  %9399 = vrcp.f32 %v6339_v45  ;;  %v6841_v47 = vmul.f32 %v13531_v37, %v13530_v40  ;;  %v13534_v45 = vld [vmem:[#allocation68_spill] sm:$0xff] }
 0x356   : > { %5927 = vrot.lane.b32.xlu1 %v12522_v55, %s9825_s17  ;;  %v6445_v4 = vadd.f32 %v6422_v2, %v6357_v58  ;;  %9401 = vpow2.f32 %v8114_v48 }
 0x357   : > { %9403 = vtanh.f32 %v12510_v3  ;;  %v12572_v38 = vpop.permute.xlu0 %6969  ;;  %v6849_v2 = vadd.f32 %v6841_v47, %v12050_v13 }
 0x358   : > { %6149 = vrot.lane.b32.xlu0 %v12510_v3, %s9827_s15  ;;  %9405 = vtanh.f32 %v12498_v17  ;;  %v12583_v3 = vpop.permute.xlu1 %6971 }
 0x359   : > { %v9388_v42 = vpop.eup %9387 }
 0x35a   : > { %6151 = vrot.lane.b32.xlu1 %v12522_v55, %s9827_s15  ;;  %v6337_v12 = vadd.f32 1.0, %v9388_v42  ;;  %v13532_v42 = vld [vmem:[#allocation66_spill] sm:$0xff] }
 0x35c   : > { %6057 = vrot.lane.b32.xlu0 %v9370_v46, %s9826_s11  ;;  %v13528_v46 = vld [vmem:[#allocation48_spill] sm:$0xff] }
 0x35d   : > { %v6838_v11 = vmul.f32 %v13528_v46, %v12284_v34  ;;  %v9390_v34 = vpop.eup %9389 }
 0x35e   : > { %6059 = vrot.lane.b32.xlu1 %v9378_v60, %s9826_s11  ;;  %v12566_v60 = vadd.f32 %v12512_v35, %v6360_v22  ;;  %v9392_v62 = vpop.eup %9391  ;;  %v6358_v32 = vmul.f32 %v9390_v34, %v13511_v28  ;;  %v6843_v35 = vmul.f32 %v13533_v30, %v13532_v42  ;;  %v12593_v34 = vpop.permute.xlu0 %6965 }
 0x35f   : > { %v6846_v10 = vadd.f32 %v6838_v11, %v13529_v26  ;;  %v6338_v28 = vadd.f32 1.0, %v9392_v62  ;;  %v9394_v17 = vpop.eup %9393  ;;  %v12596_v62 = vpop.permute.xlu1 %6967 }
 0x360   : > { %6053 = vrot.lane.b32.xlu0 %v9376_v27, %s9826_s11  ;;  %v6340_v27 = vadd.f32 1.0, %v9384_v43  ;;  %v12581_v43 = vadd.f32 %v12528_v52, %v6358_v32  ;;  %v9396_v22 = vpop.eup %9395  ;;  %v13536_v52 = vld [vmem:[#allocation41_spill] sm:$0xff]  ;;  %v6879_v47 = vadd.f32 1.0, %v9394_v17 }
 0x361   : > { %v8112_v11 = vmul.f32 -1.442695, %v6846_v10  ;;  %v6851_v58 = vadd.f32 %v6843_v35, %v13536_v52  ;;  %v9398_v10 = vpop.eup %9397 }
 0x362   : > { %6055 = vrot.lane.b32.xlu1 %v9386_v21, %s9826_s11  ;;  %9407 = vrcp.f32 %v6340_v27  ;;  %v13535_v21 = vld [vmem:[#allocation58_spill] sm:$0xff]  ;;  %v8115_v27 = vmul.f32 -1.442695, %v6849_v2  ;;  %v12604_v17 = vpop.permute.xlu0 %6977 }
 0x363   : > { %v6844_v48 = vmul.f32 %v13535_v21, %v13534_v45  ;;  %9409 = vrcp.f32 %v6337_v12  ;;  %v9400_v12 = vpop.eup %9399  ;;  %v8117_v35 = vmul.f32 -1.442695, %v6851_v58 }
 0x364   : > { %6465 = vrot.lane.b32.xlu0 %v12552_v16, %s9825_s17  ;;  %9411 = vtanh.f32 %v12522_v55  ;;  %v9402_v55 = vpop.eup %9401 }
 0x365   : > { %9413 = vpow2.f32 %v8112_v11  ;;  %v6852_v40 = vadd.f32 %v6844_v48, %v12059_v19  ;;  %v9404_v32 = vpop.eup %9403  ;;  %v13537_v11 = vld [vmem:[#allocation55_spill] sm:$0xff]  ;;  %v6880_v13 = vadd.f32 1.0, %v9402_v55 }
 0x366   : > { %6467 = vrot.lane.b32.xlu1 %v12566_v60, %s9825_s17  ;;  %9415 = vrcp.f32 %v6338_v28  ;;  %v6842_v42 = vmul.f32 %v13537_v11, %v12320_v24  ;;  %v9406_v45 = vpop.eup %9405  ;;  %v6363_v28 = vmul.f32 %v9400_v12, %v13515_v49 }
 0x367   : > { %9417 = vpow2.f32 %v8115_v27  ;;  %v8118_v2 = vmul.f32 -1.442695, %v6852_v40  ;;  %v12613_v27 = vpop.permute.xlu1 %6979  ;;  %v6877_v40 = vadd.f32 1.0, %v9396_v22 }
 0x368   : > { %6461 = vrot.lane.b32.xlu0 %v6445_v4, %s9825_s17  ;;  %9419 = vrcp.f32 %v6879_v47  ;;  %v6850_v24 = vadd.f32 %v6842_v42, %v12082_v1  ;;  %v12611_v58 = vadd.f32 %v12539_v31, %v6363_v28 }
 0x369   : > { %9421 = vtanh.f32 %v12552_v16 }
 0x36a   : > { %6463 = vrot.lane.b32.xlu1 %v12581_v43, %s9825_s17  ;;  %9423 = vpow2.f32 %v8117_v35  ;;  %v8116_v31 = vmul.f32 -1.442695, %v6850_v24 }
 0x36b   : > { %9425 = vpow2.f32 %v8118_v2  ;;  %v12633_v35 = vpop.permute.xlu1 %6975 }
 0x36c   : > { %6685 = vrot.lane.b32.xlu0 %v6445_v4, %s9827_s15  ;;  %v9408_v48 = vpop.eup %9407  ;;  %9427 = vtanh.f32 %v6445_v4 }
 0x36d   : > { %v6364_v47 = vmul.f32 %v9408_v48, %v13516_v0  ;;  %9429 = vtanh.f32 %v12566_v60  ;;  %v12627_v0 = vpop.permute.xlu0 %6973 }
 0x36e   : > { %6687 = vrot.lane.b32.xlu1 %v12581_v43, %s9827_s15  ;;  %9431 = vrcp.f32 %v6880_v13 }
 0x36f   : > { %v12622_v42 = vadd.f32 %v12544_v50, %v6364_v47  ;;  %9433 = vrcp.f32 %v6877_v40 }
 0x370   : > { %6065 = vrot.lane.b32.xlu0 %v9398_v10, %s9826_s11  ;;  %v9410_v10 = vpop.eup %9409  ;;  %9435 = vtanh.f32 %v12581_v43 }
 0x371   : > { %v9412_v49 = vpop.eup %9411  ;;  %9437 = vpow2.f32 %v8116_v31 }
 0x372   : > { %6067 = vrot.lane.b32.xlu1 %v9406_v45, %s9826_s11  ;;  %v9414_v12 = vpop.eup %9413 }
 0x373   : > { %v9416_v55 = vpop.eup %9415 }
 0x374   : > { %6061 = vrot.lane.b32.xlu0 %v9404_v32, %s9826_s11  ;;  %v6361_v32 = vmul.f32 %v9410_v10, %v13518_v6  ;;  %v6878_v6 = vadd.f32 1.0, %v9414_v12  ;;  %v6362_v4 = vmul.f32 %v9416_v55, %v13519_v23  ;;  %v9418_v13 = vpop.eup %9417 }
 0x376   : > { %6063 = vrot.lane.b32.xlu1 %v9412_v49, %s9826_s11  ;;  %v12625_v22 = vadd.f32 %v12554_v25, %v6361_v32  ;;  %v9420_v25 = vpop.eup %9419  ;;  %v12642_v50 = vadd.f32 %v12558_v61, %v6362_v4  ;;  %9439 = vrcp.f32 %v6878_v6  ;;  %v6881_v4 = vadd.f32 1.0, %v9418_v13 }
 0x377   : > { %v9422_v23 = vpop.eup %9421  ;;  %v6903_v40 = vmul.f32 %v9420_v25, %v13523_v53  ;;  %9441 = vtanh.f32 %v12611_v58 }
 0x378   : > { %6473 = vrot.lane.b32.xlu0 %v12611_v58, %s9825_s17  ;;  %v9424_v2 = vpop.eup %9423 }
 0x379   : > { %v9426_v43 = vpop.eup %9425  ;;  %v6883_v49 = vadd.f32 1.0, %v9424_v2  ;;  %v12662_v55 = vadd.f32 %v12572_v38, %v6903_v40 }
 0x37a   : > { %6475 = vrot.lane.b32.xlu1 %v12622_v42, %s9825_s17  ;;  %v9428_v28 = vpop.eup %9427  ;;  %v6884_v32 = vadd.f32 1.0, %v9426_v43 }
 0x37b   : > { %v9430_v24 = vpop.eup %9429  ;;  %9443 = vrcp.f32 %v6883_v49 }
 0x37c   : > { %6469 = vrot.lane.b32.xlu0 %v12625_v22, %s9825_s17  ;;  %v9432_v61 = vpop.eup %9431  ;;  %9445 = vtanh.f32 %v12625_v22 }
 0x37d   : > { %v9434_v47 = vpop.eup %9433  ;;  %v6904_v25 = vmul.f32 %v9432_v61, %v13526_v54  ;;  %9447 = vtanh.f32 %v12622_v42 }
 0x37e   : > { %v12644_v45 = vpop.permute.xlu0 %5375  ;;  %6471 = vrot.lane.b32.xlu1 %v12642_v50, %s9825_s17  ;;  %v9436_v6 = vpop.eup %9435  ;;  %9449 = vrcp.f32 %v6884_v32 }
 0x37f   : > { %v9438_v53 = vpop.eup %9437  ;;  %v12676_v13 = vadd.f32 %v12583_v3, %v6904_v25  ;;  %9451 = vrcp.f32 %v6881_v4 }
 0x380   : > { %6601 = vrot.lane.b32.xlu0 %v9422_v23, %s9826_s11  ;;  %v12649_v48 = vpop.permute.xlu1 %5377  ;;  %v6901_v23 = vmul.f32 %v9434_v47, %v13524_v20  ;;  %v9440_v38 = vpop.eup %9439  ;;  %v6882_v20 = vadd.f32 1.0, %v9438_v53  ;;  %9453 = vtanh.f32 %v12642_v50 }
 0x382   : > { %v5601_v10 = vpop.permute.xlu0 %5600  ;;  %6603 = vrot.lane.b32.xlu1 %v9430_v24, %s9826_s11  ;;  %v12679_v54 = vadd.f32 %v12593_v34, %v6901_v23  ;;  %v9442_v24 = vpop.eup %9441  ;;  %9455 = vrcp.f32 %v6882_v20 }
 0x383   : > { %5623 = vst.msk [vmem:[%s12651_s26 + $0x10] sm:$0xff] %vm5620_vm8, %v5601_v10  ;;  %9457 = vtanh.f32 %v12662_v55 }
 0x384   : > { %6597 = vrot.lane.b32.xlu0 %v9428_v28, %s9826_s11  ;;  %v5603_v12 = vpop.permute.xlu1 %5602  ;;  %v6902_v28 = vmul.f32 %v9440_v38, %v13528_v46  ;;  %9459 = vtanh.f32 %v12679_v54 }
 0x385   : > { %5624 = vst.msk [vmem:[%s12651_s26 + $0x18] sm:$0xff] %vm5620_vm8, %v5603_v12  ;;  %v9444_v46 = vpop.eup %9443  ;;  %9461 = vtanh.f32 %v12676_v13 }
 0x386   : > { %v12664_v31 = vpop.permute.xlu0 %5371  ;;  %6599 = vrot.lane.b32.xlu1 %v9436_v6, %s9826_s11  ;;  %v12690_v34 = vadd.f32 %v12596_v62, %v6902_v28  ;;  %v9446_v49 = vpop.eup %9445  ;;  %v6907_v47 = vmul.f32 %v9444_v46, %v13533_v30 }
 0x387   : > { %v9448_v12 = vpop.eup %9447 }
 0x388   : > { %7009 = vrot.lane.b32.xlu0 %v12662_v55, %s9825_s17  ;;  %v12673_v2 = vpop.permute.xlu1 %5373  ;;  %v9450_v62 = vpop.eup %9449  ;;  %v12708_v6 = vadd.f32 %v12604_v17, %v6907_v47  ;;  %9463 = vtanh.f32 %v12690_v34 }
 0x389   : > { %v9452_v32 = vpop.eup %9451  ;;  %v6908_v23 = vmul.f32 %v9450_v62, %v13535_v21 }
 0x38a   : > { %v5597_v43 = vpop.permute.xlu0 %5596  ;;  %7011 = vrot.lane.b32.xlu1 %v12676_v13, %s9825_s17  ;;  %13538 = vst [vmem:[#allocation12_spill] sm:$0xff] %v12708_v6  ;;  %v9454_v25 = vpop.eup %9453  ;;  %v6905_v30 = vmul.f32 %v9452_v32, %v13531_v37  ;;  %9465 = vtanh.f32 %v12708_v6 }
 0x38b   : > { %5621 = vst.msk [vmem:[%s12651_s26] sm:$0xff] %vm5620_vm8, %v5597_v43  ;;  %v12722_v38 = vadd.f32 %v12613_v27, %v6908_v23  ;;  %v9697_v23 = vld [vmem:[%s13283_s3 + $0x10] sm:$0xff] }
 0x38c   : > { %7005 = vrot.lane.b32.xlu0 %v12679_v54, %s9825_s17  ;;  %v5599_v3 = vpop.permute.xlu1 %5598  ;;  %v9456_v17 = vpop.eup %9455  ;;  %v12725_v43 = vadd.f32 %v12627_v0, %v6905_v30  ;;  %v5397_v30 = vmul.f32 %v9697_v23, %v12644_v45  ;;  %v9699_v45 = vld [vmem:[%s13283_s3] sm:$0xff]  ;;  %v9702_v23 = vld [vmem:[%s13283_s3 + $0x38] sm:$0xff] }
 0x38d   : > { %5622 = vst.msk [vmem:[%s12651_s26 + $0x8] sm:$0xff] %vm5620_vm8, %v5599_v3  ;;  %13539 = vst [vmem:[#allocation13_spill] sm:$0xff] %v12722_v38  ;;  %v6906_v37 = vmul.f32 %v9456_v17, %v13537_v11  ;;  %v9458_v3 = vpop.eup %9457 }
 0x38e   : > { %v12694_v10 = vpop.permute.xlu0 %5383  ;;  %7007 = vrot.lane.b32.xlu1 %v12690_v34, %s9825_s17  ;;  %9467 = vtanh.f32 %v12725_v43  ;;  %v9460_v11 = vpop.eup %9459 }
 0x38f   : > { %v12739_v27 = vadd.f32 %v12633_v35, %v6906_v37  ;;  %9469 = vtanh.f32 %v12722_v38  ;;  %v9462_v46 = vpop.eup %9461 }
 0x390   : > { %6609 = vrot.lane.b32.xlu0 %v9442_v24, %s9826_s11  ;;  %v12699_v61 = vpop.permute.xlu1 %5385 }
 0x391   : > { %9471 = vtanh.f32 %v12739_v27 }
 0x392   : > { %v5609_v40 = vpop.permute.xlu0 %5608  ;;  %6611 = vrot.lane.b32.xlu1 %v9448_v12, %s9826_s11 }
 0x393   : > { %5627 = vst.msk [vmem:[%s12651_s26 + $0x30] sm:$0xff] %vm5620_vm8, %v5609_v40 }
 0x394   : > { %6605 = vrot.lane.b32.xlu0 %v9446_v49, %s9826_s11  ;;  %v5611_v4 = vpop.permute.xlu1 %5610  ;;  %v9464_v49 = vpop.eup %9463 }
 0x395   : > { %5628 = vst.msk [vmem:[%s12651_s26 + $0x38] sm:$0xff] %vm5620_vm8, %v5611_v4  ;;  %v9466_v62 = vpop.eup %9465 }
 0x396   : > { %v12710_v53 = vpop.permute.xlu0 %5379  ;;  %6607 = vrot.lane.b32.xlu1 %v9454_v25, %s9826_s11 }
 0x398   : > { %7017 = vrot.lane.b32.xlu0 %v12708_v6, %s9825_s17  ;;  %v12727_v21 = vpop.permute.xlu1 %5381  ;;  %v9468_v47 = vpop.eup %9467 }
 0x399   : > { %v9470_v25 = vpop.eup %9469 }
 0x39a   : > { %v5605_v20 = vpop.permute.xlu0 %5604  ;;  %7019 = vrot.lane.b32.xlu1 %v12722_v38, %s9825_s17 }
 0x39b   : > { %5625 = vst.msk [vmem:[%s12651_s26 + $0x20] sm:$0xff] %vm5620_vm8, %v5605_v20  ;;  %v9472_v37 = vpop.eup %9471 }
 0x39c   : > { %7013 = vrot.lane.b32.xlu0 %v12725_v43, %s9825_s17  ;;  %v5607_v0 = vpop.permute.xlu1 %5606 }
 0x39d   : > { %5626 = vst.msk [vmem:[%s12651_s26 + $0x28] sm:$0xff] %vm5620_vm8, %v5607_v0  ;;  %v9698_v0 = vld [vmem:[%s13283_s3 + $0x18] sm:$0xff] }
 0x39e   : > { %v12741_v28 = vpop.permute.xlu0 %5511  ;;  %7015 = vrot.lane.b32.xlu1 %v12739_v27, %s9825_s17 }
 0x3a0   : > { %7145 = vrot.lane.b32.xlu0 %v9458_v3, %s9826_s11  ;;  %v12750_v24 = vpop.permute.xlu1 %5513  ;;  %v5398_v3 = vmul.f32 %v9698_v0, %v12649_v48  ;;  %v9704_v0 = vld [vmem:[%s13283_s3 + $0x28] sm:$0xff] }
 0x3a2   : > { %v12752_v35 = vpop.permute.xlu0 %5507  ;;  %7147 = vrot.lane.b32.xlu1 %v9462_v46, %s9826_s11 }
 0x3a4   : > { %7141 = vrot.lane.b32.xlu0 %v9460_v11, %s9826_s11  ;;  %v12757_v40 = vpop.permute.xlu1 %5509  ;;  %v5395_v11 = vmul.f32 %v9699_v45, %v12664_v31 }
 0x3a6   : > { %v5922_v12 = vpop.permute.xlu0 %5921  ;;  %7143 = vrot.lane.b32.xlu1 %v9464_v49, %s9826_s11 }
 0x3a8   : > { %7153 = vrot.lane.b32.xlu0 %v9466_v62, %s9826_s11  ;;  %v5924_v32 = vpop.permute.xlu1 %5923  ;;  %v9700_v62 = vld [vmem:[%s13283_s3 + $0x8] sm:$0xff] }
 0x3a9   : > { %v5396_v48 = vmul.f32 %v9700_v62, %v12673_v2  ;;  %v5402_v2 = vmul.f32 %v9702_v23, %v12699_v61  ;;  %v5400_v61 = vmul.f32 %v9704_v0, %v12727_v21  ;;  %v9707_v21 = vld [vmem:[%s13283_s3 + $0x40] sm:$0xff] }
 0x3aa   : > { %v6146_v4 = vpop.permute.xlu0 %6145  ;;  %7155 = vrot.lane.b32.xlu1 %v9470_v25, %s9826_s11 }
 0x3ab   : > { %6167 = vst.msk [vmem:[%s12651_s26 + $0x50] sm:$0xff] %vm5620_vm8, %v6146_v4 }
 0x3ac   : > { %7149 = vrot.lane.b32.xlu0 %v9468_v47, %s9826_s11  ;;  %v6148_v17 = vpop.permute.xlu1 %6147  ;;  %v9701_v47 = vld [vmem:[%s13283_s3 + $0x30] sm:$0xff] }
 0x3ad   : > { %6168 = vst.msk [vmem:[%s12651_s26 + $0x58] sm:$0xff] %vm5620_vm8, %v6148_v17  ;;  %v5401_v31 = vmul.f32 %v9701_v47, %v12694_v10 }
 0x3ae   : > { %v5918_v20 = vpop.permute.xlu0 %5917  ;;  %7151 = vrot.lane.b32.xlu1 %v9472_v37, %s9826_s11 }
 0x3b0   : > { %5415 = vrot.lane.b32.xlu0 %v5397_v30, %s9825_s17  ;;  %v5920_v46 = vpop.permute.xlu1 %5919  ;;  %v9703_v30 = vld [vmem:[%s13283_s3 + $0x20] sm:$0xff] }
 0x3b1   : > { %v5399_v10 = vmul.f32 %v9703_v30, %v12710_v53  ;;  %v9710_v30 = vld [vmem:[%s13283_s3 + $0x78] sm:$0xff] }
 0x3b2   : > { %v6142_v49 = vpop.permute.xlu0 %6141  ;;  %5417 = vrot.lane.b32.xlu1 %v5398_v3, %s9825_s17  ;;  %v9705_v3 = vld [vmem:[%s13283_s3 + $0x50] sm:$0xff] }
 0x3b3   : > { %6165 = vst.msk [vmem:[%s12651_s26 + $0x40] sm:$0xff] %vm5620_vm8, %v6142_v49  ;;  %v5943_v53 = vmul.f32 %v9705_v3, %v5922_v12  ;;  %v9706_v49 = vld [vmem:[%s13283_s3 + $0x58] sm:$0xff] }
 0x3b4   : > { %5411 = vrot.lane.b32.xlu0 %v5395_v11, %s9825_s17  ;;  %v6144_v4 = vpop.permute.xlu1 %6143  ;;  %v5944_v62 = vmul.f32 %v9706_v49, %v5924_v32  ;;  %v9709_v32 = vld [vmem:[%s13283_s3 + $0x70] sm:$0xff] }
 0x3b5   : > { %6166 = vst.msk [vmem:[%s12651_s26 + $0x48] sm:$0xff] %vm5620_vm8, %v6144_v4 }
 0x3b6   : > { %v12793_v25 = vpop.permute.xlu0 %5519  ;;  %5413 = vrot.lane.b32.xlu1 %v5396_v48, %s9825_s17  ;;  %v5941_v48 = vmul.f32 %v9707_v21, %v5918_v20 }
 0x3b8   : > { %5423 = vrot.lane.b32.xlu0 %v5401_v31, %s9825_s17  ;;  %v12807_v17 = vpop.permute.xlu1 %5521  ;;  %v9708_v31 = vld [vmem:[%s13283_s3 + $0x48] sm:$0xff] }
 0x3b9   : > { %v5942_v4 = vmul.f32 %v9708_v31, %v5920_v46  ;;  %v9711_v46 = vld [vmem:[%s13283_s3 + $0x60] sm:$0xff]  ;;  %v9713_v31 = vld [vmem:[%s13283_s3 + $0x90] sm:$0xff] }
 0x3ba   : > { %v12809_v37 = vpop.permute.xlu0 %5515  ;;  %5425 = vrot.lane.b32.xlu1 %v5402_v2, %s9825_s17 }
 0x3bc   : > { %5419 = vrot.lane.b32.xlu0 %v5399_v10, %s9825_s17  ;;  %v12820_v45 = vpop.permute.xlu1 %5517 }
 0x3be   : > { %v5930_v11 = vpop.permute.xlu0 %5929  ;;  %5421 = vrot.lane.b32.xlu1 %v5400_v61, %s9825_s17 }
 0x3bf   : > { %v5947_v23 = vmul.f32 %v9709_v32, %v5930_v11 }
 0x3c0   : > { %5961 = vrot.lane.b32.xlu0 %v5943_v53, %s9825_s17  ;;  %v5932_v47 = vpop.permute.xlu1 %5931  ;;  %v9712_v53 = vld [vmem:[%s13283_s3 + $0x68] sm:$0xff] }
 0x3c1   : > { %v5948_v10 = vmul.f32 %v9710_v30, %v5932_v47  ;;  %v9715_v30 = vld [vmem:[%s13283_s3 + $0x80] sm:$0xff] }
 0x3c2   : > { %v6154_v12 = vpop.permute.xlu0 %6153  ;;  %5963 = vrot.lane.b32.xlu1 %v5944_v62, %s9825_s17 }
 0x3c3   : > { %6171 = vst.msk [vmem:[%s12651_s26 + $0x70] sm:$0xff] %vm5620_vm8, %v6154_v12 }
 0x3c4   : > { %5957 = vrot.lane.b32.xlu0 %v5941_v48, %s9825_s17  ;;  %v6156_v20 = vpop.permute.xlu1 %6155 }
 0x3c5   : > { %6172 = vst.msk [vmem:[%s12651_s26 + $0x78] sm:$0xff] %vm5620_vm8, %v6156_v20  ;;  %v9714_v20 = vld [vmem:[%s13283_s3 + $0x98] sm:$0xff] }
 0x3c6   : > { %v5926_v2 = vpop.permute.xlu0 %5925  ;;  %5959 = vrot.lane.b32.xlu1 %v5942_v4, %s9825_s17 }
 0x3c7   : > { %v5945_v0 = vmul.f32 %v9711_v46, %v5926_v2 }
 0x3c8   : > { %5969 = vrot.lane.b32.xlu0 %v5947_v23, %s9825_s17  ;;  %v5928_v61 = vpop.permute.xlu1 %5927 }
 0x3c9   : > { %v5946_v11 = vmul.f32 %v9712_v53, %v5928_v61  ;;  %v9716_v61 = vld [vmem:[%s13283_s3 + $0x88] sm:$0xff] }
 0x3ca   : > { %v6150_v3 = vpop.permute.xlu0 %6149  ;;  %5971 = vrot.lane.b32.xlu1 %v5948_v10, %s9825_s17 }
 0x3cb   : > { %6169 = vst.msk [vmem:[%s12651_s26 + $0x60] sm:$0xff] %vm5620_vm8, %v6150_v3 }
 0x3cc   : > { %5965 = vrot.lane.b32.xlu0 %v5945_v0, %s9825_s17  ;;  %v6152_v49 = vpop.permute.xlu1 %6151 }
 0x3cd   : > { %6170 = vst.msk [vmem:[%s12651_s26 + $0x68] sm:$0xff] %vm5620_vm8, %v6152_v49 }
 0x3ce   : > { %v12857_v62 = vpop.permute.xlu0 %6057  ;;  %5967 = vrot.lane.b32.xlu1 %v5946_v11, %s9825_s17 }
 0x3d0   : > { %v12862_v21 = vpop.permute.xlu1 %6059 }
 0x3d2   : > { %v12864_v48 = vpop.permute.xlu0 %6053 }
 0x3d4   : > { %v12866_v47 = vpop.permute.xlu1 %6055 }
 0x3d6   : > { %v6466_v12 = vpop.permute.xlu0 %6465 }
 0x3d7   : > { %v6487_v4 = vmul.f32 %v9713_v31, %v6466_v12 }
 0x3d8   : > { %v6468_v32 = vpop.permute.xlu1 %6467 }
 0x3d9   : > { %6505 = vrot.lane.b32.xlu0 %v6487_v4, %s9825_s17  ;;  %v6488_v2 = vmul.f32 %v9714_v20, %v6468_v32  ;;  %v9717_v32 = vld [vmem:[%s13283_s3 + $0xb0] sm:$0xff] }
 0x3da   : > { %v6462_v23 = vpop.permute.xlu0 %6461 }
 0x3db   : > { %v6485_v10 = vmul.f32 %v9715_v30, %v6462_v23  ;;  %6507 = vrot.lane.b32.xlu1 %v6488_v2, %s9825_s17  ;;  %v9718_v30 = vld [vmem:[%s13283_s3 + $0xb8] sm:$0xff] }
 0x3dc   : > { %v6464_v46 = vpop.permute.xlu1 %6463 }
 0x3dd   : > { %6501 = vrot.lane.b32.xlu0 %v6485_v10, %s9825_s17  ;;  %v6486_v3 = vmul.f32 %v9716_v61, %v6464_v46  ;;  %v9719_v46 = vld [vmem:[%s13283_s3 + $0xa0] sm:$0xff] }
 0x3de   : > { %v6686_v0 = vpop.permute.xlu0 %6685 }
 0x3df   : > { %6709 = vst.msk [vmem:[%s12651_s26 + $0x80] sm:$0xff] %vm5620_vm8, %v6686_v0  ;;  %6503 = vrot.lane.b32.xlu1 %v6486_v3, %s9825_s17 }
 0x3e0   : > { %v6688_v53 = vpop.permute.xlu1 %6687 }
 0x3e1   : > { %6710 = vst.msk [vmem:[%s12651_s26 + $0x88] sm:$0xff] %vm5620_vm8, %v6688_v53  ;;  %v9720_v53 = vld [vmem:[%s13283_s3 + $0xa8] sm:$0xff] }
 0x3e2   : > { %v12886_v11 = vpop.permute.xlu0 %6065 }
 0x3e4   : > { %v12890_v49 = vpop.permute.xlu1 %6067 }
 0x3e6   : > { %v12892_v12 = vpop.permute.xlu0 %6061 }
 0x3e8   : > { %v12894_v31 = vpop.permute.xlu1 %6063 }
 0x3ea   : > { %v6474_v4 = vpop.permute.xlu0 %6473 }
 0x3eb   : > { %v6491_v23 = vmul.f32 %v9717_v32, %v6474_v4 }
 0x3ec   : > { %v6476_v20 = vpop.permute.xlu1 %6475 }
 0x3ed   : > { %6513 = vrot.lane.b32.xlu0 %v6491_v23, %s9825_s17  ;;  %v6492_v10 = vmul.f32 %v9718_v30, %v6476_v20  ;;  %v9721_v30 = vld [vmem:[%s13283_s3 + $0xd0] sm:$0xff] }
 0x3ee   : > { %v6470_v2 = vpop.permute.xlu0 %6469 }
 0x3ef   : > { %v6489_v0 = vmul.f32 %v9719_v46, %v6470_v2  ;;  %6515 = vrot.lane.b32.xlu1 %v6492_v10, %s9825_s17 }
 0x3f0   : > { %v6472_v61 = vpop.permute.xlu1 %6471 }
 0x3f1   : > { %6509 = vrot.lane.b32.xlu0 %v6489_v0, %s9825_s17  ;;  %v6490_v4 = vmul.f32 %v9720_v53, %v6472_v61  ;;  %v9722_v61 = vld [vmem:[%s13283_s3 + $0xd8] sm:$0xff] }
 0x3f2   : > { %v12908_v3 = vpop.permute.xlu0 %6601 }
 0x3f3   : > { %6511 = vrot.lane.b32.xlu1 %v6490_v4, %s9825_s17  ;;  %v9723_v4 = vld [vmem:[%s13283_s3 + $0xc0] sm:$0xff] }
 0x3f4   : > { %v12914_v32 = vpop.permute.xlu1 %6603 }
 0x3f6   : > { %v12916_v23 = vpop.permute.xlu0 %6597 }
 0x3f8   : > { %v12918_v20 = vpop.permute.xlu1 %6599 }
 0x3fa   : > { %v7010_v2 = vpop.permute.xlu0 %7009 }
 0x3fb   : > { %v7031_v10 = vmul.f32 %v9721_v30, %v7010_v2  ;;  %v9724_v30 = vld [vmem:[%s13283_s3 + $0xc8] sm:$0xff] }
 0x3fc   : > { %v7012_v46 = vpop.permute.xlu1 %7011 }
 0x3fd   : > { %7049 = vrot.lane.b32.xlu0 %v7031_v10, %s9825_s17  ;;  %v7032_v53 = vmul.f32 %v9722_v61, %v7012_v46 }
 0x3fe   : > { %v7006_v0 = vpop.permute.xlu0 %7005 }
 0x3ff   : > { %v7029_v38 = vmul.f32 %v9723_v4, %v7006_v0  ;;  %7051 = vrot.lane.b32.xlu1 %v7032_v53, %s9825_s17 }
 0x400   : > { %v7008_v6 = vpop.permute.xlu1 %7007 }
 0x401   : > { %7045 = vrot.lane.b32.xlu0 %v7029_v38, %s9825_s17  ;;  %v7030_v10 = vmul.f32 %v9724_v30, %v7008_v6  ;;  %v9725_v38 = vld [vmem:[%s13283_s3 + $0xf0] sm:$0xff]  ;;  %v9726_v6 = vld [vmem:[%s13283_s3 + $0xf8] sm:$0xff] }
 0x402   : > { %v12932_v2 = vpop.permute.xlu0 %6609 }
 0x403   : > { %7047 = vrot.lane.b32.xlu1 %v7030_v10, %s9825_s17  ;;  %v9727_v10 = vld [vmem:[%s13283_s3 + $0xe0] sm:$0xff] }
 0x404   : > { %v12938_v46 = vpop.permute.xlu1 %6611 }
 0x406   : > { %v12940_v61 = vpop.permute.xlu0 %6605 }
 0x407   : > { %13540 = vst [vmem:[#allocation15_spill] sm:$0xff] %v12940_v61 }
 0x408   : > { %v12942_v1 = vpop.permute.xlu1 %6607 }
 0x409   : > { %13541 = vst [vmem:[#allocation50_spill] sm:$0xff] %v12942_v1 }
 0x40a   : > { %v7018_v0 = vpop.permute.xlu0 %7017 }
 0x40b   : > { %v7035_v53 = vmul.f32 %v9725_v38, %v7018_v0  ;;  %v9728_v38 = vld [vmem:[%s13283_s3 + $0xe8] sm:$0xff] }
 0x40c   : > { %v7020_v4 = vpop.permute.xlu1 %7019 }
 0x40d   : > { %7057 = vrot.lane.b32.xlu0 %v7035_v53, %s9825_s17  ;;  %v7036_v30 = vmul.f32 %v9726_v6, %v7020_v4 }
 0x40e   : > { %v7014_v19 = vpop.permute.xlu0 %7013 }
 0x40f   : > { %v7033_v1 = vmul.f32 %v9727_v10, %v7014_v19  ;;  %7059 = vrot.lane.b32.xlu1 %v7036_v30, %s9825_s17 }
 0x410   : > { %v7016_v61 = vpop.permute.xlu1 %7015 }
 0x411   : > { %7053 = vrot.lane.b32.xlu0 %v7033_v1, %s9825_s17  ;;  %v7034_v53 = vmul.f32 %v9728_v38, %v7016_v61 }
 0x412   : > { %v12956_v0 = vpop.permute.xlu0 %7145 }
 0x413   : > { %7055 = vrot.lane.b32.xlu1 %v7034_v53, %s9825_s17 }
 0x414   : > { %v12964_v4 = vpop.permute.xlu1 %7147 }
 0x415   : > { %6689 = vrot.lane.b32.xlu0 %v12552_v16, %s9827_s15 }
 0x416   : > { %v12966_v19 = vpop.permute.xlu0 %7141 }
 0x417   : > { %6691 = vrot.lane.b32.xlu1 %v12566_v60, %s9827_s15 }
 0x418   : > { %v12972_v1 = vpop.permute.xlu1 %7143 }
 0x419   : > { %6693 = vrot.lane.b32.xlu0 %v12625_v22, %s9827_s15 }
 0x41a   : > { %v12974_v6 = vpop.permute.xlu0 %7153 }
 0x41b   : > { %6695 = vrot.lane.b32.xlu1 %v12642_v50, %s9827_s15 }
 0x41c   : > { %v12980_v16 = vpop.permute.xlu1 %7155 }
 0x41d   : > { %6697 = vrot.lane.b32.xlu0 %v12611_v58, %s9827_s15 }
 0x41e   : > { %v12982_v61 = vpop.permute.xlu0 %7149 }
 0x41f   : > { %6699 = vrot.lane.b32.xlu1 %v12622_v42, %s9827_s15 }
 0x420   : > { %v12988_v60 = vpop.permute.xlu1 %7151 }
 0x421   : > { %7229 = vrot.lane.b32.xlu0 %v12679_v54, %s9827_s15 }
 0x422   : > { %v5416_v22 = vpop.permute.xlu0 %5415 }
 0x423   : > { %v5437_v30 = vadd.f32 %v5416_v22, %v11781_v5  ;;  %7231 = vrot.lane.b32.xlu1 %v12690_v34, %s9827_s15 }
 0x424   : > { %v5418_v58 = vpop.permute.xlu1 %5417 }
 0x425   : > { %v8025_v10 = vmul.f32 -1.442695, %v5437_v30  ;;  %7233 = vrot.lane.b32.xlu0 %v12662_v55, %s9827_s15  ;;  %v5438_v42 = vadd.f32 %v5418_v58, %v11788_v57 }
 0x426   : > { %v5412_v50 = vpop.permute.xlu0 %5411 }
 0x427   : > { %9473 = vpow2.f32 %v8025_v10  ;;  %v5435_v38 = vadd.f32 %v5412_v50, %v11785_v36  ;;  %v8026_v54 = vmul.f32 -1.442695, %v5438_v42  ;;  %7235 = vrot.lane.b32.xlu1 %v12676_v13, %s9827_s15 }
 0x428   : > { %v5414_v5 = vpop.permute.xlu1 %5413 }
 0x429   : > { %v8023_v53 = vmul.f32 -1.442695, %v5435_v38  ;;  %7237 = vrot.lane.b32.xlu0 %v12725_v43, %s9827_s15  ;;  %9475 = vpow2.f32 %v8026_v54  ;;  %v5436_v55 = vadd.f32 %v5414_v5, %v11793_v29 }
 0x42a   : > { %v5424_v34 = vpop.permute.xlu0 %5423 }
 0x42b   : > { %v5441_v22 = vadd.f32 %v5424_v34, %v11796_v9  ;;  %9477 = vpow2.f32 %v8023_v53  ;;  %v8024_v30 = vmul.f32 -1.442695, %v5436_v55  ;;  %7239 = vrot.lane.b32.xlu1 %v12739_v27, %s9827_s15 }
 0x42c   : > { %v5426_v36 = vpop.permute.xlu1 %5425 }
 0x42d   : > { %v8029_v57 = vmul.f32 -1.442695, %v5441_v22  ;;  %9479 = vpow2.f32 %v8024_v30  ;;  %v5442_v13 = vadd.f32 %v5426_v36, %v11807_v63 }
 0x42e   : > { %v5420_v10 = vpop.permute.xlu0 %5419 }
 0x42f   : > { %v5439_v43 = vadd.f32 %v5420_v10, %v13486_v51  ;;  %9481 = vpow2.f32 %v8029_v57  ;;  %v8030_v50 = vmul.f32 -1.442695, %v5442_v13 }
 0x430   : > { %v5422_v38 = vpop.permute.xlu1 %5421 }
 0x431   : > { %v9474_v58 = vpop.eup %9473  ;;  %v8027_v42 = vmul.f32 -1.442695, %v5439_v43  ;;  %9483 = vpow2.f32 %v8030_v50  ;;  %v5440_v54 = vadd.f32 %v5422_v38, %v13487_v56 }
 0x432   : > { %v5469_v29 = vadd.f32 1.0, %v9474_v58  ;;  %v5962_v9 = vpop.permute.xlu0 %5961 }
 0x433   : > { %v5983_v53 = vadd.f32 %v5962_v9, %v13490_v14  ;;  %v9476_v27 = vpop.eup %9475  ;;  %v8028_v5 = vmul.f32 -1.442695, %v5440_v54 }
 0x434   : > { %9485 = vrcp.f32 %v5469_v29  ;;  %v5470_v63 = vadd.f32 1.0, %v9476_v27  ;;  %v5964_v51 = vpop.permute.xlu1 %5963 }
 0x435   : > { %9487 = vpow2.f32 %v8027_v42  ;;  %v9478_v34 = vpop.eup %9477  ;;  %v8057_v55 = vmul.f32 -1.442695, %v5983_v53  ;;  %v5984_v57 = vadd.f32 %v5964_v51, %v11832_v33 }
 0x436   : > { %v5958_v22 = vpop.permute.xlu0 %5957  ;;  %v5467_v30 = vadd.f32 1.0, %v9478_v34  ;;  %9489 = vpow2.f32 %v8028_v5 }
 0x437   : > { %v5981_v36 = vadd.f32 %v5958_v22, %v13496_v7  ;;  %9491 = vrcp.f32 %v5470_v63  ;;  %v9480_v10 = vpop.eup %9479  ;;  %v8058_v56 = vmul.f32 -1.442695, %v5984_v57 }
 0x438   : > { %9493 = vrcp.f32 %v5467_v30  ;;  %v5468_v13 = vadd.f32 1.0, %v9480_v10  ;;  %v5960_v58 = vpop.permute.xlu1 %5959 }
 0x439   : > { %v9482_v14 = vpop.eup %9481  ;;  %9495 = vpow2.f32 %v8057_v55  ;;  %v8055_v43 = vmul.f32 -1.442695, %v5981_v36  ;;  %v5982_v29 = vadd.f32 %v5960_v58, %v13497_v8 }
 0x43a   : > { %v5970_v50 = vpop.permute.xlu0 %5969  ;;  %v5473_v42 = vadd.f32 1.0, %v9482_v14  ;;  %9497 = vpow2.f32 %v8058_v56 }
 0x43b   : > { %v5987_v38 = vadd.f32 %v5970_v50, %v11850_v18  ;;  %9499 = vrcp.f32 %v5468_v13  ;;  %v9484_v33 = vpop.eup %9483  ;;  %v8056_v7 = vmul.f32 -1.442695, %v5982_v29 }
 0x43c   : > { %9501 = vrcp.f32 %v5473_v42  ;;  %v5474_v53 = vadd.f32 1.0, %v9484_v33  ;;  %v5972_v27 = vpop.permute.xlu1 %5971 }
 0x43d   : > { %v8061_v9 = vmul.f32 -1.442695, %v5987_v38  ;;  %9503 = vpow2.f32 %v8055_v43  ;;  %v5988_v63 = vadd.f32 %v5972_v27, %v11872_v39 }
 0x43e   : > { %v9486_v54 = vpop.eup %9485  ;;  %v5966_v5 = vpop.permute.xlu0 %5965  ;;  %9505 = vpow2.f32 %v8056_v7 }
 0x43f   : > { %v9488_v34 = vpop.eup %9487  ;;  %v5985_v55 = vadd.f32 %v5966_v5, %v13505_v15  ;;  %v5533_v8 = vmul.f32 %v9486_v54, %v12741_v28  ;;  %9507 = vrcp.f32 %v5474_v53  ;;  %v8062_v22 = vmul.f32 -1.442695, %v5988_v63 }
 0x440   : > { %v5471_v18 = vadd.f32 1.0, %v9488_v34  ;;  %v9490_v51 = vpop.eup %9489  ;;  %9509 = vpow2.f32 %v8061_v9  ;;  %v5968_v56 = vpop.permute.xlu1 %5967 }
 0x441   : > { %v8059_v30 = vmul.f32 -1.442695, %v5985_v55  ;;  %v8146_v57 = vpack.c.bf16 %v5533_v8, %v5533_v8  ;;  %v9492_v36 = vpop.eup %9491  ;;  %v5472_v10 = vadd.f32 1.0, %v9490_v51  ;;  %v5986_v13 = vadd.f32 %v5968_v56, %v13506_v44 }
 0x442   : > { %9511 = vrcp.f32 %v5471_v18  ;;  %v9494_v14 = vpop.eup %9493  ;;  %v5534_v39 = vmul.f32 %v9492_v36, %v12750_v24 }
 0x443   : > { %9513 = vpow2.f32 %v8062_v22  ;;  %5567 = vrot.lane.b32.xlu0 %v8146_v57, %s9825_s17  ;;  %v9496_v15 = vpop.eup %9495  ;;  %v5531_v28 = vmul.f32 %v9494_v14, %v12752_v35  ;;  %v8060_v50 = vmul.f32 -1.442695, %v5986_v13 }
 0x444   : > { %9515 = vrcp.f32 %v5472_v10  ;;  %v9498_v43 = vpop.eup %9497  ;;  %v6015_v58 = vadd.f32 1.0, %v9496_v15  ;;  %v8147_v42 = vpack.c.bf16 %v5534_v39, %v5534_v39 }
 0x445   : > { %9517 = vpow2.f32 %v8059_v30  ;;  %v9500_v29 = vpop.eup %9499  ;;  %v6016_v38 = vadd.f32 1.0, %v9498_v43  ;;  %v8144_v33 = vpack.c.bf16 %v5531_v28, %v5531_v28  ;;  %v13542_v28 = vld [vmem:[#allocation14_spill] sm:$0xff] }
 0x446   : > { %v9502_v7 = vpop.eup %9501  ;;  %9519 = vrcp.f32 %v6015_v58  ;;  %5569 = vrot.lane.b32.xlu1 %v8147_v42, %s9825_s17  ;;  %v5532_v44 = vmul.f32 %v9500_v29, %v12757_v40 }
 0x447   : > { %v9504_v9 = vpop.eup %9503  ;;  %9521 = vrcp.f32 %v6016_v38  ;;  %5563 = vrot.lane.b32.xlu0 %v8144_v33, %s9825_s17  ;;  %v5537_v24 = vmul.f32 %v9502_v7, %v12793_v25 }
 0x448   : > { %v9506_v35 = vpop.eup %9505  ;;  %v6013_v54 = vadd.f32 1.0, %v9504_v9  ;;  %9523 = vpow2.f32 %v8060_v50  ;;  %v8145_v53 = vpack.c.bf16 %v5532_v44, %v5532_v44  ;;  %v13543_v44 = vld [vmem:[#allocation22_spill] sm:$0xff] }
 0x449   : > { %v9508_v27 = vpop.eup %9507  ;;  %v6014_v5 = vadd.f32 1.0, %v9506_v35  ;;  %v8150_v34 = vpack.c.bf16 %v5537_v24, %v5537_v24 }
 0x44a   : > { %v9510_v63 = vpop.eup %9509  ;;  %9525 = vrcp.f32 %v6013_v54  ;;  %5565 = vrot.lane.b32.xlu1 %v8145_v53, %s9825_s17  ;;  %v5538_v40 = vmul.f32 %v9508_v27, %v12807_v17 }
 0x44b   : > { %v6506_v55 = vpop.permute.xlu0 %6505  ;;  %9527 = vrcp.f32 %v6014_v5  ;;  %v6019_v18 = vadd.f32 1.0, %v9510_v63  ;;  %5575 = vrot.lane.b32.xlu0 %v8150_v34, %s9825_s17 }
 0x44c   : > { %v9512_v8 = vpop.eup %9511  ;;  %v6527_v25 = vadd.f32 %v6506_v55, %v11893_v41  ;;  %v8151_v22 = vpack.c.bf16 %v5538_v40, %v5538_v40 }
 0x44d   : > { %v9514_v51 = vpop.eup %9513  ;;  %v5535_v30 = vmul.f32 %v9512_v8, %v12809_v37  ;;  %9529 = vrcp.f32 %v6019_v18  ;;  %v6508_v14 = vpop.permute.xlu1 %6507 }
 0x44e   : > { %v9516_v57 = vpop.eup %9515  ;;  %v6020_v36 = vadd.f32 1.0, %v9514_v51  ;;  %v8089_v10 = vmul.f32 -1.442695, %v6527_v25  ;;  %5577 = vrot.lane.b32.xlu1 %v8151_v22, %s9825_s17  ;;  %v6528_v41 = vadd.f32 %v6508_v14, %v11913_v59 }
 0x44f   : > { %v9518_v56 = vpop.eup %9517  ;;  %v8148_v17 = vpack.c.bf16 %v5535_v30, %v5535_v30  ;;  %v6502_v13 = vpop.permute.xlu0 %6501  ;;  %v5536_v39 = vmul.f32 %v9516_v57, %v12820_v45 }
 0x450   : > { %9531 = vrcp.f32 %v6020_v36  ;;  %v6017_v15 = vadd.f32 1.0, %v9518_v56  ;;  %v6525_v43 = vadd.f32 %v6502_v13, %v13542_v28  ;;  %v9520_v58 = vpop.eup %9519  ;;  %v8090_v42 = vmul.f32 -1.442695, %v6528_v41 }
 0x451   : > { %9533 = vpow2.f32 %v8089_v10  ;;  %5571 = vrot.lane.b32.xlu0 %v8148_v17, %s9825_s17  ;;  %v8149_v37 = vpack.c.bf16 %v5536_v39, %v5536_v39  ;;  %v9522_v50 = vpop.eup %9521  ;;  %v6079_v38 = vmul.f32 %v9520_v58, %v12857_v62  ;;  %v6504_v45 = vpop.permute.xlu1 %6503  ;;  %v13544_v17 = vld [vmem:[#allocation23_spill] sm:$0xff] }
 0x452   : > { %9535 = vrcp.f32 %v6017_v15  ;;  %v8087_v29 = vmul.f32 -1.442695, %v6525_v43  ;;  %v9524_v33 = vpop.eup %9523  ;;  %v6080_v7 = vmul.f32 %v9522_v50, %v12862_v21  ;;  %v6526_v9 = vadd.f32 %v6504_v45, %v13543_v44  ;;  %v13545_v58 = vld [vmem:[#allocation27_spill] sm:$0xff]  ;;  %v13546_v50 = vld [vmem:[#allocation26_spill] sm:$0xff] }
 0x453   : > { %5573 = vrot.lane.b32.xlu1 %v8149_v37, %s9825_s17  ;;  %v6018_v59 = vadd.f32 1.0, %v9524_v33  ;;  %9537 = vpow2.f32 %v8090_v42  ;;  %v8154_v24 = vpack.c.bf16 %v6079_v38, %v6079_v38  ;;  %v13547_v45 = vld [vmem:[#allocation30_spill] sm:$0xff] }
 0x454   : > { %v9526_v35 = vpop.eup %9525  ;;  %9539 = vpow2.f32 %v8087_v29  ;;  %v8155_v54 = vpack.c.bf16 %v6080_v7, %v6080_v7  ;;  %v8088_v27 = vmul.f32 -1.442695, %v6526_v9 }
 0x455   : > { %v9528_v53 = vpop.eup %9527  ;;  %9541 = vrcp.f32 %v6018_v59  ;;  %6113 = vrot.lane.b32.xlu0 %v8154_v24, %s9825_s17  ;;  %v6077_v62 = vmul.f32 %v9526_v35, %v12864_v48 }
 0x456   : > { %v6078_v5 = vmul.f32 %v9528_v53, %v12866_v47  ;;  %9543 = vpow2.f32 %v8088_v27 }
 0x457   : > { %6115 = vrot.lane.b32.xlu1 %v8155_v54, %s9825_s17  ;;  %v9530_v21 = vpop.eup %9529  ;;  %v8152_v34 = vpack.c.bf16 %v6077_v62, %v6077_v62 }
 0x458   : > { %v8153_v63 = vpack.c.bf16 %v6078_v5, %v6078_v5  ;;  %v6083_v55 = vmul.f32 %v9530_v21, %v12886_v11 }
 0x459   : > { %6109 = vrot.lane.b32.xlu0 %v8152_v34, %s9825_s17 }
 0x45a   : > { %v9532_v40 = vpop.eup %9531  ;;  %v8158_v18 = vpack.c.bf16 %v6083_v55, %v6083_v55 }
 0x45b   : > { %v9534_v8 = vpop.eup %9533  ;;  %6111 = vrot.lane.b32.xlu1 %v8153_v63, %s9825_s17  ;;  %v6084_v25 = vmul.f32 %v9532_v40, %v12890_v49 }
 0x45c   : > { %v9536_v48 = vpop.eup %9535  ;;  %v6559_v51 = vadd.f32 1.0, %v9534_v8 }
 0x45d   : > { %v8159_v22 = vpack.c.bf16 %v6084_v25, %v6084_v25  ;;  %v6081_v47 = vmul.f32 %v9536_v48, %v12892_v12  ;;  %v9538_v30 = vpop.eup %9537  ;;  %6121 = vrot.lane.b32.xlu0 %v8158_v18, %s9825_s17 }
 0x45e   : > { %9545 = vrcp.f32 %v6559_v51  ;;  %v9540_v57 = vpop.eup %9539  ;;  %v6560_v11 = vadd.f32 1.0, %v9538_v30 }
 0x45f   : > { %6123 = vrot.lane.b32.xlu1 %v8159_v22, %s9825_s17  ;;  %v8156_v36 = vpack.c.bf16 %v6081_v47, %v6081_v47  ;;  %v6514_v10 = vpop.permute.xlu0 %6513  ;;  %v9542_v56 = vpop.eup %9541  ;;  %v6557_v14 = vadd.f32 1.0, %v9540_v57  ;;  %v13549_v47 = vld [vmem:[#allocation36_spill] sm:$0xff]  ;;  %v13550_v57 = vld [vmem:[#allocation34_spill] sm:$0xff] }
 0x460   : > { %v6531_v13 = vadd.f32 %v6514_v10, %v13544_v17  ;;  %9547 = vrcp.f32 %v6560_v11  ;;  %v6082_v49 = vmul.f32 %v9542_v56, %v12894_v31  ;;  %v9544_v39 = vpop.eup %9543 }
 0x461   : > { %9549 = vrcp.f32 %v6557_v14  ;;  %6117 = vrot.lane.b32.xlu0 %v8156_v36, %s9825_s17  ;;  %v6558_v15 = vadd.f32 1.0, %v9544_v39  ;;  %v6516_v28 = vpop.permute.xlu1 %6515 }
 0x462   : > { %v8093_v12 = vmul.f32 -1.442695, %v6531_v13  ;;  %v8157_v41 = vpack.c.bf16 %v6082_v49, %v6082_v49  ;;  %v6532_v37 = vadd.f32 %v6516_v28, %v13545_v58 }
 0x463   : > { %v6510_v43 = vpop.permute.xlu0 %6509 }
 0x464   : > { %9551 = vpow2.f32 %v8093_v12  ;;  %v6529_v42 = vadd.f32 %v6510_v43, %v13546_v50  ;;  %6119 = vrot.lane.b32.xlu1 %v8157_v41, %s9825_s17  ;;  %v8094_v29 = vmul.f32 -1.442695, %v6532_v37 }
 0x465   : > { %9553 = vrcp.f32 %v6558_v15  ;;  %v6512_v31 = vpop.permute.xlu1 %6511 }
 0x466   : > { %v8091_v38 = vmul.f32 -1.442695, %v6529_v42  ;;  %9555 = vpow2.f32 %v8094_v29  ;;  %v6530_v7 = vadd.f32 %v6512_v31, %v13547_v45 }
 0x468   : > { %v9546_v33 = vpop.eup %9545  ;;  %9557 = vpow2.f32 %v8091_v38  ;;  %v8092_v44 = vmul.f32 -1.442695, %v6530_v7 }
 0x469   : > { %v6623_v59 = vmul.f32 %v9546_v33, %v12908_v3  ;;  %v13548_v3 = vld [vmem:[#allocation32_spill] sm:$0xff] }
 0x46a   : > { %v9548_v9 = vpop.eup %9547  ;;  %9559 = vpow2.f32 %v8092_v44 }
 0x46b   : > { %v8162_v24 = vpack.c.bf16 %v6623_v59, %v6623_v59  ;;  %v9550_v35 = vpop.eup %9549  ;;  %v6624_v54 = vmul.f32 %v9548_v9, %v12914_v32  ;;  %v13552_v9 = vld [vmem:[#allocation45_spill] sm:$0xff] }
 0x46c   : > { %v6621_v53 = vmul.f32 %v9550_v35, %v12916_v23 }
 0x46d   : > { %6657 = vrot.lane.b32.xlu0 %v8162_v24, %s9825_s17  ;;  %v8163_v62 = vpack.c.bf16 %v6624_v54, %v6624_v54 }
 0x46e   : > { %v9552_v27 = vpop.eup %9551  ;;  %v8160_v63 = vpack.c.bf16 %v6621_v53, %v6621_v53 }
 0x46f   : > { %v9554_v5 = vpop.eup %9553  ;;  %v6563_v21 = vadd.f32 1.0, %v9552_v27  ;;  %v7050_v34 = vpop.permute.xlu0 %7049  ;;  %6659 = vrot.lane.b32.xlu1 %v8163_v62, %s9825_s17 }
 0x470   : > { %v7071_v55 = vadd.f32 %v7050_v34, %v13548_v3  ;;  %v6622_v40 = vmul.f32 %v9554_v5, %v12918_v20  ;;  %v9556_v32 = vpop.eup %9555 }
 0x471   : > { %9561 = vrcp.f32 %v6563_v21  ;;  %6653 = vrot.lane.b32.xlu0 %v8160_v63, %s9825_s17  ;;  %v6564_v23 = vadd.f32 1.0, %v9556_v32  ;;  %v7052_v48 = vpop.permute.xlu1 %7051 }
 0x472   : > { %v8121_v8 = vmul.f32 -1.442695, %v7071_v55  ;;  %v8161_v18 = vpack.c.bf16 %v6622_v40, %v6622_v40  ;;  %v9558_v25 = vpop.eup %9557  ;;  %v7072_v30 = vadd.f32 %v7052_v48, %v13549_v47  ;;  %v13555_v55 = vld [vmem:[#allocation47_spill] sm:$0xff] }
 0x473   : > { %v7046_v51 = vpop.permute.xlu0 %7045  ;;  %v6561_v22 = vadd.f32 1.0, %v9558_v25 }
 0x474   : > { %9563 = vpow2.f32 %v8121_v8  ;;  %6655 = vrot.lane.b32.xlu1 %v8161_v18, %s9825_s17  ;;  %v7069_v11 = vadd.f32 %v7046_v51, %v13550_v57  ;;  %v9560_v20 = vpop.eup %9559  ;;  %v8122_v36 = vmul.f32 -1.442695, %v7072_v30 }
 0x475   : > { %9565 = vrcp.f32 %v6564_v23  ;;  %v6562_v56 = vadd.f32 1.0, %v9560_v20  ;;  %v7048_v14 = vpop.permute.xlu1 %7047 }
 0x476   : > { %9567 = vrcp.f32 %v6561_v22  ;;  %v8119_v10 = vmul.f32 -1.442695, %v7069_v11  ;;  %v7070_v17 = vadd.f32 %v7048_v14, %v13529_v26  ;;  %v13551_v26 = vld [vmem:[#allocation15_spill] sm:$0xff] }
 0x477   : > { %9569 = vpow2.f32 %v8122_v36 }
 0x478   : > { %9571 = vrcp.f32 %v6562_v56  ;;  %v8120_v13 = vmul.f32 -1.442695, %v7070_v17 }
 0x479   : > { %9573 = vpow2.f32 %v8119_v10 }
 0x47a   : > { %9575 = vpow2.f32 %v8120_v13 }
 0x47b   : > { %v9562_v49 = vpop.eup %9561 }
 0x47c   : > { %v6627_v39 = vmul.f32 %v9562_v49, %v12932_v2 }
 0x47e   : > { %v9564_v12 = vpop.eup %9563  ;;  %v8166_v15 = vpack.c.bf16 %v6627_v39, %v6627_v39 }
 0x47f   : > { %v9566_v41 = vpop.eup %9565  ;;  %v7103_v28 = vadd.f32 1.0, %v9564_v12  ;;  %v7058_v43 = vpop.permute.xlu0 %7057 }
 0x480   : > { %v9568_v58 = vpop.eup %9567  ;;  %v7075_v37 = vadd.f32 %v7058_v43, %v13536_v52  ;;  %6665 = vrot.lane.b32.xlu0 %v8166_v15, %s9825_s17  ;;  %v6628_v50 = vmul.f32 %v9566_v41, %v12938_v46  ;;  %v13553_v52 = vld [vmem:[#allocation43_spill] sm:$0xff]  ;;  %v13554_v46 = vld [vmem:[#allocation50_spill] sm:$0xff] }
 0x481   : > { %9577 = vrcp.f32 %v7103_v28  ;;  %v6625_v42 = vmul.f32 %v9568_v58, %v13551_v26  ;;  %v9570_v29 = vpop.eup %9569  ;;  %v7060_v45 = vpop.permute.xlu1 %7059 }
 0x482   : > { %v8125_v38 = vmul.f32 -1.442695, %v7075_v37  ;;  %v8167_v31 = vpack.c.bf16 %v6628_v50, %v6628_v50  ;;  %v9572_v33 = vpop.eup %9571  ;;  %v7104_v2 = vadd.f32 1.0, %v9570_v29  ;;  %v7076_v24 = vadd.f32 %v7060_v45, %v13552_v9 }
 0x483   : > { %v7054_v7 = vpop.permute.xlu0 %7053  ;;  %v8164_v59 = vpack.c.bf16 %v6625_v42, %v6625_v42  ;;  %v9574_v44 = vpop.eup %9573  ;;  %v6626_v54 = vmul.f32 %v9572_v33, %v13554_v46 }
 0x484   : > { %9579 = vpow2.f32 %v8125_v38  ;;  %6667 = vrot.lane.b32.xlu1 %v8167_v31, %s9825_s17  ;;  %v7073_v35 = vadd.f32 %v7054_v7, %v13553_v52  ;;  %v7101_v53 = vadd.f32 1.0, %v9574_v44  ;;  %v9576_v27 = vpop.eup %9575  ;;  %v8126_v62 = vmul.f32 -1.442695, %v7076_v24  ;;  %v13556_v44 = vld [vmem:[#allocation12_spill] sm:$0xff] }
 0x485   : > { %9581 = vrcp.f32 %v7104_v2  ;;  %6661 = vrot.lane.b32.xlu0 %v8164_v59, %s9825_s17  ;;  %v8165_v21 = vpack.c.bf16 %v6626_v54, %v6626_v54  ;;  %v7102_v34 = vadd.f32 1.0, %v9576_v27  ;;  %v7056_v63 = vpop.permute.xlu1 %7055 }
 0x486   : > { %v8123_v5 = vmul.f32 -1.442695, %v7073_v35  ;;  %9583 = vrcp.f32 %v7101_v53  ;;  %v7074_v40 = vadd.f32 %v7056_v63, %v13555_v55 }
 0x487   : > { %v6690_v3 = vpop.permute.xlu0 %6689  ;;  %9585 = vpow2.f32 %v8126_v62 }
 0x488   : > { %6663 = vrot.lane.b32.xlu1 %v8165_v21, %s9825_s17  ;;  %6711 = vst.msk [vmem:[%s12651_s26 + $0x90] sm:$0xff] %vm5620_vm8, %v6690_v3  ;;  %9587 = vrcp.f32 %v7102_v34  ;;  %v8124_v32 = vmul.f32 -1.442695, %v7074_v40 }
 0x489   : > { %9589 = vpow2.f32 %v8123_v5  ;;  %v6692_v18 = vpop.permute.xlu1 %6691 }
 0x48a   : > { %9591 = vpow2.f32 %v8124_v32  ;;  %6712 = vst.msk [vmem:[%s12651_s26 + $0x98] sm:$0xff] %vm5620_vm8, %v6692_v18 }
 0x48b   : > { %v9578_v8 = vpop.eup %9577  ;;  %v6694_v25 = vpop.permute.xlu0 %6693 }
 0x48c   : > { %6713 = vst.msk [vmem:[%s12651_s26 + $0xa0] sm:$0xff] %vm5620_vm8, %v6694_v25  ;;  %v7167_v23 = vmul.f32 %v9578_v8, %v12956_v0 }
 0x48d   : > { %v6696_v30 = vpop.permute.xlu1 %6695 }
 0x48e   : > { %v9580_v48 = vpop.eup %9579  ;;  %v8170_v51 = vpack.c.bf16 %v7167_v23, %v7167_v23  ;;  %6714 = vst.msk [vmem:[%s12651_s26 + $0xa8] sm:$0xff] %vm5620_vm8, %v6696_v30 }
 0x48f   : > { %v9582_v22 = vpop.eup %9581  ;;  %v7107_v47 = vadd.f32 1.0, %v9580_v48  ;;  %v6698_v57 = vpop.permute.xlu0 %6697 }
 0x490   : > { %6715 = vst.msk [vmem:[%s12651_s26 + $0xb0] sm:$0xff] %vm5620_vm8, %v6698_v57  ;;  %7201 = vrot.lane.b32.xlu0 %v8170_v51, %s9825_s17  ;;  %v7168_v11 = vmul.f32 %v9582_v22, %v12964_v4  ;;  %v9584_v20 = vpop.eup %9583 }
 0x491   : > { %9593 = vrcp.f32 %v7107_v47  ;;  %v9586_v36 = vpop.eup %9585  ;;  %v7165_v10 = vmul.f32 %v9584_v20, %v12966_v19  ;;  %v6700_v17 = vpop.permute.xlu1 %6699 }
 0x492   : > { %v8171_v0 = vpack.c.bf16 %v7168_v11, %v7168_v11  ;;  %v9588_v56 = vpop.eup %9587  ;;  %v7108_v14 = vadd.f32 1.0, %v9586_v36  ;;  %6716 = vst.msk [vmem:[%s12651_s26 + $0xb8] sm:$0xff] %vm5620_vm8, %v6700_v17 }
 0x493   : > { %v7230_v13 = vpop.permute.xlu0 %7229  ;;  %v9590_v49 = vpop.eup %9589  ;;  %v8168_v4 = vpack.c.bf16 %v7165_v10, %v7165_v10  ;;  %v7166_v39 = vmul.f32 %v9588_v56, %v12972_v1 }
 0x494   : > { %7203 = vrot.lane.b32.xlu1 %v8171_v0, %s9825_s17  ;;  %7253 = vst.msk [vmem:[%s12651_s26 + $0xc0] sm:$0xff] %vm5620_vm8, %v7230_v13  ;;  %9595 = vrcp.f32 %v7108_v14  ;;  %v7105_v12 = vadd.f32 1.0, %v9590_v49  ;;  %v9592_v19 = vpop.eup %9591 }
 0x495   : > { %7197 = vrot.lane.b32.xlu0 %v8168_v4, %s9825_s17  ;;  %v8169_v15 = vpack.c.bf16 %v7166_v39, %v7166_v39  ;;  %v7106_v41 = vadd.f32 1.0, %v9592_v19  ;;  %v7232_v28 = vpop.permute.xlu1 %7231 }
 0x496   : > { %9597 = vrcp.f32 %v7105_v12  ;;  %7254 = vst.msk [vmem:[%s12651_s26 + $0xc8] sm:$0xff] %vm5620_vm8, %v7232_v28 }
 0x497   : > { %v7234_v43 = vpop.permute.xlu0 %7233  ;;  %9599 = vrcp.f32 %v7106_v41 }
 0x498   : > { %7199 = vrot.lane.b32.xlu1 %v8169_v15, %s9825_s17  ;;  %7255 = vst.msk [vmem:[%s12651_s26 + $0xd0] sm:$0xff] %vm5620_vm8, %v7234_v43 }
 0x499   : > { %v7236_v58 = vpop.permute.xlu1 %7235 }
 0x49a   : > { %7256 = vst.msk [vmem:[%s12651_s26 + $0xd8] sm:$0xff] %vm5620_vm8, %v7236_v58 }
 0x49b   : > { %v9594_v1 = vpop.eup %9593  ;;  %v7238_v37 = vpop.permute.xlu0 %7237 }
 0x49c   : > { %7257 = vst.msk [vmem:[%s12651_s26 + $0xe0] sm:$0xff] %vm5620_vm8, %v7238_v37  ;;  %v7171_v50 = vmul.f32 %v9594_v1, %v12974_v6 }
 0x49d   : > { %v7240_v29 = vpop.permute.xlu1 %7239 }
 0x49e   : > { %v8174_v26 = vpack.c.bf16 %v7171_v50, %v7171_v50  ;;  %v9596_v42 = vpop.eup %9595  ;;  %7258 = vst.msk [vmem:[%s12651_s26 + $0xe8] sm:$0xff] %vm5620_vm8, %v7240_v29 }
 0x49f   : > { %v7172_v38 = vmul.f32 %v9596_v42, %v12980_v16  ;;  %v13557_v16 = vld [vmem:[#allocation13_spill] sm:$0xff] }
 0x4a0   : > { %7209 = vrot.lane.b32.xlu0 %v8174_v26, %s9825_s17  ;;  %v9598_v31 = vpop.eup %9597 }
 0x4a1   : > { %v8175_v33 = vpack.c.bf16 %v7172_v38, %v7172_v38  ;;  %v7169_v2 = vmul.f32 %v9598_v31, %v12982_v61  ;;  %v9600_v45 = vpop.eup %9599 }
 0x4a2   : > { %v7170_v6 = vmul.f32 %v9600_v45, %v12988_v60 }
 0x4a3   : > { %7211 = vrot.lane.b32.xlu1 %v8175_v33, %s9825_s17  ;;  %v8172_v7 = vpack.c.bf16 %v7169_v2, %v7169_v2 }
 0x4a4   : > { %v8173_v59 = vpack.c.bf16 %v7170_v6, %v7170_v6 }
 0x4a5   : > { %7205 = vrot.lane.b32.xlu0 %v8172_v7, %s9825_s17 }
 0x4a7   : > { %7207 = vrot.lane.b32.xlu1 %v8173_v59, %s9825_s17  ;;  %s8176_s17 = sshll.u32 %s9889_s25, 11  ;;  %s7262_s25 = scalar_lea.sflag [#allocation4], %s12630_s19 }
 0x4a8   : > { %s13192_s18 = scalar_lea.hbm %s13285_s5, %s8176_s17  ;;  %s9828_s17 = smov [#allocation3]  }
 0x4a9   : > { %7241 = vrot.lane.b32.xlu0 %v13556_v44, %s9827_s15  ;;  %s9733_s14 = sshll.u32 %s9828_s17, 4  ;;  %s9734_s14 = int_to_ptr.vmem [resolvable:$false] %s9733_s14 }
 0x4aa   : > { %s9735_s16 = scalar_lea.vmem %s9734_s14, 4096 }
 0x4ab   : > { %7243 = vrot.lane.b32.xlu1 %v13557_v16, %s9827_s15  ;;  %s7280_s15 = sshll.u32 %s13125_s13, 4  ;;  %s13198_s15 = int_to_ptr.vmem [resolvable:$true] %s7280_s15 }
 0x4ac   : > { %s9729_s10 = scalar_lea.vmem %s13198_s15, 2048  ;;  %p9736_p0 = scmp.lt.s32.totalorder %s13198_s15, %s9734_s14 }
 0x4ad   : > { %p9730_p11 = scmp.ne.s32.totalorder %s13198_s15, %s9729_s10  ;;  %p9737_p1 = scmp.lt.s32.totalorder %s9735_s16, %s9729_s10 }
 0x4af   : > { %p9731_p12 = pnand %p9730_p11, %p9906_p5  ;;  %p9738_p2 = por %p9737_p1, %p9736_p0 }
 0x4b1   : > { %p9732_p13 = pneg %p9731_p12 }
 0x4b3   : > { %p9739_p3 = pnand %p9738_p2, %p9732_p13 }
 0x4b5   : > { %v5568_v61 = vpop.permute.xlu0 %5567 }
 0x4b6   : > { %5590 = vst.msk [vmem:[%s13125_s13 + $0x8] sm:$0xf] %vm5587_vm9, %v5568_v61 }
 0x4b8   : > { %v5570_v60 = vpop.permute.xlu1 %5569 }
 0x4b9   : > { %5591 = vst.msk [vmem:[%s13125_s13 + $0xc] sm:$0xf] %vm5587_vm9, %v5570_v60  ;;  %v5564_v9 = vpop.permute.xlu0 %5563 }
 0x4ba   : > { %5588 = vst.msk [vmem:[%s13125_s13] sm:$0xf] %vm5587_vm9, %v5564_v9 }
 0x4bc   : > { %v5566_v24 = vpop.permute.xlu1 %5565 }
 0x4bd   : > { %5589 = vst.msk [vmem:[%s13125_s13 + $0x4] sm:$0xf] %vm5587_vm9, %v5566_v24  ;;  %v5576_v52 = vpop.permute.xlu0 %5575 }
 0x4be   : > { %5594 = vst.msk [vmem:[%s13125_s13 + $0x18] sm:$0xf] %vm5587_vm9, %v5576_v52 }
 0x4c0   : > { %v5578_v35 = vpop.permute.xlu1 %5577 }
 0x4c1   : > { %5595 = vst.msk [vmem:[%s13125_s13 + $0x1c] sm:$0xf] %vm5587_vm9, %v5578_v35 }
 0x4c3   : > { %v5572_v46 = vpop.permute.xlu0 %5571 }
 0x4c4   : > { %5592 = vst.msk [vmem:[%s13125_s13 + $0x10] sm:$0xf] %vm5587_vm9, %v5572_v46 }
 0x4c5   : > { %v5574_v54 = vpop.permute.xlu1 %5573 }
 0x4c6   : > { %5593 = vst.msk [vmem:[%s13125_s13 + $0x14] sm:$0xf] %vm5587_vm9, %v5574_v54 }
 0x4c7   : > { %v6114_v53 = vpop.permute.xlu0 %6113 }
 0x4c8   : > { %6135 = vst.msk [vmem:[%s13125_s13 + $0x28] sm:$0xf] %vm5587_vm9, %v6114_v53 }
 0x4c9   : > { %v6116_v27 = vpop.permute.xlu1 %6115 }
 0x4ca   : > { %6136 = vst.msk [vmem:[%s13125_s13 + $0x2c] sm:$0xf] %vm5587_vm9, %v6116_v27 }
 0x4cb   : > { %v6110_v62 = vpop.permute.xlu0 %6109 }
 0x4cc   : > { %6133 = vst.msk [vmem:[%s13125_s13 + $0x20] sm:$0xf] %vm5587_vm9, %v6110_v62 }
 0x4cd   : > { %v6112_v5 = vpop.permute.xlu1 %6111 }
 0x4ce   : > { %6134 = vst.msk [vmem:[%s13125_s13 + $0x24] sm:$0xf] %vm5587_vm9, %v6112_v5 }
 0x4cf   : > { %v6122_v21 = vpop.permute.xlu0 %6121 }
 0x4d0   : > { %6139 = vst.msk [vmem:[%s13125_s13 + $0x38] sm:$0xf] %vm5587_vm9, %v6122_v21 }
 0x4d1   : > { %v6124_v34 = vpop.permute.xlu1 %6123 }
 0x4d2   : > { %6140 = vst.msk [vmem:[%s13125_s13 + $0x3c] sm:$0xf] %vm5587_vm9, %v6124_v34 }
 0x4d3   : > { %v6118_v63 = vpop.permute.xlu0 %6117 }
 0x4d4   : > { %6137 = vst.msk [vmem:[%s13125_s13 + $0x30] sm:$0xf] %vm5587_vm9, %v6118_v63 }
 0x4d6   : > { %v6120_v3 = vpop.permute.xlu1 %6119 }
 0x4d7   : > { %6138 = vst.msk [vmem:[%s13125_s13 + $0x34] sm:$0xf] %vm5587_vm9, %v6120_v3 }
 0x4df   : > { %v6658_v55 = vpop.permute.xlu0 %6657 }
 0x4e0   : > { %6679 = vst.msk [vmem:[%s13125_s13 + $0x48] sm:$0xf] %vm5587_vm9, %v6658_v55 }
 0x4e1   : > { %v6660_v40 = vpop.permute.xlu1 %6659 }
 0x4e2   : > { %6680 = vst.msk [vmem:[%s13125_s13 + $0x4c] sm:$0xf] %vm5587_vm9, %v6660_v40 }
 0x4e3   : > { %v6654_v32 = vpop.permute.xlu0 %6653 }
 0x4e4   : > { %6677 = vst.msk [vmem:[%s13125_s13 + $0x40] sm:$0xf] %vm5587_vm9, %v6654_v32 }
 0x4e6   : > { %v6656_v8 = vpop.permute.xlu1 %6655 }
 0x4e7   : > { %6678 = vst.msk [vmem:[%s13125_s13 + $0x44] sm:$0xf] %vm5587_vm9, %v6656_v8 }
 0x4f2   : > { %v6666_v18 = vpop.permute.xlu0 %6665 }
 0x4f3   : > { %6683 = vst.msk [vmem:[%s13125_s13 + $0x58] sm:$0xf] %vm5587_vm9, %v6666_v18 }
 0x4f6   : > { %v6668_v25 = vpop.permute.xlu1 %6667 }
 0x4f7   : > { %6684 = vst.msk [vmem:[%s13125_s13 + $0x5c] sm:$0xf] %vm5587_vm9, %v6668_v25  ;;  %v6662_v23 = vpop.permute.xlu0 %6661 }
 0x4f8   : > { %6681 = vst.msk [vmem:[%s13125_s13 + $0x50] sm:$0xf] %vm5587_vm9, %v6662_v23 }
 0x4fa   : > { %v6664_v48 = vpop.permute.xlu1 %6663 }
 0x4fb   : > { %6682 = vst.msk [vmem:[%s13125_s13 + $0x54] sm:$0xf] %vm5587_vm9, %v6664_v48 }
 0x502   : > { %v7202_v51 = vpop.permute.xlu0 %7201 }
 0x503   : > { %7223 = vst.msk [vmem:[%s13125_s13 + $0x68] sm:$0xf] %vm5587_vm9, %v7202_v51 }
 0x506   : > { %v7204_v22 = vpop.permute.xlu1 %7203 }
 0x507   : > { %7224 = vst.msk [vmem:[%s13125_s13 + $0x6c] sm:$0xf] %vm5587_vm9, %v7204_v22  ;;  %v7198_v47 = vpop.permute.xlu0 %7197 }
 0x508   : > { %7221 = vst.msk [vmem:[%s13125_s13 + $0x60] sm:$0xf] %vm5587_vm9, %v7198_v47 }
 0x50a   : > { %v7200_v30 = vpop.permute.xlu1 %7199 }
 0x50b   : > { %7222 = vst.msk [vmem:[%s13125_s13 + $0x64] sm:$0xf] %vm5587_vm9, %v7200_v30 }
 0x512   : > { %v7210_v57 = vpop.permute.xlu0 %7209 }
 0x513   : > { %7227 = vst.msk [vmem:[%s13125_s13 + $0x78] sm:$0xf] %vm5587_vm9, %v7210_v57 }
 0x515   : > { %v7212_v11 = vpop.permute.xlu1 %7211 }
 0x516   : > { %7228 = vst.msk [vmem:[%s13125_s13 + $0x7c] sm:$0xf] %vm5587_vm9, %v7212_v11 }
 0x517   : > { %v7206_v20 = vpop.permute.xlu0 %7205 }
 0x518   : > { %7225 = vst.msk [vmem:[%s13125_s13 + $0x70] sm:$0xf] %vm5587_vm9, %v7206_v20 }
 0x519   : > { %v7208_v36 = vpop.permute.xlu1 %7207 }
 0x51a   : > { %7226 = vst.msk [vmem:[%s13125_s13 + $0x74] sm:$0xf] %vm5587_vm9, %v7208_v36 }
 0x51b   : > { %v7242_v0 = vpop.permute.xlu0 %7241 }
 0x51c   : > { %9742 = shalt.err (!%p9739_p3)
}
 0x51d   : > { %s9743_s13 = scalar_lea.hbm %s13192_s18, 2048  ;;  %s9747_s9 = scalar_lea.hbm %s13285_s5, 4096 }
 0x51e   : > { %p9744_p4 = scmp.ne.s32.totalorder %s13192_s18, %s9743_s13  ;;  %p9748_p9 = scmp.lt.u32.totalorder %s13192_s18, %s13285_s5 }
 0x51f   : > { %p9749_p10 = scmp.lt.u32.totalorder %s9747_s9, %s9743_s13  ;;  %p9751_p12 = scmp.lt.u32.totalorder %s9743_s13, %s13192_s18 }
 0x520   : > { %p9745_p7 = pnand %p9744_p4, %p9906_p5 }
 0x521   : > { %p9750_p11 = por %p9749_p10, %p9748_p9 }
 0x522   : > { %p9746_p8 = pneg %p9745_p7 }
 0x523   : > { %p9752_p13 = por %p9751_p12, %p9750_p11 }
 0x525   : > { %p9753_p0 = pnand %p9752_p13, %p9746_p8 }
 0x527   : > { %9756 = shalt.err (!%p9753_p0)
}
 0x528   : > { %s9829_s10 = smov 4   ;;  %7259 = vst.msk [vmem:[%s12651_s26 + $0xf0] sm:$0xff] %vm5620_vm8, %v7242_v0  ;;  %v7244_v10 = vpop.permute.xlu1 %7243  ;;  %s7267_s16 = scalar_lea.sflag [#allocation6], %s12630_s19 }
 0x529   : > { %8964 = dma.vmem_to_hbm [thread:$0]  (%p9906_p5), %s13198_s15, 2048, %s13192_s18, %s7262_s25, %s9826_s11, %s9826_s11, %s9829_s10  }
 0x52a   : > { %7260 = vst.msk [vmem:[%s12651_s26 + $0xf8] sm:$0xff] %vm5620_vm8, %v7244_v10  ;;  %s9757_s13 = scalar_lea.vmem %s13207_s28, 4096  ;;  %s9830_s20 = smov [#allocation5]  }
 0x52b   : > { %p9758_p1 = scmp.ne.s32.totalorder %s13207_s28, %s9757_s13  ;;  %s9761_s29 = sshll.u32 %s9830_s20, 4  ;;  %s9762_s29 = int_to_ptr.vmem [resolvable:$false] %s9761_s29 }
 0x52c   : > { %s9763_s9 = scalar_lea.vmem %s9762_s29, 8192  ;;  %p9764_p4 = scmp.lt.s32.totalorder %s13207_s28, %s9762_s29 }
 0x52d   : > { %p9759_p2 = pnand %p9758_p1, %p9906_p5  ;;  %p9765_p7 = scmp.lt.s32.totalorder %s9763_s9, %s9757_s13 }
 0x52f   : > { %p9760_p3 = pneg %p9759_p2  ;;  %p9766_p8 = por %p9765_p7, %p9764_p4 }
 0x531   : > { %p9767_p9 = pnand %p9766_p8, %p9760_p3 }
 0x533   : > { %9770 = shalt.err (!%p9767_p9)
}
 0x534   : > { %s9771_s11 = scalar_lea.hbm %s13205_s12, 4096  ;;  %s9775_s18 = scalar_lea.hbm %s13286_s6, 8192 }
 0x535   : > { %p9772_p10 = scmp.ne.s32.totalorder %s13205_s12, %s9771_s11  ;;  %p9776_p13 = scmp.lt.u32.totalorder %s13205_s12, %s13286_s6 }
 0x536   : > { %p9777_p0 = scmp.lt.u32.totalorder %s9775_s18, %s9771_s11  ;;  %p9779_p2 = scmp.lt.u32.totalorder %s9771_s11, %s13205_s12 }
 0x537   : > { %p9773_p11 = pnand %p9772_p10, %p9906_p5 }
 0x538   : > { %p9778_p1 = por %p9777_p0, %p9776_p13 }
 0x539   : > { %p9774_p12 = pneg %p9773_p11 }
 0x53a   : > { %p9780_p3 = por %p9779_p2, %p9778_p1 }
 0x53c   : > { %p9781_p4 = pnand %p9780_p3, %p9774_p12 }
 0x53e   : > { %9784 = shalt.err (!%p9781_p4)
}
 0x53f   : > { %s9831_s14 = smov 128   ;;  %s9832_s10 = smov 8  }
 0x540   : > { %8965 = dma.vmem_to_hbm [thread:$0]  (%p9906_p5), %s13207_s28, 4096, %s13205_s12, %s7267_s16, %s9831_s14, %s9831_s14, %s9832_s10  }
 0x541 PF: > { %p8975_p7 = scmp.ge.s32.totalorder %s9823_s24, 2  ;;  %s7311_s13 = sand.u32 1, %s9811_s21  }
 0x542   : > { %s7312_s20 = scalar_lea.sflag [#allocation4], %s7311_s13 }
 0x543   : > { %p8969_p8 = pnand %p8975_p7, %p9910_p6 }
 0x545   : > { %9802 = dma.done.wait (!%p8969_p8), %s7312_s20, 2048  }
 0x546   : > { %9804 = vsyncadd (!%p8969_p8), %s7312_s20, 4294965248  ;;  %s7321_s29 = scalar_lea.sflag [#allocation6], %s7311_s13 }
 0x547   : > { %9806 = dma.done.wait (!%p8969_p8), %s7321_s29, 4096  }
 0x548   : > { %9808 = vsyncadd (!%p8969_p8), %s7321_s29, 4294963200  ;;  %p20_p5 = scmp.ge.s32.totalorder %s9893_s27, 4   ;;  %s13558_s21 = smov %s9815_s22 }
 0x549   : > { %s13559_s22 = smov %s9819_s23  ;;  %s13560_s23 = smov %s9904_s30 }
 0x54a   : > { %s13561_s24 = smov %s9893_s27  ;;  %22 = sbr.rel (!%p20_p5) target bundleno = 5 (0x5), region = 105 }
 0x551   :  { %7326 = vsyncpa [#allocation4], 1 }
 0x552   :  { %7328 = vsyncpa [#allocation4 + $0x1], 1 }
 0x553   :  { %7329 = vsyncpa [#allocation6], 1 }
 0x554   :  { %7331 = vsyncpa [#allocation6 + $0x1], 1 }

</bundles_post_ra>
